<compile_context>
chip_gen: v5e
topology: v5e:2x2
jax: 0.10.0
libtpu: 0.0.40
codegen_flags: <defaults>
</compile_context>

<pallas_src>
import functools

import jax
import jax.numpy as jnp
from jax.experimental import pallas as pl
from jax.experimental.pallas import tpu as pltpu

_VMEM = pl.BlockSpec(memory_space=pltpu.MemorySpace.VMEM)

_SELU_ALPHA = 1.6732632423543772
_SELU_SCALE = 1.0507009873554805


# ----------------------------------------------------------------------------
# Fused whole-model kernel
# ----------------------------------------------------------------------------
def make_model_kernel(num_layers, T, B, H):
    """Builds a kernel over refs:
       x_flat (T*B, E) time-major,
       per layer: wih (din, 8H)=[fwd|bwd], whh_f (H,4H), whh_b (H,4H), b (1,8H),
       head: w1 (2H,M), b1 (1,M), w2 (M,C), b2 (1,C),
       out (B, C).
    PyTorch gate order (i, f, g, o); bias is the combined b_ih + b_hh.
    """

    def kernel(*refs):
        x_ref = refs[0]
        lrefs = refs[1:1 + 4 * num_layers]
        hw1_ref, hb1_ref, hw2_ref, hb2_ref, out_ref = refs[1 + 4 * num_layers:]

        def gates_from_z(zz, c):
            # zz: (B, 4H) pre-activations with bias + input proj (+ h@Whh) included
            i = jax.nn.sigmoid(zz[:, 0 * H:1 * H])
            f = jax.nn.sigmoid(zz[:, 1 * H:2 * H])
            g = jnp.tanh(zz[:, 2 * H:3 * H])
            o = jax.nn.sigmoid(zz[:, 3 * H:4 * H])
            c_new = f * c + i * g
            return o * jnp.tanh(c_new), c_new

        def step(z_rows, h, c, whh):
            zz = z_rows + jnp.dot(h, whh, preferred_element_type=jnp.float32)
            return gates_from_z(zz, c)

        x_flat = x_ref[...].astype(jnp.float32)          # (T*B, din)
        zeros = jnp.zeros((B, H), jnp.float32)
        last = None

        for layer in range(num_layers):
            wih = lrefs[4 * layer][...]                  # (din, 8H)
            whh_f = lrefs[4 * layer + 1][...]            # (H, 4H)
            whh_b = lrefs[4 * layer + 2][...]            # (H, 4H)
            b = lrefs[4 * layer + 3][...]                # (1, 8H)

            # Hoisted, direction-fused input projection: one big MXU pass,
            # bias folded in; removes T tiny matmuls + per-step vadd from the
            # serial recurrence.
            z = jnp.dot(x_flat, wih,
                        preferred_element_type=jnp.float32) + b   # (T*B, 8H)

            h_f, c_f = zeros, zeros
            if layer < num_layers - 1:
                # Intermediate layer: full bidirectional history needed.
                h_b, c_b = zeros, zeros
                outs_f = [None] * T
                outs_b = [None] * T
                for t in range(T):                       # fully unrolled
                    tb = T - 1 - t
                    # Interleave the two independent recurrences.
                    h_f, c_f = step(z[t * B:(t + 1) * B, :4 * H], h_f, c_f, whh_f)
                    h_b, c_b = step(z[tb * B:(tb + 1) * B, 4 * H:], h_b, c_b, whh_b)
                    outs_f[t] = h_f
                    outs_b[tb] = h_b
                # Next layer input, time-major flat (T*B, 2H).
                x_flat = jnp.concatenate(
                    [jnp.concatenate([outs_f[t], outs_b[t]], axis=-1)
                     for t in range(T)],
                    axis=0)
            else:
                # Final layer: only out[:, -1, :] is needed.
                for t in range(T):                       # forward: keep last h only
                    h_f, c_f = step(z[t * B:(t + 1) * B, :4 * H], h_f, c_f, whh_f)
                # Backward contribution at t=T-1 is a single step from the zero
                # state (h0=0 -> no h@Whh matmul needed).
                h_b, _ = gates_from_z(z[(T - 1) * B:T * B, 4 * H:], zeros)
                last = jnp.concatenate([h_f, h_b], axis=-1)      # (B, 2H)

        # ---- Head: fc -> (dropout: identity in eval) -> SELU -> fc -> softmax
        # TODO(synk): nn.Dropout is identity at inference; not modeled stochastically.
        hh = jnp.dot(last, hw1_ref[...],
                     preferred_element_type=jnp.float32) + hb1_ref[...]
        hh = _SELU_SCALE * jnp.where(hh > 0, hh, _SELU_ALPHA * (jnp.exp(hh) - 1.0))
        logits = jnp.dot(hh, hw2_ref[...],
                         preferred_element_type=jnp.float32) + hb2_ref[...]
        m = jnp.max(logits, axis=1, keepdims=True)
        e = jnp.exp(logits - m)
        out_ref[...] = e * pl.reciprocal(jnp.sum(e, axis=1, keepdims=True),
                                         approx=True)

    return kernel


# ----------------------------------------------------------------------------
# Wrapper
# ----------------------------------------------------------------------------
@functools.partial(jax.jit, static_argnames=("num_layers",))
def model_forward(tokens, params, num_layers):
    """tokens: (B, T) int32 -> class probabilities (B, num_classes)."""
    B, T = tokens.shape
    # Embedding lookup (gather) stays in plain JAX glue; padding_idx=0 row is 0.
    emb = jnp.take(params["embedding"], tokens, axis=0)          # (B, T, E)
    # Time-major flatten: row index = t*B + b.
    x_flat = jnp.transpose(emb, (1, 0, 2)).reshape(T * B, -1).astype(jnp.float32)

    H = params["lstm"][0]["whh_f"].shape[0]
    C = params["fc_w2"].shape[1]

    inputs = [x_flat]
    for lw in params["lstm"]:
        inputs += [lw["wih"], lw["whh_f"], lw["whh_b"], lw["b"]]
    inputs += [params["fc_w1"], params["fc_b1"], params["fc_w2"], params["fc_b2"]]

    return pl.pallas_call(
        make_model_kernel(num_layers, T, B, H),
        out_shape=jax.ShapeDtypeStruct((B, C), jnp.float32),
        in_specs=[_VMEM] * len(inputs),
        out_specs=_VMEM,
    )(*inputs)


# ----------------------------------------------------------------------------
# Pure-JAX reference (straightforward formulation) for a numeric sanity check
# ----------------------------------------------------------------------------
def reference_forward(tokens, params, num_layers):
    emb = jnp.take(params["embedding"], tokens, axis=0)          # (B, T, E)
    x = jnp.transpose(emb, (1, 0, 2)).astype(jnp.float32)        # (T, B, E)
    T, B, _ = x.shape
    H = params["lstm"][0]["whh_f"].shape[0]

    def run_dir(xs, wih, whh, b):
        def cell(carry, x_t):
            h, c = carry
            z = x_t @ wih + h @ whh + b
            i = jax.nn.sigmoid(z[:, 0 * H:1 * H])
            f = jax.nn.sigmoid(z[:, 1 * H:2 * H])
            g = jnp.tanh(z[:, 2 * H:3 * H])
            o = jax.nn.sigmoid(z[:, 3 * H:4 * H])
            c = f * c + i * g
            h = o * jnp.tanh(c)
            return (h, c), h
        init = (jnp.zeros((B, H), jnp.float32), jnp.zeros((B, H), jnp.float32))
        _, hs = jax.lax.scan(cell, init, xs)
        return hs

    for layer in range(num_layers):
        lw = params["lstm"][layer]
        wih_f, wih_b = lw["wih"][:, :4 * H], lw["wih"][:, 4 * H:]
        b_f, b_b = lw["b"][:, :4 * H], lw["b"][:, 4 * H:]
        hf = run_dir(x, wih_f, lw["whh_f"], b_f)
        hb = run_dir(x[::-1], wih_b, lw["whh_b"], b_b)[::-1]
        x = jnp.concatenate([hf, hb], axis=-1)
    last = x[-1]                                                 # (B, 2H)
    h = jax.nn.selu(last @ params["fc_w1"] + params["fc_b1"])
    logits = h @ params["fc_w2"] + params["fc_b2"]
    return jax.nn.softmax(logits, axis=1)


# ----------------------------------------------------------------------------
# Deterministic parameter init (mirrors PyTorch module shapes, pre-fused layout)
# ----------------------------------------------------------------------------
def init_params(key, n_vocab, embed, hidden, num_layers, mid_fc, num_classes):
    keys = iter(jax.random.split(key, 128))

    def unif(shape, bound):
        return jax.random.uniform(next(keys), shape, jnp.float32, -bound, bound)

    emb = unif((n_vocab, embed), 1.0)
    emb = emb.at[0].set(0.0)  # padding_idx=0

    k = 1.0 / (hidden ** 0.5)
    lstm = []
    for layer in range(num_layers):
        din = embed if layer == 0 else 2 * hidden
        wih_f = unif((din, 4 * hidden), k)   # transposed vs PyTorch (4H, din)
        wih_b = unif((din, 4 * hidden), k)
        b_f = unif((1, 4 * hidden), k) + unif((1, 4 * hidden), k)  # b_ih + b_hh
        b_b = unif((1, 4 * hidden), k) + unif((1, 4 * hidden), k)
        lstm.append({
            "wih": jnp.concatenate([wih_f, wih_b], axis=1),        # (din, 8H)
            "whh_f": unif((hidden, 4 * hidden), k),
            "whh_b": unif((hidden, 4 * hidden), k),
            "b": jnp.concatenate([b_f, b_b], axis=1),              # (1, 8H)
        })

    k1 = 1.0 / ((2 * hidden) ** 0.5)
    k2 = 1.0 / (mid_fc ** 0.5)
    return {
        "embedding": emb,
        "lstm": lstm,
        "fc_w1": unif((2 * hidden, mid_fc), k1),
        "fc_b1": unif((1, mid_fc), k1),
        "fc_w2": unif((mid_fc, num_classes), k2),
        "fc_b2": unif((1, num_classes), k2),
    }


# ----------------------------------------------------------------------------
if __name__ == "__main__":
    # config
    n_vocab, embed, hidden, num_layers = 50, 32, 32, 2
    mid_fc, num_classes = 32, 4
    batch, seq = 2, 8

    key = jax.random.PRNGKey(0)
    kp, kx = jax.random.split(key)
    params = init_params(kp, n_vocab, embed, hidden, num_layers, mid_fc, num_classes)
    tokens = jax.random.randint(kx, (batch, seq), 0, n_vocab, dtype=jnp.int32)

    probs = model_forward(tokens, params, num_layers=num_layers)
    jax.block_until_ready(probs)

    assert probs.shape == (batch, num_classes)
    assert bool(jnp.all(jnp.isfinite(probs)))
    # approx-EUP reciprocal in the softmax => allow a slightly looser sum tolerance
    assert bool(jnp.allclose(jnp.sum(probs, axis=1), 1.0, atol=1e-3))

    ref = reference_forward(tokens, params, num_layers)
    assert bool(jnp.allclose(probs, ref, atol=2e-3, rtol=2e-3))

    print("KERNEL_OK")
</pallas_src>

<mosaic_0001>
module attributes {stable_mosaic.version = 11 : i64} {
  func.func @kernel(%arg0: memref<16x32xf32, #tpu.memory_space<vmem>>, %arg1: memref<32x256xf32, #tpu.memory_space<vmem>>, %arg2: memref<32x128xf32, #tpu.memory_space<vmem>>, %arg3: memref<32x128xf32, #tpu.memory_space<vmem>>, %arg4: memref<1x256xf32, #tpu.memory_space<vmem>>, %arg5: memref<64x256xf32, #tpu.memory_space<vmem>>, %arg6: memref<32x128xf32, #tpu.memory_space<vmem>>, %arg7: memref<32x128xf32, #tpu.memory_space<vmem>>, %arg8: memref<1x256xf32, #tpu.memory_space<vmem>>, %arg9: memref<64x32xf32, #tpu.memory_space<vmem>>, %arg10: memref<1x32xf32, #tpu.memory_space<vmem>>, %arg11: memref<32x4xf32, #tpu.memory_space<vmem>>, %arg12: memref<1x4xf32, #tpu.memory_space<vmem>>, %arg13: memref<2x4xf32, #tpu.memory_space<vmem>>) attributes {dimension_semantics = [], scalar_prefetch = 0 : i64, scratch_operands = 0 : i64, tpu.core_type = #tpu.core_type<tc>} {
    %c0 = arith.constant 0 : index
    %c0_0 = arith.constant 0 : index
    %0 = vector.load %arg0[%c0, %c0_0] : memref<16x32xf32, #tpu.memory_space<vmem>>, vector<16x32xf32>
    %cst = arith.constant 0.000000e+00 : f32
    %1 = vector.broadcast %cst : f32 to vector<2x32xf32>
    %c0_1 = arith.constant 0 : index
    %c0_2 = arith.constant 0 : index
    %2 = vector.load %arg1[%c0_1, %c0_2] : memref<32x256xf32, #tpu.memory_space<vmem>>, vector<32x256xf32>
    %c0_3 = arith.constant 0 : index
    %c0_4 = arith.constant 0 : index
    %3 = vector.load %arg2[%c0_3, %c0_4] : memref<32x128xf32, #tpu.memory_space<vmem>>, vector<32x128xf32>
    %c0_5 = arith.constant 0 : index
    %c0_6 = arith.constant 0 : index
    %4 = vector.load %arg3[%c0_5, %c0_6] : memref<32x128xf32, #tpu.memory_space<vmem>>, vector<32x128xf32>
    %c0_7 = arith.constant 0 : index
    %c0_8 = arith.constant 0 : index
    %5 = vector.load %arg4[%c0_7, %c0_8] : memref<1x256xf32, #tpu.memory_space<vmem>>, vector<1x256xf32>
    %cst_9 = arith.constant dense<0.000000e+00> : vector<16x256xf32>
    %6 = tpu.matmul %0, %2, %cst_9 {dimension_numbers = #tpu.dot_dimension_numbers<[1], [0], [0], [1], [0, 0, 1, 1], [], []>} : vector<16x32xf32>, vector<32x256xf32>, vector<16x256xf32> -> vector<16x256xf32>
    %7 = vector.broadcast %5 : vector<1x256xf32> to vector<16x256xf32>
    %8 = arith.addf %6, %7 : vector<16x256xf32>
    %9 = vector.extract_strided_slice %8 {offsets = [0, 0], sizes = [2, 128], strides = [1, 1]} : vector<16x256xf32> to vector<2x128xf32>
    %cst_10 = arith.constant dense<0.000000e+00> : vector<2x128xf32>
    %10 = tpu.matmul %1, %3, %cst_10 {dimension_numbers = #tpu.dot_dimension_numbers<[1], [0], [0], [1], [0, 0, 1, 1], [], []>} : vector<2x32xf32>, vector<32x128xf32>, vector<2x128xf32> -> vector<2x128xf32>
    %11 = arith.addf %9, %10 : vector<2x128xf32>
    %12 = vector.extract_strided_slice %11 {offsets = [0, 0], sizes = [2, 32], strides = [1, 1]} : vector<2x128xf32> to vector<2x32xf32>
    %13 = arith.negf %12 : vector<2x32xf32>
    %14 = math.exp %13 : vector<2x32xf32>
    %cst_11 = arith.constant 1.000000e+00 : f32
    %15 = vector.broadcast %cst_11 : f32 to vector<2x32xf32>
    %16 = arith.addf %15, %14 : vector<2x32xf32>
    %17 = arith.divf %15, %16 : vector<2x32xf32>
    %18 = vector.extract_strided_slice %11 {offsets = [0, 32], sizes = [2, 32], strides = [1, 1]} : vector<2x128xf32> to vector<2x32xf32>
    %19 = arith.negf %18 : vector<2x32xf32>
    %20 = math.exp %19 : vector<2x32xf32>
    %cst_12 = arith.constant 1.000000e+00 : f32
    %21 = vector.broadcast %cst_12 : f32 to vector<2x32xf32>
    %22 = arith.addf %21, %20 : vector<2x32xf32>
    %23 = arith.divf %21, %22 : vector<2x32xf32>
    %24 = vector.extract_strided_slice %11 {offsets = [0, 64], sizes = [2, 32], strides = [1, 1]} : vector<2x128xf32> to vector<2x32xf32>
    %25 = math.tanh %24 : vector<2x32xf32>
    %26 = vector.extract_strided_slice %11 {offsets = [0, 96], sizes = [2, 32], strides = [1, 1]} : vector<2x128xf32> to vector<2x32xf32>
    %27 = arith.negf %26 : vector<2x32xf32>
    %28 = math.exp %27 : vector<2x32xf32>
    %cst_13 = arith.constant 1.000000e+00 : f32
    %29 = vector.broadcast %cst_13 : f32 to vector<2x32xf32>
    %30 = arith.addf %29, %28 : vector<2x32xf32>
    %31 = arith.divf %29, %30 : vector<2x32xf32>
    %32 = arith.mulf %23, %1 : vector<2x32xf32>
    %33 = arith.mulf %17, %25 : vector<2x32xf32>
    %34 = arith.addf %32, %33 : vector<2x32xf32>
    %35 = math.tanh %34 : vector<2x32xf32>
    %36 = arith.mulf %31, %35 : vector<2x32xf32>
    %37 = vector.extract_strided_slice %8 {offsets = [14, 128], sizes = [2, 128], strides = [1, 1]} : vector<16x256xf32> to vector<2x128xf32>
    %cst_14 = arith.constant dense<0.000000e+00> : vector<2x128xf32>
    %38 = tpu.matmul %1, %4, %cst_14 {dimension_numbers = #tpu.dot_dimension_numbers<[1], [0], [0], [1], [0, 0, 1, 1], [], []>} : vector<2x32xf32>, vector<32x128xf32>, vector<2x128xf32> -> vector<2x128xf32>
    %39 = arith.addf %37, %38 : vector<2x128xf32>
    %40 = vector.extract_strided_slice %39 {offsets = [0, 0], sizes = [2, 32], strides = [1, 1]} : vector<2x128xf32> to vector<2x32xf32>
    %41 = arith.negf %40 : vector<2x32xf32>
    %42 = math.exp %41 : vector<2x32xf32>
    %cst_15 = arith.constant 1.000000e+00 : f32
    %43 = vector.broadcast %cst_15 : f32 to vector<2x32xf32>
    %44 = arith.addf %43, %42 : vector<2x32xf32>
    %45 = arith.divf %43, %44 : vector<2x32xf32>
    %46 = vector.extract_strided_slice %39 {offsets = [0, 32], sizes = [2, 32], strides = [1, 1]} : vector<2x128xf32> to vector<2x32xf32>
    %47 = arith.negf %46 : vector<2x32xf32>
    %48 = math.exp %47 : vector<2x32xf32>
    %cst_16 = arith.constant 1.000000e+00 : f32
    %49 = vector.broadcast %cst_16 : f32 to vector<2x32xf32>
    %50 = arith.addf %49, %48 : vector<2x32xf32>
    %51 = arith.divf %49, %50 : vector<2x32xf32>
    %52 = vector.extract_strided_slice %39 {offsets = [0, 64], sizes = [2, 32], strides = [1, 1]} : vector<2x128xf32> to vector<2x32xf32>
    %53 = math.tanh %52 : vector<2x32xf32>
    %54 = vector.extract_strided_slice %39 {offsets = [0, 96], sizes = [2, 32], strides = [1, 1]} : vector<2x128xf32> to vector<2x32xf32>
    %55 = arith.negf %54 : vector<2x32xf32>
    %56 = math.exp %55 : vector<2x32xf32>
    %cst_17 = arith.constant 1.000000e+00 : f32
    %57 = vector.broadcast %cst_17 : f32 to vector<2x32xf32>
    %58 = arith.addf %57, %56 : vector<2x32xf32>
    %59 = arith.divf %57, %58 : vector<2x32xf32>
    %60 = arith.mulf %51, %1 : vector<2x32xf32>
    %61 = arith.mulf %45, %53 : vector<2x32xf32>
    %62 = arith.addf %60, %61 : vector<2x32xf32>
    %63 = math.tanh %62 : vector<2x32xf32>
    %64 = arith.mulf %59, %63 : vector<2x32xf32>
    %65 = vector.extract_strided_slice %8 {offsets = [2, 0], sizes = [2, 128], strides = [1, 1]} : vector<16x256xf32> to vector<2x128xf32>
    %cst_18 = arith.constant dense<0.000000e+00> : vector<2x128xf32>
    %66 = tpu.matmul %36, %3, %cst_18 {dimension_numbers = #tpu.dot_dimension_numbers<[1], [0], [0], [1], [0, 0, 1, 1], [], []>} : vector<2x32xf32>, vector<32x128xf32>, vector<2x128xf32> -> vector<2x128xf32>
    %67 = arith.addf %65, %66 : vector<2x128xf32>
    %68 = vector.extract_strided_slice %67 {offsets = [0, 0], sizes = [2, 32], strides = [1, 1]} : vector<2x128xf32> to vector<2x32xf32>
    %69 = arith.negf %68 : vector<2x32xf32>
    %70 = math.exp %69 : vector<2x32xf32>
    %cst_19 = arith.constant 1.000000e+00 : f32
    %71 = vector.broadcast %cst_19 : f32 to vector<2x32xf32>
    %72 = arith.addf %71, %70 : vector<2x32xf32>
    %73 = arith.divf %71, %72 : vector<2x32xf32>
    %74 = vector.extract_strided_slice %67 {offsets = [0, 32], sizes = [2, 32], strides = [1, 1]} : vector<2x128xf32> to vector<2x32xf32>
    %75 = arith.negf %74 : vector<2x32xf32>
    %76 = math.exp %75 : vector<2x32xf32>
    %cst_20 = arith.constant 1.000000e+00 : f32
    %77 = vector.broadcast %cst_20 : f32 to vector<2x32xf32>
    %78 = arith.addf %77, %76 : vector<2x32xf32>
    %79 = arith.divf %77, %78 : vector<2x32xf32>
    %80 = vector.extract_strided_slice %67 {offsets = [0, 64], sizes = [2, 32], strides = [1, 1]} : vector<2x128xf32> to vector<2x32xf32>
    %81 = math.tanh %80 : vector<2x32xf32>
    %82 = vector.extract_strided_slice %67 {offsets = [0, 96], sizes = [2, 32], strides = [1, 1]} : vector<2x128xf32> to vector<2x32xf32>
    %83 = arith.negf %82 : vector<2x32xf32>
    %84 = math.exp %83 : vector<2x32xf32>
    %cst_21 = arith.constant 1.000000e+00 : f32
    %85 = vector.broadcast %cst_21 : f32 to vector<2x32xf32>
    %86 = arith.addf %85, %84 : vector<2x32xf32>
    %87 = arith.divf %85, %86 : vector<2x32xf32>
    %88 = arith.mulf %79, %34 : vector<2x32xf32>
    %89 = arith.mulf %73, %81 : vector<2x32xf32>
    %90 = arith.addf %88, %89 : vector<2x32xf32>
    %91 = math.tanh %90 : vector<2x32xf32>
    %92 = arith.mulf %87, %91 : vector<2x32xf32>
    %93 = vector.extract_strided_slice %8 {offsets = [12, 128], sizes = [2, 128], strides = [1, 1]} : vector<16x256xf32> to vector<2x128xf32>
    %cst_22 = arith.constant dense<0.000000e+00> : vector<2x128xf32>
    %94 = tpu.matmul %64, %4, %cst_22 {dimension_numbers = #tpu.dot_dimension_numbers<[1], [0], [0], [1], [0, 0, 1, 1], [], []>} : vector<2x32xf32>, vector<32x128xf32>, vector<2x128xf32> -> vector<2x128xf32>
    %95 = arith.addf %93, %94 : vector<2x128xf32>
    %96 = vector.extract_strided_slice %95 {offsets = [0, 0], sizes = [2, 32], strides = [1, 1]} : vector<2x128xf32> to vector<2x32xf32>
    %97 = arith.negf %96 : vector<2x32xf32>
    %98 = math.exp %97 : vector<2x32xf32>
    %cst_23 = arith.constant 1.000000e+00 : f32
    %99 = vector.broadcast %cst_23 : f32 to vector<2x32xf32>
    %100 = arith.addf %99, %98 : vector<2x32xf32>
    %101 = arith.divf %99, %100 : vector<2x32xf32>
    %102 = vector.extract_strided_slice %95 {offsets = [0, 32], sizes = [2, 32], strides = [1, 1]} : vector<2x128xf32> to vector<2x32xf32>
    %103 = arith.negf %102 : vector<2x32xf32>
    %104 = math.exp %103 : vector<2x32xf32>
    %cst_24 = arith.constant 1.000000e+00 : f32
    %105 = vector.broadcast %cst_24 : f32 to vector<2x32xf32>
    %106 = arith.addf %105, %104 : vector<2x32xf32>
    %107 = arith.divf %105, %106 : vector<2x32xf32>
    %108 = vector.extract_strided_slice %95 {offsets = [0, 64], sizes = [2, 32], strides = [1, 1]} : vector<2x128xf32> to vector<2x32xf32>
    %109 = math.tanh %108 : vector<2x32xf32>
    %110 = vector.extract_strided_slice %95 {offsets = [0, 96], sizes = [2, 32], strides = [1, 1]} : vector<2x128xf32> to vector<2x32xf32>
    %111 = arith.negf %110 : vector<2x32xf32>
    %112 = math.exp %111 : vector<2x32xf32>
    %cst_25 = arith.constant 1.000000e+00 : f32
    %113 = vector.broadcast %cst_25 : f32 to vector<2x32xf32>
    %114 = arith.addf %113, %112 : vector<2x32xf32>
    %115 = arith.divf %113, %114 : vector<2x32xf32>
    %116 = arith.mulf %107, %62 : vector<2x32xf32>
    %117 = arith.mulf %101, %109 : vector<2x32xf32>
    %118 = arith.addf %116, %117 : vector<2x32xf32>
    %119 = math.tanh %118 : vector<2x32xf32>
    %120 = arith.mulf %115, %119 : vector<2x32xf32>
    %121 = vector.extract_strided_slice %8 {offsets = [4, 0], sizes = [2, 128], strides = [1, 1]} : vector<16x256xf32> to vector<2x128xf32>
    %cst_26 = arith.constant dense<0.000000e+00> : vector<2x128xf32>
    %122 = tpu.matmul %92, %3, %cst_26 {dimension_numbers = #tpu.dot_dimension_numbers<[1], [0], [0], [1], [0, 0, 1, 1], [], []>} : vector<2x32xf32>, vector<32x128xf32>, vector<2x128xf32> -> vector<2x128xf32>
    %123 = arith.addf %121, %122 : vector<2x128xf32>
    %124 = vector.extract_strided_slice %123 {offsets = [0, 0], sizes = [2, 32], strides = [1, 1]} : vector<2x128xf32> to vector<2x32xf32>
    %125 = arith.negf %124 : vector<2x32xf32>
    %126 = math.exp %125 : vector<2x32xf32>
    %cst_27 = arith.constant 1.000000e+00 : f32
    %127 = vector.broadcast %cst_27 : f32 to vector<2x32xf32>
    %128 = arith.addf %127, %126 : vector<2x32xf32>
    %129 = arith.divf %127, %128 : vector<2x32xf32>
    %130 = vector.extract_strided_slice %123 {offsets = [0, 32], sizes = [2, 32], strides = [1, 1]} : vector<2x128xf32> to vector<2x32xf32>
    %131 = arith.negf %130 : vector<2x32xf32>
    %132 = math.exp %131 : vector<2x32xf32>
    %cst_28 = arith.constant 1.000000e+00 : f32
    %133 = vector.broadcast %cst_28 : f32 to vector<2x32xf32>
    %134 = arith.addf %133, %132 : vector<2x32xf32>
    %135 = arith.divf %133, %134 : vector<2x32xf32>
    %136 = vector.extract_strided_slice %123 {offsets = [0, 64], sizes = [2, 32], strides = [1, 1]} : vector<2x128xf32> to vector<2x32xf32>
    %137 = math.tanh %136 : vector<2x32xf32>
    %138 = vector.extract_strided_slice %123 {offsets = [0, 96], sizes = [2, 32], strides = [1, 1]} : vector<2x128xf32> to vector<2x32xf32>
    %139 = arith.negf %138 : vector<2x32xf32>
    %140 = math.exp %139 : vector<2x32xf32>
    %cst_29 = arith.constant 1.000000e+00 : f32
    %141 = vector.broadcast %cst_29 : f32 to vector<2x32xf32>
    %142 = arith.addf %141, %140 : vector<2x32xf32>
    %143 = arith.divf %141, %142 : vector<2x32xf32>
    %144 = arith.mulf %135, %90 : vector<2x32xf32>
    %145 = arith.mulf %129, %137 : vector<2x32xf32>
    %146 = arith.addf %144, %145 : vector<2x32xf32>
    %147 = math.tanh %146 : vector<2x32xf32>
    %148 = arith.mulf %143, %147 : vector<2x32xf32>
    %149 = vector.extract_strided_slice %8 {offsets = [10, 128], sizes = [2, 128], strides = [1, 1]} : vector<16x256xf32> to vector<2x128xf32>
    %cst_30 = arith.constant dense<0.000000e+00> : vector<2x128xf32>
    %150 = tpu.matmul %120, %4, %cst_30 {dimension_numbers = #tpu.dot_dimension_numbers<[1], [0], [0], [1], [0, 0, 1, 1], [], []>} : vector<2x32xf32>, vector<32x128xf32>, vector<2x128xf32> -> vector<2x128xf32>
    %151 = arith.addf %149, %150 : vector<2x128xf32>
    %152 = vector.extract_strided_slice %151 {offsets = [0, 0], sizes = [2, 32], strides = [1, 1]} : vector<2x128xf32> to vector<2x32xf32>
    %153 = arith.negf %152 : vector<2x32xf32>
    %154 = math.exp %153 : vector<2x32xf32>
    %cst_31 = arith.constant 1.000000e+00 : f32
    %155 = vector.broadcast %cst_31 : f32 to vector<2x32xf32>
    %156 = arith.addf %155, %154 : vector<2x32xf32>
    %157 = arith.divf %155, %156 : vector<2x32xf32>
    %158 = vector.extract_strided_slice %151 {offsets = [0, 32], sizes = [2, 32], strides = [1, 1]} : vector<2x128xf32> to vector<2x32xf32>
    %159 = arith.negf %158 : vector<2x32xf32>
    %160 = math.exp %159 : vector<2x32xf32>
    %cst_32 = arith.constant 1.000000e+00 : f32
    %161 = vector.broadcast %cst_32 : f32 to vector<2x32xf32>
    %162 = arith.addf %161, %160 : vector<2x32xf32>
    %163 = arith.divf %161, %162 : vector<2x32xf32>
    %164 = vector.extract_strided_slice %151 {offsets = [0, 64], sizes = [2, 32], strides = [1, 1]} : vector<2x128xf32> to vector<2x32xf32>
    %165 = math.tanh %164 : vector<2x32xf32>
    %166 = vector.extract_strided_slice %151 {offsets = [0, 96], sizes = [2, 32], strides = [1, 1]} : vector<2x128xf32> to vector<2x32xf32>
    %167 = arith.negf %166 : vector<2x32xf32>
    %168 = math.exp %167 : vector<2x32xf32>
    %cst_33 = arith.constant 1.000000e+00 : f32
    %169 = vector.broadcast %cst_33 : f32 to vector<2x32xf32>
    %170 = arith.addf %169, %168 : vector<2x32xf32>
    %171 = arith.divf %169, %170 : vector<2x32xf32>
    %172 = arith.mulf %163, %118 : vector<2x32xf32>
    %173 = arith.mulf %157, %165 : vector<2x32xf32>
    %174 = arith.addf %172, %173 : vector<2x32xf32>
    %175 = math.tanh %174 : vector<2x32xf32>
    %176 = arith.mulf %171, %175 : vector<2x32xf32>
    %177 = vector.extract_strided_slice %8 {offsets = [6, 0], sizes = [2, 128], strides = [1, 1]} : vector<16x256xf32> to vector<2x128xf32>
    %cst_34 = arith.constant dense<0.000000e+00> : vector<2x128xf32>
    %178 = tpu.matmul %148, %3, %cst_34 {dimension_numbers = #tpu.dot_dimension_numbers<[1], [0], [0], [1], [0, 0, 1, 1], [], []>} : vector<2x32xf32>, vector<32x128xf32>, vector<2x128xf32> -> vector<2x128xf32>
    %179 = arith.addf %177, %178 : vector<2x128xf32>
    %180 = vector.extract_strided_slice %179 {offsets = [0, 0], sizes = [2, 32], strides = [1, 1]} : vector<2x128xf32> to vector<2x32xf32>
    %181 = arith.negf %180 : vector<2x32xf32>
    %182 = math.exp %181 : vector<2x32xf32>
    %cst_35 = arith.constant 1.000000e+00 : f32
    %183 = vector.broadcast %cst_35 : f32 to vector<2x32xf32>
    %184 = arith.addf %183, %182 : vector<2x32xf32>
    %185 = arith.divf %183, %184 : vector<2x32xf32>
    %186 = vector.extract_strided_slice %179 {offsets = [0, 32], sizes = [2, 32], strides = [1, 1]} : vector<2x128xf32> to vector<2x32xf32>
    %187 = arith.negf %186 : vector<2x32xf32>
    %188 = math.exp %187 : vector<2x32xf32>
    %cst_36 = arith.constant 1.000000e+00 : f32
    %189 = vector.broadcast %cst_36 : f32 to vector<2x32xf32>
    %190 = arith.addf %189, %188 : vector<2x32xf32>
    %191 = arith.divf %189, %190 : vector<2x32xf32>
    %192 = vector.extract_strided_slice %179 {offsets = [0, 64], sizes = [2, 32], strides = [1, 1]} : vector<2x128xf32> to vector<2x32xf32>
    %193 = math.tanh %192 : vector<2x32xf32>
    %194 = vector.extract_strided_slice %179 {offsets = [0, 96], sizes = [2, 32], strides = [1, 1]} : vector<2x128xf32> to vector<2x32xf32>
    %195 = arith.negf %194 : vector<2x32xf32>
    %196 = math.exp %195 : vector<2x32xf32>
    %cst_37 = arith.constant 1.000000e+00 : f32
    %197 = vector.broadcast %cst_37 : f32 to vector<2x32xf32>
    %198 = arith.addf %197, %196 : vector<2x32xf32>
    %199 = arith.divf %197, %198 : vector<2x32xf32>
    %200 = arith.mulf %191, %146 : vector<2x32xf32>
    %201 = arith.mulf %185, %193 : vector<2x32xf32>
    %202 = arith.addf %200, %201 : vector<2x32xf32>
    %203 = math.tanh %202 : vector<2x32xf32>
    %204 = arith.mulf %199, %203 : vector<2x32xf32>
    %205 = vector.extract_strided_slice %8 {offsets = [8, 128], sizes = [2, 128], strides = [1, 1]} : vector<16x256xf32> to vector<2x128xf32>
    %cst_38 = arith.constant dense<0.000000e+00> : vector<2x128xf32>
    %206 = tpu.matmul %176, %4, %cst_38 {dimension_numbers = #tpu.dot_dimension_numbers<[1], [0], [0], [1], [0, 0, 1, 1], [], []>} : vector<2x32xf32>, vector<32x128xf32>, vector<2x128xf32> -> vector<2x128xf32>
    %207 = arith.addf %205, %206 : vector<2x128xf32>
    %208 = vector.extract_strided_slice %207 {offsets = [0, 0], sizes = [2, 32], strides = [1, 1]} : vector<2x128xf32> to vector<2x32xf32>
    %209 = arith.negf %208 : vector<2x32xf32>
    %210 = math.exp %209 : vector<2x32xf32>
    %cst_39 = arith.constant 1.000000e+00 : f32
    %211 = vector.broadcast %cst_39 : f32 to vector<2x32xf32>
    %212 = arith.addf %211, %210 : vector<2x32xf32>
    %213 = arith.divf %211, %212 : vector<2x32xf32>
    %214 = vector.extract_strided_slice %207 {offsets = [0, 32], sizes = [2, 32], strides = [1, 1]} : vector<2x128xf32> to vector<2x32xf32>
    %215 = arith.negf %214 : vector<2x32xf32>
    %216 = math.exp %215 : vector<2x32xf32>
    %cst_40 = arith.constant 1.000000e+00 : f32
    %217 = vector.broadcast %cst_40 : f32 to vector<2x32xf32>
    %218 = arith.addf %217, %216 : vector<2x32xf32>
    %219 = arith.divf %217, %218 : vector<2x32xf32>
    %220 = vector.extract_strided_slice %207 {offsets = [0, 64], sizes = [2, 32], strides = [1, 1]} : vector<2x128xf32> to vector<2x32xf32>
    %221 = math.tanh %220 : vector<2x32xf32>
    %222 = vector.extract_strided_slice %207 {offsets = [0, 96], sizes = [2, 32], strides = [1, 1]} : vector<2x128xf32> to vector<2x32xf32>
    %223 = arith.negf %222 : vector<2x32xf32>
    %224 = math.exp %223 : vector<2x32xf32>
    %cst_41 = arith.constant 1.000000e+00 : f32
    %225 = vector.broadcast %cst_41 : f32 to vector<2x32xf32>
    %226 = arith.addf %225, %224 : vector<2x32xf32>
    %227 = arith.divf %225, %226 : vector<2x32xf32>
    %228 = arith.mulf %219, %174 : vector<2x32xf32>
    %229 = arith.mulf %213, %221 : vector<2x32xf32>
    %230 = arith.addf %228, %229 : vector<2x32xf32>
    %231 = math.tanh %230 : vector<2x32xf32>
    %232 = arith.mulf %227, %231 : vector<2x32xf32>
    %233 = vector.extract_strided_slice %8 {offsets = [8, 0], sizes = [2, 128], strides = [1, 1]} : vector<16x256xf32> to vector<2x128xf32>
    %cst_42 = arith.constant dense<0.000000e+00> : vector<2x128xf32>
    %234 = tpu.matmul %204, %3, %cst_42 {dimension_numbers = #tpu.dot_dimension_numbers<[1], [0], [0], [1], [0, 0, 1, 1], [], []>} : vector<2x32xf32>, vector<32x128xf32>, vector<2x128xf32> -> vector<2x128xf32>
    %235 = arith.addf %233, %234 : vector<2x128xf32>
    %236 = vector.extract_strided_slice %235 {offsets = [0, 0], sizes = [2, 32], strides = [1, 1]} : vector<2x128xf32> to vector<2x32xf32>
    %237 = arith.negf %236 : vector<2x32xf32>
    %238 = math.exp %237 : vector<2x32xf32>
    %cst_43 = arith.constant 1.000000e+00 : f32
    %239 = vector.broadcast %cst_43 : f32 to vector<2x32xf32>
    %240 = arith.addf %239, %238 : vector<2x32xf32>
    %241 = arith.divf %239, %240 : vector<2x32xf32>
    %242 = vector.extract_strided_slice %235 {offsets = [0, 32], sizes = [2, 32], strides = [1, 1]} : vector<2x128xf32> to vector<2x32xf32>
    %243 = arith.negf %242 : vector<2x32xf32>
    %244 = math.exp %243 : vector<2x32xf32>
    %cst_44 = arith.constant 1.000000e+00 : f32
    %245 = vector.broadcast %cst_44 : f32 to vector<2x32xf32>
    %246 = arith.addf %245, %244 : vector<2x32xf32>
    %247 = arith.divf %245, %246 : vector<2x32xf32>
    %248 = vector.extract_strided_slice %235 {offsets = [0, 64], sizes = [2, 32], strides = [1, 1]} : vector<2x128xf32> to vector<2x32xf32>
    %249 = math.tanh %248 : vector<2x32xf32>
    %250 = vector.extract_strided_slice %235 {offsets = [0, 96], sizes = [2, 32], strides = [1, 1]} : vector<2x128xf32> to vector<2x32xf32>
    %251 = arith.negf %250 : vector<2x32xf32>
    %252 = math.exp %251 : vector<2x32xf32>
    %cst_45 = arith.constant 1.000000e+00 : f32
    %253 = vector.broadcast %cst_45 : f32 to vector<2x32xf32>
    %254 = arith.addf %253, %252 : vector<2x32xf32>
    %255 = arith.divf %253, %254 : vector<2x32xf32>
    %256 = arith.mulf %247, %202 : vector<2x32xf32>
    %257 = arith.mulf %241, %249 : vector<2x32xf32>
    %258 = arith.addf %256, %257 : vector<2x32xf32>
    %259 = math.tanh %258 : vector<2x32xf32>
    %260 = arith.mulf %255, %259 : vector<2x32xf32>
    %261 = vector.extract_strided_slice %8 {offsets = [6, 128], sizes = [2, 128], strides = [1, 1]} : vector<16x256xf32> to vector<2x128xf32>
    %cst_46 = arith.constant dense<0.000000e+00> : vector<2x128xf32>
    %262 = tpu.matmul %232, %4, %cst_46 {dimension_numbers = #tpu.dot_dimension_numbers<[1], [0], [0], [1], [0, 0, 1, 1], [], []>} : vector<2x32xf32>, vector<32x128xf32>, vector<2x128xf32> -> vector<2x128xf32>
    %263 = arith.addf %261, %262 : vector<2x128xf32>
    %264 = vector.extract_strided_slice %263 {offsets = [0, 0], sizes = [2, 32], strides = [1, 1]} : vector<2x128xf32> to vector<2x32xf32>
    %265 = arith.negf %264 : vector<2x32xf32>
    %266 = math.exp %265 : vector<2x32xf32>
    %cst_47 = arith.constant 1.000000e+00 : f32
    %267 = vector.broadcast %cst_47 : f32 to vector<2x32xf32>
    %268 = arith.addf %267, %266 : vector<2x32xf32>
    %269 = arith.divf %267, %268 : vector<2x32xf32>
    %270 = vector.extract_strided_slice %263 {offsets = [0, 32], sizes = [2, 32], strides = [1, 1]} : vector<2x128xf32> to vector<2x32xf32>
    %271 = arith.negf %270 : vector<2x32xf32>
    %272 = math.exp %271 : vector<2x32xf32>
    %cst_48 = arith.constant 1.000000e+00 : f32
    %273 = vector.broadcast %cst_48 : f32 to vector<2x32xf32>
    %274 = arith.addf %273, %272 : vector<2x32xf32>
    %275 = arith.divf %273, %274 : vector<2x32xf32>
    %276 = vector.extract_strided_slice %263 {offsets = [0, 64], sizes = [2, 32], strides = [1, 1]} : vector<2x128xf32> to vector<2x32xf32>
    %277 = math.tanh %276 : vector<2x32xf32>
    %278 = vector.extract_strided_slice %263 {offsets = [0, 96], sizes = [2, 32], strides = [1, 1]} : vector<2x128xf32> to vector<2x32xf32>
    %279 = arith.negf %278 : vector<2x32xf32>
    %280 = math.exp %279 : vector<2x32xf32>
    %cst_49 = arith.constant 1.000000e+00 : f32
    %281 = vector.broadcast %cst_49 : f32 to vector<2x32xf32>
    %282 = arith.addf %281, %280 : vector<2x32xf32>
    %283 = arith.divf %281, %282 : vector<2x32xf32>
    %284 = arith.mulf %275, %230 : vector<2x32xf32>
    %285 = arith.mulf %269, %277 : vector<2x32xf32>
    %286 = arith.addf %284, %285 : vector<2x32xf32>
    %287 = math.tanh %286 : vector<2x32xf32>
    %288 = arith.mulf %283, %287 : vector<2x32xf32>
    %289 = vector.extract_strided_slice %8 {offsets = [10, 0], sizes = [2, 128], strides = [1, 1]} : vector<16x256xf32> to vector<2x128xf32>
    %cst_50 = arith.constant dense<0.000000e+00> : vector<2x128xf32>
    %290 = tpu.matmul %260, %3, %cst_50 {dimension_numbers = #tpu.dot_dimension_numbers<[1], [0], [0], [1], [0, 0, 1, 1], [], []>} : vector<2x32xf32>, vector<32x128xf32>, vector<2x128xf32> -> vector<2x128xf32>
    %291 = arith.addf %289, %290 : vector<2x128xf32>
    %292 = vector.extract_strided_slice %291 {offsets = [0, 0], sizes = [2, 32], strides = [1, 1]} : vector<2x128xf32> to vector<2x32xf32>
    %293 = arith.negf %292 : vector<2x32xf32>
    %294 = math.exp %293 : vector<2x32xf32>
    %cst_51 = arith.constant 1.000000e+00 : f32
    %295 = vector.broadcast %cst_51 : f32 to vector<2x32xf32>
    %296 = arith.addf %295, %294 : vector<2x32xf32>
    %297 = arith.divf %295, %296 : vector<2x32xf32>
    %298 = vector.extract_strided_slice %291 {offsets = [0, 32], sizes = [2, 32], strides = [1, 1]} : vector<2x128xf32> to vector<2x32xf32>
    %299 = arith.negf %298 : vector<2x32xf32>
    %300 = math.exp %299 : vector<2x32xf32>
    %cst_52 = arith.constant 1.000000e+00 : f32
    %301 = vector.broadcast %cst_52 : f32 to vector<2x32xf32>
    %302 = arith.addf %301, %300 : vector<2x32xf32>
    %303 = arith.divf %301, %302 : vector<2x32xf32>
    %304 = vector.extract_strided_slice %291 {offsets = [0, 64], sizes = [2, 32], strides = [1, 1]} : vector<2x128xf32> to vector<2x32xf32>
    %305 = math.tanh %304 : vector<2x32xf32>
    %306 = vector.extract_strided_slice %291 {offsets = [0, 96], sizes = [2, 32], strides = [1, 1]} : vector<2x128xf32> to vector<2x32xf32>
    %307 = arith.negf %306 : vector<2x32xf32>
    %308 = math.exp %307 : vector<2x32xf32>
    %cst_53 = arith.constant 1.000000e+00 : f32
    %309 = vector.broadcast %cst_53 : f32 to vector<2x32xf32>
    %310 = arith.addf %309, %308 : vector<2x32xf32>
    %311 = arith.divf %309, %310 : vector<2x32xf32>
    %312 = arith.mulf %303, %258 : vector<2x32xf32>
    %313 = arith.mulf %297, %305 : vector<2x32xf32>
    %314 = arith.addf %312, %313 : vector<2x32xf32>
    %315 = math.tanh %314 : vector<2x32xf32>
    %316 = arith.mulf %311, %315 : vector<2x32xf32>
    %317 = vector.extract_strided_slice %8 {offsets = [4, 128], sizes = [2, 128], strides = [1, 1]} : vector<16x256xf32> to vector<2x128xf32>
    %cst_54 = arith.constant dense<0.000000e+00> : vector<2x128xf32>
    %318 = tpu.matmul %288, %4, %cst_54 {dimension_numbers = #tpu.dot_dimension_numbers<[1], [0], [0], [1], [0, 0, 1, 1], [], []>} : vector<2x32xf32>, vector<32x128xf32>, vector<2x128xf32> -> vector<2x128xf32>
    %319 = arith.addf %317, %318 : vector<2x128xf32>
    %320 = vector.extract_strided_slice %319 {offsets = [0, 0], sizes = [2, 32], strides = [1, 1]} : vector<2x128xf32> to vector<2x32xf32>
    %321 = arith.negf %320 : vector<2x32xf32>
    %322 = math.exp %321 : vector<2x32xf32>
    %cst_55 = arith.constant 1.000000e+00 : f32
    %323 = vector.broadcast %cst_55 : f32 to vector<2x32xf32>
    %324 = arith.addf %323, %322 : vector<2x32xf32>
    %325 = arith.divf %323, %324 : vector<2x32xf32>
    %326 = vector.extract_strided_slice %319 {offsets = [0, 32], sizes = [2, 32], strides = [1, 1]} : vector<2x128xf32> to vector<2x32xf32>
    %327 = arith.negf %326 : vector<2x32xf32>
    %328 = math.exp %327 : vector<2x32xf32>
    %cst_56 = arith.constant 1.000000e+00 : f32
    %329 = vector.broadcast %cst_56 : f32 to vector<2x32xf32>
    %330 = arith.addf %329, %328 : vector<2x32xf32>
    %331 = arith.divf %329, %330 : vector<2x32xf32>
    %332 = vector.extract_strided_slice %319 {offsets = [0, 64], sizes = [2, 32], strides = [1, 1]} : vector<2x128xf32> to vector<2x32xf32>
    %333 = math.tanh %332 : vector<2x32xf32>
    %334 = vector.extract_strided_slice %319 {offsets = [0, 96], sizes = [2, 32], strides = [1, 1]} : vector<2x128xf32> to vector<2x32xf32>
    %335 = arith.negf %334 : vector<2x32xf32>
    %336 = math.exp %335 : vector<2x32xf32>
    %cst_57 = arith.constant 1.000000e+00 : f32
    %337 = vector.broadcast %cst_57 : f32 to vector<2x32xf32>
    %338 = arith.addf %337, %336 : vector<2x32xf32>
    %339 = arith.divf %337, %338 : vector<2x32xf32>
    %340 = arith.mulf %331, %286 : vector<2x32xf32>
    %341 = arith.mulf %325, %333 : vector<2x32xf32>
    %342 = arith.addf %340, %341 : vector<2x32xf32>
    %343 = math.tanh %342 : vector<2x32xf32>
    %344 = arith.mulf %339, %343 : vector<2x32xf32>
    %345 = vector.extract_strided_slice %8 {offsets = [12, 0], sizes = [2, 128], strides = [1, 1]} : vector<16x256xf32> to vector<2x128xf32>
    %cst_58 = arith.constant dense<0.000000e+00> : vector<2x128xf32>
    %346 = tpu.matmul %316, %3, %cst_58 {dimension_numbers = #tpu.dot_dimension_numbers<[1], [0], [0], [1], [0, 0, 1, 1], [], []>} : vector<2x32xf32>, vector<32x128xf32>, vector<2x128xf32> -> vector<2x128xf32>
    %347 = arith.addf %345, %346 : vector<2x128xf32>
    %348 = vector.extract_strided_slice %347 {offsets = [0, 0], sizes = [2, 32], strides = [1, 1]} : vector<2x128xf32> to vector<2x32xf32>
    %349 = arith.negf %348 : vector<2x32xf32>
    %350 = math.exp %349 : vector<2x32xf32>
    %cst_59 = arith.constant 1.000000e+00 : f32
    %351 = vector.broadcast %cst_59 : f32 to vector<2x32xf32>
    %352 = arith.addf %351, %350 : vector<2x32xf32>
    %353 = arith.divf %351, %352 : vector<2x32xf32>
    %354 = vector.extract_strided_slice %347 {offsets = [0, 32], sizes = [2, 32], strides = [1, 1]} : vector<2x128xf32> to vector<2x32xf32>
    %355 = arith.negf %354 : vector<2x32xf32>
    %356 = math.exp %355 : vector<2x32xf32>
    %cst_60 = arith.constant 1.000000e+00 : f32
    %357 = vector.broadcast %cst_60 : f32 to vector<2x32xf32>
    %358 = arith.addf %357, %356 : vector<2x32xf32>
    %359 = arith.divf %357, %358 : vector<2x32xf32>
    %360 = vector.extract_strided_slice %347 {offsets = [0, 64], sizes = [2, 32], strides = [1, 1]} : vector<2x128xf32> to vector<2x32xf32>
    %361 = math.tanh %360 : vector<2x32xf32>
    %362 = vector.extract_strided_slice %347 {offsets = [0, 96], sizes = [2, 32], strides = [1, 1]} : vector<2x128xf32> to vector<2x32xf32>
    %363 = arith.negf %362 : vector<2x32xf32>
    %364 = math.exp %363 : vector<2x32xf32>
    %cst_61 = arith.constant 1.000000e+00 : f32
    %365 = vector.broadcast %cst_61 : f32 to vector<2x32xf32>
    %366 = arith.addf %365, %364 : vector<2x32xf32>
    %367 = arith.divf %365, %366 : vector<2x32xf32>
    %368 = arith.mulf %359, %314 : vector<2x32xf32>
    %369 = arith.mulf %353, %361 : vector<2x32xf32>
    %370 = arith.addf %368, %369 : vector<2x32xf32>
    %371 = math.tanh %370 : vector<2x32xf32>
    %372 = arith.mulf %367, %371 : vector<2x32xf32>
    %373 = vector.extract_strided_slice %8 {offsets = [2, 128], sizes = [2, 128], strides = [1, 1]} : vector<16x256xf32> to vector<2x128xf32>
    %cst_62 = arith.constant dense<0.000000e+00> : vector<2x128xf32>
    %374 = tpu.matmul %344, %4, %cst_62 {dimension_numbers = #tpu.dot_dimension_numbers<[1], [0], [0], [1], [0, 0, 1, 1], [], []>} : vector<2x32xf32>, vector<32x128xf32>, vector<2x128xf32> -> vector<2x128xf32>
    %375 = arith.addf %373, %374 : vector<2x128xf32>
    %376 = vector.extract_strided_slice %375 {offsets = [0, 0], sizes = [2, 32], strides = [1, 1]} : vector<2x128xf32> to vector<2x32xf32>
    %377 = arith.negf %376 : vector<2x32xf32>
    %378 = math.exp %377 : vector<2x32xf32>
    %cst_63 = arith.constant 1.000000e+00 : f32
    %379 = vector.broadcast %cst_63 : f32 to vector<2x32xf32>
    %380 = arith.addf %379, %378 : vector<2x32xf32>
    %381 = arith.divf %379, %380 : vector<2x32xf32>
    %382 = vector.extract_strided_slice %375 {offsets = [0, 32], sizes = [2, 32], strides = [1, 1]} : vector<2x128xf32> to vector<2x32xf32>
    %383 = arith.negf %382 : vector<2x32xf32>
    %384 = math.exp %383 : vector<2x32xf32>
    %cst_64 = arith.constant 1.000000e+00 : f32
    %385 = vector.broadcast %cst_64 : f32 to vector<2x32xf32>
    %386 = arith.addf %385, %384 : vector<2x32xf32>
    %387 = arith.divf %385, %386 : vector<2x32xf32>
    %388 = vector.extract_strided_slice %375 {offsets = [0, 64], sizes = [2, 32], strides = [1, 1]} : vector<2x128xf32> to vector<2x32xf32>
    %389 = math.tanh %388 : vector<2x32xf32>
    %390 = vector.extract_strided_slice %375 {offsets = [0, 96], sizes = [2, 32], strides = [1, 1]} : vector<2x128xf32> to vector<2x32xf32>
    %391 = arith.negf %390 : vector<2x32xf32>
    %392 = math.exp %391 : vector<2x32xf32>
    %cst_65 = arith.constant 1.000000e+00 : f32
    %393 = vector.broadcast %cst_65 : f32 to vector<2x32xf32>
    %394 = arith.addf %393, %392 : vector<2x32xf32>
    %395 = arith.divf %393, %394 : vector<2x32xf32>
    %396 = arith.mulf %387, %342 : vector<2x32xf32>
    %397 = arith.mulf %381, %389 : vector<2x32xf32>
    %398 = arith.addf %396, %397 : vector<2x32xf32>
    %399 = math.tanh %398 : vector<2x32xf32>
    %400 = arith.mulf %395, %399 : vector<2x32xf32>
    %401 = vector.extract_strided_slice %8 {offsets = [14, 0], sizes = [2, 128], strides = [1, 1]} : vector<16x256xf32> to vector<2x128xf32>
    %cst_66 = arith.constant dense<0.000000e+00> : vector<2x128xf32>
    %402 = tpu.matmul %372, %3, %cst_66 {dimension_numbers = #tpu.dot_dimension_numbers<[1], [0], [0], [1], [0, 0, 1, 1], [], []>} : vector<2x32xf32>, vector<32x128xf32>, vector<2x128xf32> -> vector<2x128xf32>
    %403 = arith.addf %401, %402 : vector<2x128xf32>
    %404 = vector.extract_strided_slice %403 {offsets = [0, 0], sizes = [2, 32], strides = [1, 1]} : vector<2x128xf32> to vector<2x32xf32>
    %405 = arith.negf %404 : vector<2x32xf32>
    %406 = math.exp %405 : vector<2x32xf32>
    %cst_67 = arith.constant 1.000000e+00 : f32
    %407 = vector.broadcast %cst_67 : f32 to vector<2x32xf32>
    %408 = arith.addf %407, %406 : vector<2x32xf32>
    %409 = arith.divf %407, %408 : vector<2x32xf32>
    %410 = vector.extract_strided_slice %403 {offsets = [0, 32], sizes = [2, 32], strides = [1, 1]} : vector<2x128xf32> to vector<2x32xf32>
    %411 = arith.negf %410 : vector<2x32xf32>
    %412 = math.exp %411 : vector<2x32xf32>
    %cst_68 = arith.constant 1.000000e+00 : f32
    %413 = vector.broadcast %cst_68 : f32 to vector<2x32xf32>
    %414 = arith.addf %413, %412 : vector<2x32xf32>
    %415 = arith.divf %413, %414 : vector<2x32xf32>
    %416 = vector.extract_strided_slice %403 {offsets = [0, 64], sizes = [2, 32], strides = [1, 1]} : vector<2x128xf32> to vector<2x32xf32>
    %417 = math.tanh %416 : vector<2x32xf32>
    %418 = vector.extract_strided_slice %403 {offsets = [0, 96], sizes = [2, 32], strides = [1, 1]} : vector<2x128xf32> to vector<2x32xf32>
    %419 = arith.negf %418 : vector<2x32xf32>
    %420 = math.exp %419 : vector<2x32xf32>
    %cst_69 = arith.constant 1.000000e+00 : f32
    %421 = vector.broadcast %cst_69 : f32 to vector<2x32xf32>
    %422 = arith.addf %421, %420 : vector<2x32xf32>
    %423 = arith.divf %421, %422 : vector<2x32xf32>
    %424 = arith.mulf %415, %370 : vector<2x32xf32>
    %425 = arith.mulf %409, %417 : vector<2x32xf32>
    %426 = arith.addf %424, %425 : vector<2x32xf32>
    %427 = math.tanh %426 : vector<2x32xf32>
    %428 = arith.mulf %423, %427 : vector<2x32xf32>
    %429 = vector.extract_strided_slice %8 {offsets = [0, 128], sizes = [2, 128], strides = [1, 1]} : vector<16x256xf32> to vector<2x128xf32>
    %cst_70 = arith.constant dense<0.000000e+00> : vector<2x128xf32>
    %430 = tpu.matmul %400, %4, %cst_70 {dimension_numbers = #tpu.dot_dimension_numbers<[1], [0], [0], [1], [0, 0, 1, 1], [], []>} : vector<2x32xf32>, vector<32x128xf32>, vector<2x128xf32> -> vector<2x128xf32>
    %431 = arith.addf %429, %430 : vector<2x128xf32>
    %432 = vector.extract_strided_slice %431 {offsets = [0, 0], sizes = [2, 32], strides = [1, 1]} : vector<2x128xf32> to vector<2x32xf32>
    %433 = arith.negf %432 : vector<2x32xf32>
    %434 = math.exp %433 : vector<2x32xf32>
    %cst_71 = arith.constant 1.000000e+00 : f32
    %435 = vector.broadcast %cst_71 : f32 to vector<2x32xf32>
    %436 = arith.addf %435, %434 : vector<2x32xf32>
    %437 = arith.divf %435, %436 : vector<2x32xf32>
    %438 = vector.extract_strided_slice %431 {offsets = [0, 32], sizes = [2, 32], strides = [1, 1]} : vector<2x128xf32> to vector<2x32xf32>
    %439 = arith.negf %438 : vector<2x32xf32>
    %440 = math.exp %439 : vector<2x32xf32>
    %cst_72 = arith.constant 1.000000e+00 : f32
    %441 = vector.broadcast %cst_72 : f32 to vector<2x32xf32>
    %442 = arith.addf %441, %440 : vector<2x32xf32>
    %443 = arith.divf %441, %442 : vector<2x32xf32>
    %444 = vector.extract_strided_slice %431 {offsets = [0, 64], sizes = [2, 32], strides = [1, 1]} : vector<2x128xf32> to vector<2x32xf32>
    %445 = math.tanh %444 : vector<2x32xf32>
    %446 = vector.extract_strided_slice %431 {offsets = [0, 96], sizes = [2, 32], strides = [1, 1]} : vector<2x128xf32> to vector<2x32xf32>
    %447 = arith.negf %446 : vector<2x32xf32>
    %448 = math.exp %447 : vector<2x32xf32>
    %cst_73 = arith.constant 1.000000e+00 : f32
    %449 = vector.broadcast %cst_73 : f32 to vector<2x32xf32>
    %450 = arith.addf %449, %448 : vector<2x32xf32>
    %451 = arith.divf %449, %450 : vector<2x32xf32>
    %452 = arith.mulf %443, %398 : vector<2x32xf32>
    %453 = arith.mulf %437, %445 : vector<2x32xf32>
    %454 = arith.addf %452, %453 : vector<2x32xf32>
    %455 = math.tanh %454 : vector<2x32xf32>
    %456 = arith.mulf %451, %455 : vector<2x32xf32>
    %457 = tpu.concatenate %36, %456 in 1 : vector<2x32xf32>, vector<2x32xf32> -> vector<2x64xf32>
    %458 = tpu.concatenate %92, %400 in 1 : vector<2x32xf32>, vector<2x32xf32> -> vector<2x64xf32>
    %459 = tpu.concatenate %148, %344 in 1 : vector<2x32xf32>, vector<2x32xf32> -> vector<2x64xf32>
    %460 = tpu.concatenate %204, %288 in 1 : vector<2x32xf32>, vector<2x32xf32> -> vector<2x64xf32>
    %461 = tpu.concatenate %260, %232 in 1 : vector<2x32xf32>, vector<2x32xf32> -> vector<2x64xf32>
    %462 = tpu.concatenate %316, %176 in 1 : vector<2x32xf32>, vector<2x32xf32> -> vector<2x64xf32>
    %463 = tpu.concatenate %372, %120 in 1 : vector<2x32xf32>, vector<2x32xf32> -> vector<2x64xf32>
    %464 = tpu.concatenate %428, %64 in 1 : vector<2x32xf32>, vector<2x32xf32> -> vector<2x64xf32>
    %465 = tpu.concatenate %457, %458, %459, %460, %461, %462, %463, %464 in 0 : vector<2x64xf32>, vector<2x64xf32>, vector<2x64xf32>, vector<2x64xf32>, vector<2x64xf32>, vector<2x64xf32>, vector<2x64xf32>, vector<2x64xf32> -> vector<16x64xf32>
    %c0_74 = arith.constant 0 : index
    %c0_75 = arith.constant 0 : index
    %466 = vector.load %arg5[%c0_74, %c0_75] : memref<64x256xf32, #tpu.memory_space<vmem>>, vector<64x256xf32>
    %c0_76 = arith.constant 0 : index
    %c0_77 = arith.constant 0 : index
    %467 = vector.load %arg6[%c0_76, %c0_77] : memref<32x128xf32, #tpu.memory_space<vmem>>, vector<32x128xf32>
    %c0_78 = arith.constant 0 : index
    %c0_79 = arith.constant 0 : index
    %468 = vector.load %arg8[%c0_78, %c0_79] : memref<1x256xf32, #tpu.memory_space<vmem>>, vector<1x256xf32>
    %cst_80 = arith.constant dense<0.000000e+00> : vector<16x256xf32>
    %469 = tpu.matmul %465, %466, %cst_80 {dimension_numbers = #tpu.dot_dimension_numbers<[1], [0], [0], [1], [0, 0, 1, 1], [], []>} : vector<16x64xf32>, vector<64x256xf32>, vector<16x256xf32> -> vector<16x256xf32>
    %470 = vector.broadcast %468 : vector<1x256xf32> to vector<16x256xf32>
    %471 = arith.addf %469, %470 : vector<16x256xf32>
    %472 = vector.extract_strided_slice %471 {offsets = [0, 0], sizes = [2, 128], strides = [1, 1]} : vector<16x256xf32> to vector<2x128xf32>
    %cst_81 = arith.constant dense<0.000000e+00> : vector<2x128xf32>
    %473 = tpu.matmul %1, %467, %cst_81 {dimension_numbers = #tpu.dot_dimension_numbers<[1], [0], [0], [1], [0, 0, 1, 1], [], []>} : vector<2x32xf32>, vector<32x128xf32>, vector<2x128xf32> -> vector<2x128xf32>
    %474 = arith.addf %472, %473 : vector<2x128xf32>
    %475 = vector.extract_strided_slice %474 {offsets = [0, 0], sizes = [2, 32], strides = [1, 1]} : vector<2x128xf32> to vector<2x32xf32>
    %476 = arith.negf %475 : vector<2x32xf32>
    %477 = math.exp %476 : vector<2x32xf32>
    %cst_82 = arith.constant 1.000000e+00 : f32
    %478 = vector.broadcast %cst_82 : f32 to vector<2x32xf32>
    %479 = arith.addf %478, %477 : vector<2x32xf32>
    %480 = arith.divf %478, %479 : vector<2x32xf32>
    %481 = vector.extract_strided_slice %474 {offsets = [0, 32], sizes = [2, 32], strides = [1, 1]} : vector<2x128xf32> to vector<2x32xf32>
    %482 = arith.negf %481 : vector<2x32xf32>
    %483 = math.exp %482 : vector<2x32xf32>
    %cst_83 = arith.constant 1.000000e+00 : f32
    %484 = vector.broadcast %cst_83 : f32 to vector<2x32xf32>
    %485 = arith.addf %484, %483 : vector<2x32xf32>
    %486 = arith.divf %484, %485 : vector<2x32xf32>
    %487 = vector.extract_strided_slice %474 {offsets = [0, 64], sizes = [2, 32], strides = [1, 1]} : vector<2x128xf32> to vector<2x32xf32>
    %488 = math.tanh %487 : vector<2x32xf32>
    %489 = vector.extract_strided_slice %474 {offsets = [0, 96], sizes = [2, 32], strides = [1, 1]} : vector<2x128xf32> to vector<2x32xf32>
    %490 = arith.negf %489 : vector<2x32xf32>
    %491 = math.exp %490 : vector<2x32xf32>
    %cst_84 = arith.constant 1.000000e+00 : f32
    %492 = vector.broadcast %cst_84 : f32 to vector<2x32xf32>
    %493 = arith.addf %492, %491 : vector<2x32xf32>
    %494 = arith.divf %492, %493 : vector<2x32xf32>
    %495 = arith.mulf %486, %1 : vector<2x32xf32>
    %496 = arith.mulf %480, %488 : vector<2x32xf32>
    %497 = arith.addf %495, %496 : vector<2x32xf32>
    %498 = math.tanh %497 : vector<2x32xf32>
    %499 = arith.mulf %494, %498 : vector<2x32xf32>
    %500 = vector.extract_strided_slice %471 {offsets = [2, 0], sizes = [2, 128], strides = [1, 1]} : vector<16x256xf32> to vector<2x128xf32>
    %cst_85 = arith.constant dense<0.000000e+00> : vector<2x128xf32>
    %501 = tpu.matmul %499, %467, %cst_85 {dimension_numbers = #tpu.dot_dimension_numbers<[1], [0], [0], [1], [0, 0, 1, 1], [], []>} : vector<2x32xf32>, vector<32x128xf32>, vector<2x128xf32> -> vector<2x128xf32>
    %502 = arith.addf %500, %501 : vector<2x128xf32>
    %503 = vector.extract_strided_slice %502 {offsets = [0, 0], sizes = [2, 32], strides = [1, 1]} : vector<2x128xf32> to vector<2x32xf32>
    %504 = arith.negf %503 : vector<2x32xf32>
    %505 = math.exp %504 : vector<2x32xf32>
    %cst_86 = arith.constant 1.000000e+00 : f32
    %506 = vector.broadcast %cst_86 : f32 to vector<2x32xf32>
    %507 = arith.addf %506, %505 : vector<2x32xf32>
    %508 = arith.divf %506, %507 : vector<2x32xf32>
    %509 = vector.extract_strided_slice %502 {offsets = [0, 32], sizes = [2, 32], strides = [1, 1]} : vector<2x128xf32> to vector<2x32xf32>
    %510 = arith.negf %509 : vector<2x32xf32>
    %511 = math.exp %510 : vector<2x32xf32>
    %cst_87 = arith.constant 1.000000e+00 : f32
    %512 = vector.broadcast %cst_87 : f32 to vector<2x32xf32>
    %513 = arith.addf %512, %511 : vector<2x32xf32>
    %514 = arith.divf %512, %513 : vector<2x32xf32>
    %515 = vector.extract_strided_slice %502 {offsets = [0, 64], sizes = [2, 32], strides = [1, 1]} : vector<2x128xf32> to vector<2x32xf32>
    %516 = math.tanh %515 : vector<2x32xf32>
    %517 = vector.extract_strided_slice %502 {offsets = [0, 96], sizes = [2, 32], strides = [1, 1]} : vector<2x128xf32> to vector<2x32xf32>
    %518 = arith.negf %517 : vector<2x32xf32>
    %519 = math.exp %518 : vector<2x32xf32>
    %cst_88 = arith.constant 1.000000e+00 : f32
    %520 = vector.broadcast %cst_88 : f32 to vector<2x32xf32>
    %521 = arith.addf %520, %519 : vector<2x32xf32>
    %522 = arith.divf %520, %521 : vector<2x32xf32>
    %523 = arith.mulf %514, %497 : vector<2x32xf32>
    %524 = arith.mulf %508, %516 : vector<2x32xf32>
    %525 = arith.addf %523, %524 : vector<2x32xf32>
    %526 = math.tanh %525 : vector<2x32xf32>
    %527 = arith.mulf %522, %526 : vector<2x32xf32>
    %528 = vector.extract_strided_slice %471 {offsets = [4, 0], sizes = [2, 128], strides = [1, 1]} : vector<16x256xf32> to vector<2x128xf32>
    %cst_89 = arith.constant dense<0.000000e+00> : vector<2x128xf32>
    %529 = tpu.matmul %527, %467, %cst_89 {dimension_numbers = #tpu.dot_dimension_numbers<[1], [0], [0], [1], [0, 0, 1, 1], [], []>} : vector<2x32xf32>, vector<32x128xf32>, vector<2x128xf32> -> vector<2x128xf32>
    %530 = arith.addf %528, %529 : vector<2x128xf32>
    %531 = vector.extract_strided_slice %530 {offsets = [0, 0], sizes = [2, 32], strides = [1, 1]} : vector<2x128xf32> to vector<2x32xf32>
    %532 = arith.negf %531 : vector<2x32xf32>
    %533 = math.exp %532 : vector<2x32xf32>
    %cst_90 = arith.constant 1.000000e+00 : f32
    %534 = vector.broadcast %cst_90 : f32 to vector<2x32xf32>
    %535 = arith.addf %534, %533 : vector<2x32xf32>
    %536 = arith.divf %534, %535 : vector<2x32xf32>
    %537 = vector.extract_strided_slice %530 {offsets = [0, 32], sizes = [2, 32], strides = [1, 1]} : vector<2x128xf32> to vector<2x32xf32>
    %538 = arith.negf %537 : vector<2x32xf32>
    %539 = math.exp %538 : vector<2x32xf32>
    %cst_91 = arith.constant 1.000000e+00 : f32
    %540 = vector.broadcast %cst_91 : f32 to vector<2x32xf32>
    %541 = arith.addf %540, %539 : vector<2x32xf32>
    %542 = arith.divf %540, %541 : vector<2x32xf32>
    %543 = vector.extract_strided_slice %530 {offsets = [0, 64], sizes = [2, 32], strides = [1, 1]} : vector<2x128xf32> to vector<2x32xf32>
    %544 = math.tanh %543 : vector<2x32xf32>
    %545 = vector.extract_strided_slice %530 {offsets = [0, 96], sizes = [2, 32], strides = [1, 1]} : vector<2x128xf32> to vector<2x32xf32>
    %546 = arith.negf %545 : vector<2x32xf32>
    %547 = math.exp %546 : vector<2x32xf32>
    %cst_92 = arith.constant 1.000000e+00 : f32
    %548 = vector.broadcast %cst_92 : f32 to vector<2x32xf32>
    %549 = arith.addf %548, %547 : vector<2x32xf32>
    %550 = arith.divf %548, %549 : vector<2x32xf32>
    %551 = arith.mulf %542, %525 : vector<2x32xf32>
    %552 = arith.mulf %536, %544 : vector<2x32xf32>
    %553 = arith.addf %551, %552 : vector<2x32xf32>
    %554 = math.tanh %553 : vector<2x32xf32>
    %555 = arith.mulf %550, %554 : vector<2x32xf32>
    %556 = vector.extract_strided_slice %471 {offsets = [6, 0], sizes = [2, 128], strides = [1, 1]} : vector<16x256xf32> to vector<2x128xf32>
    %cst_93 = arith.constant dense<0.000000e+00> : vector<2x128xf32>
    %557 = tpu.matmul %555, %467, %cst_93 {dimension_numbers = #tpu.dot_dimension_numbers<[1], [0], [0], [1], [0, 0, 1, 1], [], []>} : vector<2x32xf32>, vector<32x128xf32>, vector<2x128xf32> -> vector<2x128xf32>
    %558 = arith.addf %556, %557 : vector<2x128xf32>
    %559 = vector.extract_strided_slice %558 {offsets = [0, 0], sizes = [2, 32], strides = [1, 1]} : vector<2x128xf32> to vector<2x32xf32>
    %560 = arith.negf %559 : vector<2x32xf32>
    %561 = math.exp %560 : vector<2x32xf32>
    %cst_94 = arith.constant 1.000000e+00 : f32
    %562 = vector.broadcast %cst_94 : f32 to vector<2x32xf32>
    %563 = arith.addf %562, %561 : vector<2x32xf32>
    %564 = arith.divf %562, %563 : vector<2x32xf32>
    %565 = vector.extract_strided_slice %558 {offsets = [0, 32], sizes = [2, 32], strides = [1, 1]} : vector<2x128xf32> to vector<2x32xf32>
    %566 = arith.negf %565 : vector<2x32xf32>
    %567 = math.exp %566 : vector<2x32xf32>
    %cst_95 = arith.constant 1.000000e+00 : f32
    %568 = vector.broadcast %cst_95 : f32 to vector<2x32xf32>
    %569 = arith.addf %568, %567 : vector<2x32xf32>
    %570 = arith.divf %568, %569 : vector<2x32xf32>
    %571 = vector.extract_strided_slice %558 {offsets = [0, 64], sizes = [2, 32], strides = [1, 1]} : vector<2x128xf32> to vector<2x32xf32>
    %572 = math.tanh %571 : vector<2x32xf32>
    %573 = vector.extract_strided_slice %558 {offsets = [0, 96], sizes = [2, 32], strides = [1, 1]} : vector<2x128xf32> to vector<2x32xf32>
    %574 = arith.negf %573 : vector<2x32xf32>
    %575 = math.exp %574 : vector<2x32xf32>
    %cst_96 = arith.constant 1.000000e+00 : f32
    %576 = vector.broadcast %cst_96 : f32 to vector<2x32xf32>
    %577 = arith.addf %576, %575 : vector<2x32xf32>
    %578 = arith.divf %576, %577 : vector<2x32xf32>
    %579 = arith.mulf %570, %553 : vector<2x32xf32>
    %580 = arith.mulf %564, %572 : vector<2x32xf32>
    %581 = arith.addf %579, %580 : vector<2x32xf32>
    %582 = math.tanh %581 : vector<2x32xf32>
    %583 = arith.mulf %578, %582 : vector<2x32xf32>
    %584 = vector.extract_strided_slice %471 {offsets = [8, 0], sizes = [2, 128], strides = [1, 1]} : vector<16x256xf32> to vector<2x128xf32>
    %cst_97 = arith.constant dense<0.000000e+00> : vector<2x128xf32>
    %585 = tpu.matmul %583, %467, %cst_97 {dimension_numbers = #tpu.dot_dimension_numbers<[1], [0], [0], [1], [0, 0, 1, 1], [], []>} : vector<2x32xf32>, vector<32x128xf32>, vector<2x128xf32> -> vector<2x128xf32>
    %586 = arith.addf %584, %585 : vector<2x128xf32>
    %587 = vector.extract_strided_slice %586 {offsets = [0, 0], sizes = [2, 32], strides = [1, 1]} : vector<2x128xf32> to vector<2x32xf32>
    %588 = arith.negf %587 : vector<2x32xf32>
    %589 = math.exp %588 : vector<2x32xf32>
    %cst_98 = arith.constant 1.000000e+00 : f32
    %590 = vector.broadcast %cst_98 : f32 to vector<2x32xf32>
    %591 = arith.addf %590, %589 : vector<2x32xf32>
    %592 = arith.divf %590, %591 : vector<2x32xf32>
    %593 = vector.extract_strided_slice %586 {offsets = [0, 32], sizes = [2, 32], strides = [1, 1]} : vector<2x128xf32> to vector<2x32xf32>
    %594 = arith.negf %593 : vector<2x32xf32>
    %595 = math.exp %594 : vector<2x32xf32>
    %cst_99 = arith.constant 1.000000e+00 : f32
    %596 = vector.broadcast %cst_99 : f32 to vector<2x32xf32>
    %597 = arith.addf %596, %595 : vector<2x32xf32>
    %598 = arith.divf %596, %597 : vector<2x32xf32>
    %599 = vector.extract_strided_slice %586 {offsets = [0, 64], sizes = [2, 32], strides = [1, 1]} : vector<2x128xf32> to vector<2x32xf32>
    %600 = math.tanh %599 : vector<2x32xf32>
    %601 = vector.extract_strided_slice %586 {offsets = [0, 96], sizes = [2, 32], strides = [1, 1]} : vector<2x128xf32> to vector<2x32xf32>
    %602 = arith.negf %601 : vector<2x32xf32>
    %603 = math.exp %602 : vector<2x32xf32>
    %cst_100 = arith.constant 1.000000e+00 : f32
    %604 = vector.broadcast %cst_100 : f32 to vector<2x32xf32>
    %605 = arith.addf %604, %603 : vector<2x32xf32>
    %606 = arith.divf %604, %605 : vector<2x32xf32>
    %607 = arith.mulf %598, %581 : vector<2x32xf32>
    %608 = arith.mulf %592, %600 : vector<2x32xf32>
    %609 = arith.addf %607, %608 : vector<2x32xf32>
    %610 = math.tanh %609 : vector<2x32xf32>
    %611 = arith.mulf %606, %610 : vector<2x32xf32>
    %612 = vector.extract_strided_slice %471 {offsets = [10, 0], sizes = [2, 128], strides = [1, 1]} : vector<16x256xf32> to vector<2x128xf32>
    %cst_101 = arith.constant dense<0.000000e+00> : vector<2x128xf32>
    %613 = tpu.matmul %611, %467, %cst_101 {dimension_numbers = #tpu.dot_dimension_numbers<[1], [0], [0], [1], [0, 0, 1, 1], [], []>} : vector<2x32xf32>, vector<32x128xf32>, vector<2x128xf32> -> vector<2x128xf32>
    %614 = arith.addf %612, %613 : vector<2x128xf32>
    %615 = vector.extract_strided_slice %614 {offsets = [0, 0], sizes = [2, 32], strides = [1, 1]} : vector<2x128xf32> to vector<2x32xf32>
    %616 = arith.negf %615 : vector<2x32xf32>
    %617 = math.exp %616 : vector<2x32xf32>
    %cst_102 = arith.constant 1.000000e+00 : f32
    %618 = vector.broadcast %cst_102 : f32 to vector<2x32xf32>
    %619 = arith.addf %618, %617 : vector<2x32xf32>
    %620 = arith.divf %618, %619 : vector<2x32xf32>
    %621 = vector.extract_strided_slice %614 {offsets = [0, 32], sizes = [2, 32], strides = [1, 1]} : vector<2x128xf32> to vector<2x32xf32>
    %622 = arith.negf %621 : vector<2x32xf32>
    %623 = math.exp %622 : vector<2x32xf32>
    %cst_103 = arith.constant 1.000000e+00 : f32
    %624 = vector.broadcast %cst_103 : f32 to vector<2x32xf32>
    %625 = arith.addf %624, %623 : vector<2x32xf32>
    %626 = arith.divf %624, %625 : vector<2x32xf32>
    %627 = vector.extract_strided_slice %614 {offsets = [0, 64], sizes = [2, 32], strides = [1, 1]} : vector<2x128xf32> to vector<2x32xf32>
    %628 = math.tanh %627 : vector<2x32xf32>
    %629 = vector.extract_strided_slice %614 {offsets = [0, 96], sizes = [2, 32], strides = [1, 1]} : vector<2x128xf32> to vector<2x32xf32>
    %630 = arith.negf %629 : vector<2x32xf32>
    %631 = math.exp %630 : vector<2x32xf32>
    %cst_104 = arith.constant 1.000000e+00 : f32
    %632 = vector.broadcast %cst_104 : f32 to vector<2x32xf32>
    %633 = arith.addf %632, %631 : vector<2x32xf32>
    %634 = arith.divf %632, %633 : vector<2x32xf32>
    %635 = arith.mulf %626, %609 : vector<2x32xf32>
    %636 = arith.mulf %620, %628 : vector<2x32xf32>
    %637 = arith.addf %635, %636 : vector<2x32xf32>
    %638 = math.tanh %637 : vector<2x32xf32>
    %639 = arith.mulf %634, %638 : vector<2x32xf32>
    %640 = vector.extract_strided_slice %471 {offsets = [12, 0], sizes = [2, 128], strides = [1, 1]} : vector<16x256xf32> to vector<2x128xf32>
    %cst_105 = arith.constant dense<0.000000e+00> : vector<2x128xf32>
    %641 = tpu.matmul %639, %467, %cst_105 {dimension_numbers = #tpu.dot_dimension_numbers<[1], [0], [0], [1], [0, 0, 1, 1], [], []>} : vector<2x32xf32>, vector<32x128xf32>, vector<2x128xf32> -> vector<2x128xf32>
    %642 = arith.addf %640, %641 : vector<2x128xf32>
    %643 = vector.extract_strided_slice %642 {offsets = [0, 0], sizes = [2, 32], strides = [1, 1]} : vector<2x128xf32> to vector<2x32xf32>
    %644 = arith.negf %643 : vector<2x32xf32>
    %645 = math.exp %644 : vector<2x32xf32>
    %cst_106 = arith.constant 1.000000e+00 : f32
    %646 = vector.broadcast %cst_106 : f32 to vector<2x32xf32>
    %647 = arith.addf %646, %645 : vector<2x32xf32>
    %648 = arith.divf %646, %647 : vector<2x32xf32>
    %649 = vector.extract_strided_slice %642 {offsets = [0, 32], sizes = [2, 32], strides = [1, 1]} : vector<2x128xf32> to vector<2x32xf32>
    %650 = arith.negf %649 : vector<2x32xf32>
    %651 = math.exp %650 : vector<2x32xf32>
    %cst_107 = arith.constant 1.000000e+00 : f32
    %652 = vector.broadcast %cst_107 : f32 to vector<2x32xf32>
    %653 = arith.addf %652, %651 : vector<2x32xf32>
    %654 = arith.divf %652, %653 : vector<2x32xf32>
    %655 = vector.extract_strided_slice %642 {offsets = [0, 64], sizes = [2, 32], strides = [1, 1]} : vector<2x128xf32> to vector<2x32xf32>
    %656 = math.tanh %655 : vector<2x32xf32>
    %657 = vector.extract_strided_slice %642 {offsets = [0, 96], sizes = [2, 32], strides = [1, 1]} : vector<2x128xf32> to vector<2x32xf32>
    %658 = arith.negf %657 : vector<2x32xf32>
    %659 = math.exp %658 : vector<2x32xf32>
    %cst_108 = arith.constant 1.000000e+00 : f32
    %660 = vector.broadcast %cst_108 : f32 to vector<2x32xf32>
    %661 = arith.addf %660, %659 : vector<2x32xf32>
    %662 = arith.divf %660, %661 : vector<2x32xf32>
    %663 = arith.mulf %654, %637 : vector<2x32xf32>
    %664 = arith.mulf %648, %656 : vector<2x32xf32>
    %665 = arith.addf %663, %664 : vector<2x32xf32>
    %666 = math.tanh %665 : vector<2x32xf32>
    %667 = arith.mulf %662, %666 : vector<2x32xf32>
    %668 = vector.extract_strided_slice %471 {offsets = [14, 0], sizes = [2, 128], strides = [1, 1]} : vector<16x256xf32> to vector<2x128xf32>
    %cst_109 = arith.constant dense<0.000000e+00> : vector<2x128xf32>
    %669 = tpu.matmul %667, %467, %cst_109 {dimension_numbers = #tpu.dot_dimension_numbers<[1], [0], [0], [1], [0, 0, 1, 1], [], []>} : vector<2x32xf32>, vector<32x128xf32>, vector<2x128xf32> -> vector<2x128xf32>
    %670 = arith.addf %668, %669 : vector<2x128xf32>
    %671 = vector.extract_strided_slice %670 {offsets = [0, 0], sizes = [2, 32], strides = [1, 1]} : vector<2x128xf32> to vector<2x32xf32>
    %672 = arith.negf %671 : vector<2x32xf32>
    %673 = math.exp %672 : vector<2x32xf32>
    %cst_110 = arith.constant 1.000000e+00 : f32
    %674 = vector.broadcast %cst_110 : f32 to vector<2x32xf32>
    %675 = arith.addf %674, %673 : vector<2x32xf32>
    %676 = arith.divf %674, %675 : vector<2x32xf32>
    %677 = vector.extract_strided_slice %670 {offsets = [0, 32], sizes = [2, 32], strides = [1, 1]} : vector<2x128xf32> to vector<2x32xf32>
    %678 = arith.negf %677 : vector<2x32xf32>
    %679 = math.exp %678 : vector<2x32xf32>
    %cst_111 = arith.constant 1.000000e+00 : f32
    %680 = vector.broadcast %cst_111 : f32 to vector<2x32xf32>
    %681 = arith.addf %680, %679 : vector<2x32xf32>
    %682 = arith.divf %680, %681 : vector<2x32xf32>
    %683 = vector.extract_strided_slice %670 {offsets = [0, 64], sizes = [2, 32], strides = [1, 1]} : vector<2x128xf32> to vector<2x32xf32>
    %684 = math.tanh %683 : vector<2x32xf32>
    %685 = vector.extract_strided_slice %670 {offsets = [0, 96], sizes = [2, 32], strides = [1, 1]} : vector<2x128xf32> to vector<2x32xf32>
    %686 = arith.negf %685 : vector<2x32xf32>
    %687 = math.exp %686 : vector<2x32xf32>
    %cst_112 = arith.constant 1.000000e+00 : f32
    %688 = vector.broadcast %cst_112 : f32 to vector<2x32xf32>
    %689 = arith.addf %688, %687 : vector<2x32xf32>
    %690 = arith.divf %688, %689 : vector<2x32xf32>
    %691 = arith.mulf %682, %665 : vector<2x32xf32>
    %692 = arith.mulf %676, %684 : vector<2x32xf32>
    %693 = arith.addf %691, %692 : vector<2x32xf32>
    %694 = math.tanh %693 : vector<2x32xf32>
    %695 = arith.mulf %690, %694 : vector<2x32xf32>
    %696 = vector.extract_strided_slice %471 {offsets = [14, 128], sizes = [2, 128], strides = [1, 1]} : vector<16x256xf32> to vector<2x128xf32>
    %697 = vector.extract_strided_slice %696 {offsets = [0, 0], sizes = [2, 32], strides = [1, 1]} : vector<2x128xf32> to vector<2x32xf32>
    %698 = arith.negf %697 : vector<2x32xf32>
    %699 = math.exp %698 : vector<2x32xf32>
    %cst_113 = arith.constant 1.000000e+00 : f32
    %700 = vector.broadcast %cst_113 : f32 to vector<2x32xf32>
    %701 = arith.addf %700, %699 : vector<2x32xf32>
    %702 = arith.divf %700, %701 : vector<2x32xf32>
    %703 = vector.extract_strided_slice %696 {offsets = [0, 32], sizes = [2, 32], strides = [1, 1]} : vector<2x128xf32> to vector<2x32xf32>
    %704 = arith.negf %703 : vector<2x32xf32>
    %705 = math.exp %704 : vector<2x32xf32>
    %cst_114 = arith.constant 1.000000e+00 : f32
    %706 = vector.broadcast %cst_114 : f32 to vector<2x32xf32>
    %707 = arith.addf %706, %705 : vector<2x32xf32>
    %708 = arith.divf %706, %707 : vector<2x32xf32>
    %709 = vector.extract_strided_slice %696 {offsets = [0, 64], sizes = [2, 32], strides = [1, 1]} : vector<2x128xf32> to vector<2x32xf32>
    %710 = math.tanh %709 : vector<2x32xf32>
    %711 = vector.extract_strided_slice %696 {offsets = [0, 96], sizes = [2, 32], strides = [1, 1]} : vector<2x128xf32> to vector<2x32xf32>
    %712 = arith.negf %711 : vector<2x32xf32>
    %713 = math.exp %712 : vector<2x32xf32>
    %cst_115 = arith.constant 1.000000e+00 : f32
    %714 = vector.broadcast %cst_115 : f32 to vector<2x32xf32>
    %715 = arith.addf %714, %713 : vector<2x32xf32>
    %716 = arith.divf %714, %715 : vector<2x32xf32>
    %717 = arith.mulf %708, %1 : vector<2x32xf32>
    %718 = arith.mulf %702, %710 : vector<2x32xf32>
    %719 = arith.addf %717, %718 : vector<2x32xf32>
    %720 = math.tanh %719 : vector<2x32xf32>
    %721 = arith.mulf %716, %720 : vector<2x32xf32>
    %722 = tpu.concatenate %695, %721 in 1 : vector<2x32xf32>, vector<2x32xf32> -> vector<2x64xf32>
    %c0_116 = arith.constant 0 : index
    %c0_117 = arith.constant 0 : index
    %723 = vector.load %arg9[%c0_116, %c0_117] : memref<64x32xf32, #tpu.memory_space<vmem>>, vector<64x32xf32>
    %cst_118 = arith.constant dense<0.000000e+00> : vector<2x32xf32>
    %724 = tpu.matmul %722, %723, %cst_118 {dimension_numbers = #tpu.dot_dimension_numbers<[1], [0], [0], [1], [0, 0, 1, 1], [], []>} : vector<2x64xf32>, vector<64x32xf32>, vector<2x32xf32> -> vector<2x32xf32>
    %c0_119 = arith.constant 0 : index
    %c0_120 = arith.constant 0 : index
    %725 = vector.load %arg10[%c0_119, %c0_120] : memref<1x32xf32, #tpu.memory_space<vmem>>, vector<1x32xf32>
    %726 = vector.broadcast %725 : vector<1x32xf32> to vector<2x32xf32>
    %727 = arith.addf %724, %726 : vector<2x32xf32>
    %cst_121 = arith.constant 0.000000e+00 : f32
    %728 = vector.broadcast %cst_121 : f32 to vector<2x32xf32>
    %729 = arith.cmpf ogt, %727, %728 : vector<2x32xf32>
    %730 = math.exp %727 : vector<2x32xf32>
    %cst_122 = arith.constant 1.000000e+00 : f32
    %731 = vector.broadcast %cst_122 : f32 to vector<2x32xf32>
    %732 = arith.subf %730, %731 : vector<2x32xf32>
    %cst_123 = arith.constant 1.67326319 : f32
    %733 = vector.broadcast %cst_123 : f32 to vector<2x32xf32>
    %734 = arith.mulf %733, %732 : vector<2x32xf32>
    %735 = arith.select %729, %727, %734 : vector<2x32xi1>, vector<2x32xf32>
    %cst_124 = arith.constant 1.05070102 : f32
    %736 = vector.broadcast %cst_124 : f32 to vector<2x32xf32>
    %737 = arith.mulf %736, %735 : vector<2x32xf32>
    %c0_125 = arith.constant 0 : index
    %c0_126 = arith.constant 0 : index
    %738 = vector.load %arg11[%c0_125, %c0_126] : memref<32x4xf32, #tpu.memory_space<vmem>>, vector<32x4xf32>
    %cst_127 = arith.constant dense<0.000000e+00> : vector<2x4xf32>
    %739 = tpu.matmul %737, %738, %cst_127 {dimension_numbers = #tpu.dot_dimension_numbers<[1], [0], [0], [1], [0, 0, 1, 1], [], []>} : vector<2x32xf32>, vector<32x4xf32>, vector<2x4xf32> -> vector<2x4xf32>
    %c0_128 = arith.constant 0 : index
    %c0_129 = arith.constant 0 : index
    %740 = vector.load %arg12[%c0_128, %c0_129] : memref<1x4xf32, #tpu.memory_space<vmem>>, vector<1x4xf32>
    %741 = vector.broadcast %740 : vector<1x4xf32> to vector<2x4xf32>
    %742 = arith.addf %739, %741 : vector<2x4xf32>
    %cst_130 = arith.constant dense<0xFF800000> : vector<2xf32>
    %743 = vector.multi_reduction <maximumf>, %742, %cst_130 [1] : vector<2x4xf32> to vector<2xf32>
    %744 = vector.shape_cast %743 : vector<2xf32> to vector<2x1xf32>
    %745 = vector.broadcast %744 : vector<2x1xf32> to vector<2x4xf32>
    %746 = arith.subf %742, %745 : vector<2x4xf32>
    %747 = math.exp %746 : vector<2x4xf32>
    %cst_131 = arith.constant dense<0.000000e+00> : vector<2xf32>
    %748 = vector.multi_reduction <add>, %747, %cst_131 [1] : vector<2x4xf32> to vector<2xf32>
    %749 = vector.shape_cast %748 : vector<2xf32> to vector<2x1xf32>
    %750 = tpu.reciprocal %749 {approx = true} : vector<2x1xf32> -> vector<2x1xf32>
    %751 = vector.broadcast %750 : vector<2x1xf32> to vector<2x4xf32>
    %752 = arith.mulf %747, %751 : vector<2x4xf32>
    %c0_132 = arith.constant 0 : index
    %c0_133 = arith.constant 0 : index
    %753 = vector.load %arg13[%c0_132, %c0_133] : memref<2x4xf32, #tpu.memory_space<vmem>>, vector<2x4xf32>
    tpu.vector_store %arg13[%c0_132, %c0_133], %752 {strides = array<i32>} : memref<2x4xf32, #tpu.memory_space<vmem>>, vector<2x4xf32>,
    return
  }
}

</mosaic_0001>

<bundles_post_ra>
// kernel: model_forward.1
= control target key start
LH: loop header
LB: loop body
LE: loop exit
PB: predicated region body
PF: predicated region fallthrough
CT: control target
= control target key end

     0   :  { %s3053_s0 = inlined_call_operand.vmem [shape: f32[16,32], index: 0, kind: input, shape index: {}]   ;;  %s3054_s1 = inlined_call_operand.vmem [shape: f32[32,256], index: 1, kind: input, shape index: {}]   ;;  %s3055_s2 = inlined_call_operand.vmem [shape: f32[32,128], index: 2, kind: input, shape index: {}]   ;;  %s3056_s3 = inlined_call_operand.vmem [shape: f32[32,128], index: 3, kind: input, shape index: {}]   ;;  %s3057_s4 = inlined_call_operand.vmem [shape: f32[1,256], index: 4, kind: input, shape index: {}]   ;;  %s3058_s5 = inlined_call_operand.vmem [shape: f32[64,256], index: 5, kind: input, shape index: {}]   ;;  %s3059_s6 = inlined_call_operand.vmem [shape: f32[32,128], index: 6, kind: input, shape index: {}]   ;;  %s3060_s7 = inlined_call_operand.vmem [shape: f32[32,128], index: 7, kind: input, shape index: {}]   ;;  %s3061_s8 = inlined_call_operand.vmem [shape: f32[1,256], index: 8, kind: input, shape index: {}]   ;;  %s3062_s9 = inlined_call_operand.vmem [shape: f32[64,32], index: 9, kind: input, shape index: {}]   ;;  %s3063_s10 = inlined_call_operand.vmem [shape: f32[1,32], index: 10, kind: input, shape index: {}]   ;;  %s3064_s11 = inlined_call_operand.vmem [shape: f32[32,4], index: 11, kind: input, shape index: {}]   ;;  %s3065_s12 = inlined_call_operand.vmem [shape: f32[1,4], index: 12, kind: input, shape index: {}]   ;;  %s3066_s13 = inlined_call_operand.hbm [shape: f32[2,4], index: 13, kind: output, shape index: {}]  }
   0x1   :  { %v54_v0 = vld [vmem:[%s3054_s1 + $0x38] sm:$0xff]  ;;  %v52_v1 = vld [vmem:[%s3054_s1 + $0x28] sm:$0xff]  ;;  %v2429_v3 = vld [vmem:[%s3056_s3 + $0x10] sm:$0xff] }
   0x2   :  { %v2423_v2 = vld [vmem:[%s3056_s3 + $0x18] sm:$0xff]  ;;  %111 = vmatpush.msra.mxu1 %v54_v0  ;;  %v2437_v5 = vld [vmem:[%s3056_s3 + $0x8] sm:$0xff]  ;;  %v2446_v7 = vld [vmem:[%s3056_s3] sm:$0xff] }
   0x3   :  { %195 = vmatpush.msra.mxu3 %v2423_v2  ;;  %v50_v4 = vld [vmem:[%s3054_s1 + $0x18] sm:$0xff]  ;;  %v48_v6 = vld [vmem:[%s3054_s1 + $0x8] sm:$0xff] }
   0x4   :  { %112 = vmatpush.msra.mxu1 %v52_v1 }
   0x5   :  { %196 = vmatpush.msra.mxu3 %v2429_v3 }
   0x6   :  { %18 = vsyncpa [#allocation3], 0  ;;  %113 = vmatpush.msra.mxu1 %v50_v4  ;;  %v2452_v8 = vld [vmem:[%s3053_s0] sm:$0xff]  ;;  %vm69_vm0 = vcmask 261120   ;;  %v2340_v9 = vmov 0.0   ;;  %v2465_v10 = vld [vmem:[%s3053_s0 + $0x8] sm:$0xff] }
   0x7   :  { %197 = vmatpush.msra.mxu3 %v2437_v5  ;;  %v2484_v11 = vld [vmem:[%s3057_s4] sm:$0x3]  ;;  %s2341_s26 = smov 64   ;;  %s2342_s4 = smov 32   ;;  %v2497_v36 = vld [vmem:[%s3055_s2 + $0x18] sm:$0xff]  ;;  %v2502_v37 = vld [vmem:[%s3055_s2 + $0x10] sm:$0xff] }
   0x8   :  { %114 = vmatpush.msra.mxu1 %v48_v6  ;;  %v66_v12 = vperm.slane %v2484_v11, 1  ;;  %v53_v38 = vld [vmem:[%s3054_s1 + $0x30] sm:$0xff]  ;;  %137 = vmatpush.msra.mxu2 %v2497_v36  ;;  %v51_v39 = vld [vmem:[%s3054_s1 + $0x20] sm:$0xff]  ;;  %v2514_v40 = vld [vmem:[%s3055_s2 + $0x8] sm:$0xff]  ;;  %v65_v48 = vperm.slane %v2484_v11, 0  ;;  %s2036_s3 = sshll.u32 %s3066_s13, 4  ;;  %s2037_s3 = int_to_ptr.hbm [resolvable:$true] %s2036_s3 }
   0x9   :  { %198 = vmatpush.msra.mxu3 %v2446_v7  ;;  %2047 = vmatmul.msk.f32.vlgmr.msra.gmra.mxu1 %vm69_vm0, %v2452_v8  ;;  %v49_v41 = vld [vmem:[%s3054_s1 + $0x10] sm:$0xff]  ;;  %v2523_v42 = vld [vmem:[%s3055_s2] sm:$0xff] }
   0xa   :  { %199 = vmatmul.f32.vlgmr.msra.gmra.mxu3 %v2340_v9  ;;  %471 = vmatpush.msrb.mxu1 %v2423_v2  ;;  %v47_v43 = vld [vmem:[%s3054_s1] sm:$0xff] }
   0xb   :  { %331 = vmatpush.msrb.mxu3 %v2423_v2  ;;  %88 = vmatpush.msra.mxu0 %v53_v38 }
   0xc   :  { %472 = vmatpush.msrb.mxu1 %v2429_v3  ;;  %138 = vmatpush.msra.mxu2 %v2502_v37 }
   0xd   :  { %332 = vmatpush.msrb.mxu3 %v2429_v3  ;;  %89 = vmatpush.msra.mxu0 %v51_v39 }
   0xe   :  { %473 = vmatpush.msrb.mxu1 %v2437_v5  ;;  %139 = vmatpush.msra.mxu2 %v2514_v40 }
   0xf   :  { %333 = vmatpush.msrb.mxu3 %v2437_v5  ;;  %90 = vmatpush.msra.mxu0 %v49_v41 }
  0x10   :  { %474 = vmatpush.msrb.mxu1 %v2446_v7  ;;  %140 = vmatpush.msra.mxu2 %v2523_v42 }
  0x11   :  { %334 = vmatpush.msrb.mxu3 %v2446_v7  ;;  %2048 = vmatmul.msk.f32.gmra.mxu1 %vm69_vm0, %v2465_v10 }
  0x12   :  { %744 = vmatpush.msra.mxu1 %v2423_v2  ;;  %91 = vmatpush.msra.mxu0 %v47_v43 }
  0x13   :  { %611 = vmatpush.msra.mxu3 %v2423_v2  ;;  %141 = vmatmul.f32.vlgmr.msra.gmra.mxu2 %v2340_v9 }
  0x14   :  { %745 = vmatpush.msra.mxu1 %v2429_v3  ;;  %2045 = vmatmul.msk.f32.vlgmr.msra.gmra.mxu0 %vm69_vm0, %v2452_v8 }
  0x15   :  { %612 = vmatpush.msra.mxu3 %v2429_v3  ;;  %261 = vmatpush.msrb.mxu2 %v2497_v36 }
  0x16   :  { %746 = vmatpush.msra.mxu1 %v2437_v5  ;;  %401 = vmatpush.msrb.mxu0 %v2497_v36 }
  0x17   :  { %613 = vmatpush.msra.mxu3 %v2437_v5  ;;  %262 = vmatpush.msrb.mxu2 %v2502_v37 }
  0x18   :  { %747 = vmatpush.msra.mxu1 %v2446_v7  ;;  %402 = vmatpush.msrb.mxu0 %v2502_v37 }
  0x19   :  { %614 = vmatpush.msra.mxu3 %v2446_v7  ;;  %263 = vmatpush.msrb.mxu2 %v2514_v40 }
  0x1a   :  { %403 = vmatpush.msrb.mxu0 %v2514_v40 }
  0x1b   :  { %264 = vmatpush.msrb.mxu2 %v2523_v42 }
  0x1c   :  { %404 = vmatpush.msrb.mxu0 %v2523_v42 }
  0x1d   :  { %2046 = vmatmul.msk.f32.gmra.mxu0 %vm69_vm0, %v2465_v10  ;;  %541 = vmatpush.msra.mxu2 %v2497_v36 }
  0x1e   :  { %678 = vmatpush.msra.mxu0 %v2497_v36 }
  0x1f   :  { %542 = vmatpush.msra.mxu2 %v2502_v37 }
  0x20   :  { %679 = vmatpush.msra.mxu0 %v2502_v37 }
  0x21   :  { %543 = vmatpush.msra.mxu2 %v2514_v40 }
  0x22   :  { %680 = vmatpush.msra.mxu0 %v2514_v40 }
  0x23   :  { %544 = vmatpush.msra.mxu2 %v2523_v42 }
  0x24   :  { %681 = vmatpush.msra.mxu0 %v2523_v42 }
  0x86   :  { %v116_v13 = vpop.f32.mrf.mxu1 }
  0x87   :  { %v2487_v14 = vadd.f32 %v116_v13, %v66_v12 }
  0x8d   :  { %v200_v15 = vpop.f32.mrf.mxu3 }
  0x8e   :  { %v204_v16 = vrot.slane %v200_v15, 2  ;;  %v119_v17 = vpop.f32.mrf.mxu1 }
  0x8f   :  { %v2489_v18 = vadd.f32 %v119_v17, %v66_v12 }
  0x91   :  { %v206_v19 = vadd.f32 %v204_v16, %v2489_v18  ;;  %v93_v49 = vpop.f32.mrf.mxu0 }
  0x92   :  { %v2558_v50 = vadd.f32 %v93_v49, %v65_v48 }
  0x93   :  { %2108 = vtanh.f32 %v206_v19  ;;  %v2050_v21 = vmul.f32 -1.442695, %v206_v19 }
  0x95   :  { %2110 = vpow2.f32 %v2050_v21 }
  0x96   :  { %v142_v51 = vpop.f32.mrf.mxu2 }
  0x97   :  { %v145_v52 = vadd.f32 %v142_v51, %v2558_v50 }
  0x99   :  { %v2109_v20 = vpop.eup %2108  ;;  %v2049_v57 = vmul.f32 -1.442695, %v145_v52 }
  0x9a   :  { %229 = vrot.lane.b32.xlu0 %v2109_v20, %s2341_s26 }
  0x9b   :  { %v2111_v22 = vpop.eup %2110 }
  0x9c   :  { %v210_v23 = vadd.f32 1.0, %v2111_v22 }
  0x9e   :  { %2112 = vrcp.f32 %v210_v23  ;;  %v222_v29 = vand.u32 2147483648, %v210_v23  ;;  %vm216_vm2 = vweird.f32 %v210_v23  ;;  %v220_v30 = vand.u32 2147483647, %v210_v23 }
  0xa0   :  { %v223_v32 = vor.u32 1.1754944e-38, %v222_v29  ;;  %vm221_vm4 = vcmp.eq.f32.partialorder %v220_v30, 8.507059e+37 }
  0xa4   :  { %v2113_v24 = vpop.eup %2112 }
  0xa5   :  { %v212_v25 = vmul.f32 %v2113_v24, %v210_v23  ;;  %vm217_vm1 = vweird.f32 %v2113_v24 }
  0xa6   :  { %vm218_vm3 = vmor %vm216_vm2, %vm217_vm1 }
  0xa7   :  { %v213_v26 = vsub.f32 1.0, %v212_v25 }
  0xa9   :  { %v214_v27 = vmul.f32 %v2113_v24, %v213_v26 }
  0xab   :  { %v215_v28 = vadd.f32 %v2113_v24, %v214_v27 }
  0xad   :  { %v219_v31 = vsel %vm218_vm3, %v2113_v24, %v215_v28 }
  0xae   :  { %v224_v34 = vsel %vm221_vm4, %v223_v32, %v219_v31 }
  0xaf   :  { %v227_v44 = vmul.f32 0.0, %v224_v34 }
 0x10c   :  { %v230_v33 = vpop.permute.xlu0 %229 }
 0x10d   :  { %v232_v35 = vmul.f32 %v230_v33, %v224_v34 }
 0x10f   :  { %234 = vrot.lane.b32.xlu0 %v232_v35, %s2342_s4 }
 0x181   :  { %v235_v45 = vpop.permute.xlu0 %234 }
 0x182   :  { %v2550_v46 = vadd.f32 %v235_v45, %v227_v44 }
 0x184   :  { %2114 = vtanh.f32 %v2550_v46 }
 0x185   :  { %2116 = vtanh.f32 %v145_v52 }
 0x186   :  { %2118 = vpow2.f32 %v2049_v57 }
 0x18a   :  { %v2115_v47 = vpop.eup %2114 }
 0x18b   :  { %240 = vrot.lane.b32.xlu1 %v2115_v47, %s2341_s26  ;;  %v2117_v55 = vpop.eup %2116  ;;  %v364_v47 = vrot.slane %v2550_v46, 2 }
 0x18c   :  { %168 = vrot.lane.b32.xlu2 %v2117_v55, %s2341_s26  ;;  %v2119_v58 = vpop.eup %2118 }
 0x18d   :  { %v149_v59 = vadd.f32 1.0, %v2119_v58 }
 0x18f   :  { %2120 = vrcp.f32 %v149_v59  ;;  %v161_v62 = vand.u32 2147483648, %v149_v59  ;;  %vm155_vm5 = vweird.f32 %v149_v59  ;;  %v159_v0 = vand.u32 2147483647, %v149_v59 }
 0x191   :  { %v162_v4 = vor.u32 1.1754944e-38, %v161_v62  ;;  %vm160_vm8 = vcmp.eq.f32.partialorder %v159_v0, 8.507059e+37 }
 0x195   :  { %v2121_v60 = vpop.eup %2120 }
 0x196   :  { %v151_v61 = vmul.f32 %v2121_v60, %v149_v59  ;;  %vm156_vm6 = vweird.f32 %v2121_v60 }
 0x197   :  { %vm157_vm7 = vmor %vm155_vm5, %vm156_vm6 }
 0x198   :  { %v152_v63 = vsub.f32 1.0, %v151_v61 }
 0x19a   :  { %v153_v1 = vmul.f32 %v2121_v60, %v152_v63 }
 0x19c   :  { %v154_v6 = vadd.f32 %v2121_v60, %v153_v1 }
 0x19e   :  { %v158_v10 = vsel %vm157_vm7, %v2121_v60, %v154_v6 }
 0x19f   :  { %v163_v12 = vsel %vm160_vm8, %v162_v4, %v158_v10 }
 0x1a0   :  { %v166_v20 = vmul.f32 0.0, %v163_v12 }
 0x1e6   :  { %v169_v8 = vpop.permute.xlu2 %168 }
 0x1e7   :  { %v171_v13 = vmul.f32 %v169_v8, %v163_v12 }
 0x1e9   :  { %173 = vrot.lane.b32.xlu0 %v171_v13, %s2342_s4 }
 0x1fd   :  { %v241_v53 = vpop.permute.xlu1 %240 }
 0x1fe   :  { %v2561_v54 = vmul.f32 %v241_v53, %v224_v34 }
 0x200   :  { %v314_v56 = vrot.slane %v2561_v54, 6 }
 0x202   :  { %315 = vrot.lane.b32.xlu1 %v314_v56, %s2342_s4 }
 0x25b   :  { %v174_v21 = vpop.permute.xlu0 %173 }
 0x25c   :  { %v2573_v22 = vadd.f32 %v174_v21, %v166_v20 }
 0x274   :  { %v316_v15 = vpop.permute.xlu1 %315 }
 0x275   :  { %2053 = vmatmul.msk.f32.vlgmr.msrb.gmra.mxu3 %vm69_vm0, %v316_v15 }
 0x276   :  { %883 = vmatpush.msrb.mxu3 %v2423_v2 }
 0x278   :  { %884 = vmatpush.msrb.mxu3 %v2429_v3 }
 0x27a   :  { %885 = vmatpush.msrb.mxu3 %v2437_v5 }
 0x27c   :  { %886 = vmatpush.msrb.mxu3 %v2446_v7 }
 0x2f8   :  { %v336_v16 = vpop.f32.mrf.mxu3 }
 0x2f9   :  { %v340_v17 = vrot.slane %v336_v16, 4 }
 0x2fb   :  { %v342_v19 = vadd.f32 %v340_v17, %v2489_v18 }
 0x2fd   :  { %2122 = vtanh.f32 %v342_v19  ;;  %v2054_v25 = vmul.f32 -1.442695, %v342_v19 }
 0x2fe   :  { %2124 = vtanh.f32 %v2573_v22 }
 0x2ff   :  { %2126 = vpow2.f32 %v2054_v25 }
 0x303   :  { %v2123_v23 = vpop.eup %2122 }
 0x304   :  { %368 = vrot.lane.b32.xlu2 %v2123_v23, %s2341_s26  ;;  %v2125_v24 = vpop.eup %2124 }
 0x305   :  { %v2127_v26 = vpop.eup %2126 }
 0x306   :  { %v346_v27 = vadd.f32 1.0, %v2127_v26 }
 0x308   :  { %2128 = vrcp.f32 %v346_v27  ;;  %v358_v33 = vand.u32 2147483648, %v346_v27  ;;  %vm352_vm10 = vweird.f32 %v346_v27  ;;  %v356_v34 = vand.u32 2147483647, %v346_v27 }
 0x30a   :  { %v359_v38 = vor.u32 1.1754944e-38, %v358_v33  ;;  %vm357_vm12 = vcmp.eq.f32.partialorder %v356_v34, 8.507059e+37 }
 0x30c   :  { %179 = vrot.lane.b32.xlu2 %v2125_v24, %s2341_s26 }
 0x30e   :  { %v2129_v28 = vpop.eup %2128 }
 0x30f   :  { %v348_v29 = vmul.f32 %v2129_v28, %v346_v27  ;;  %vm353_vm9 = vweird.f32 %v2129_v28  ;;  %v294_v27 = vrot.slane %v2573_v22, 6 }
 0x310   :  { %vm354_vm11 = vmor %vm352_vm10, %vm353_vm9 }
 0x311   :  { %v349_v30 = vsub.f32 1.0, %v348_v29 }
 0x313   :  { %v350_v31 = vmul.f32 %v2129_v28, %v349_v30 }
 0x315   :  { %v351_v32 = vadd.f32 %v2129_v28, %v350_v31 }
 0x317   :  { %v355_v35 = vsel %vm354_vm11, %v2129_v28, %v351_v32 }
 0x318   :  { %v360_v39 = vsel %vm357_vm12, %v359_v38, %v355_v35 }
 0x319   :  { %v366_v49 = vmul.f32 %v364_v47, %v360_v39 }
 0x35e   :  { %v369_v41 = vpop.permute.xlu2 %368 }
 0x35f   :  { %v371_v43 = vmul.f32 %v369_v41, %v360_v39 }
 0x361   :  { %373 = vrot.lane.b32.xlu1 %v371_v43, %s2342_s4 }
 0x366   :  { %v180_v44 = vpop.permute.xlu2 %179 }
 0x367   :  { %v182_v45 = vmul.f32 %v180_v44, %v163_v12 }
 0x369   :  { %245 = vrot.lane.b32.xlu1 %v182_v45, %s2342_s4 }
 0x3d3   :  { %v374_v51 = vpop.permute.xlu1 %373 }
 0x3d4   :  { %v2581_v52 = vadd.f32 %v374_v51, %v366_v49 }
 0x3d6   :  { %2130 = vtanh.f32 %v2581_v52 }
 0x3db   :  { %v2584_v53 = vpop.permute.xlu1 %245 }
 0x3dc   :  { %v2131_v55 = vpop.eup %2130  ;;  %2051 = vmatmul.msk.f32.vlgmr.msrb.gmra.mxu2 %vm69_vm0, %v2584_v53 }
 0x3dd   :  { %379 = vrot.lane.b32.xlu0 %v2131_v55, %s2341_s26  ;;  %813 = vmatpush.msrb.mxu2 %v2497_v36 }
 0x3df   :  { %814 = vmatpush.msrb.mxu2 %v2502_v37 }
 0x3e1   :  { %815 = vmatpush.msrb.mxu2 %v2514_v40 }
 0x3e3   :  { %816 = vmatpush.msrb.mxu2 %v2523_v42 }
 0x44f   :  { %v380_v46 = vpop.permute.xlu0 %379 }
 0x450   :  { %v2593_v56 = vmul.f32 %v380_v46, %v360_v39 }
 0x452   :  { %v454_v57 = vrot.slane %v2593_v56, 4 }
 0x454   :  { %455 = vrot.lane.b32.xlu2 %v454_v57, %s2342_s4 }
 0x45f   :  { %v266_v58 = vpop.f32.mrf.mxu2 }
 0x460   :  { %v270_v59 = vrot.slane %v266_v58, 6 }
 0x462   :  { %v272_v60 = vadd.f32 %v270_v59, %v2558_v50  ;;  %v504_v59 = vrot.slane %v2581_v52, 2 }
 0x464   :  { %2132 = vtanh.f32 %v272_v60  ;;  %v2052_v63 = vmul.f32 -1.442695, %v272_v60 }
 0x466   :  { %2134 = vpow2.f32 %v2052_v63 }
 0x46a   :  { %v2133_v61 = vpop.eup %2132 }
 0x46b   :  { %298 = vrot.lane.b32.xlu0 %v2133_v61, %s2341_s26 }
 0x46c   :  { %v2135_v0 = vpop.eup %2134 }
 0x46d   :  { %v276_v1 = vadd.f32 1.0, %v2135_v0 }
 0x46f   :  { %2136 = vrcp.f32 %v276_v1  ;;  %v288_v13 = vand.u32 2147483648, %v276_v1  ;;  %vm282_vm14 = vweird.f32 %v276_v1  ;;  %v286_v15 = vand.u32 2147483647, %v276_v1 }
 0x471   :  { %v289_v17 = vor.u32 1.1754944e-38, %v288_v13  ;;  %vm287_vm1 = vcmp.eq.f32.partialorder %v286_v15, 8.507059e+37 }
 0x475   :  { %v2137_v4 = vpop.eup %2136 }
 0x476   :  { %v278_v6 = vmul.f32 %v2137_v4, %v276_v1  ;;  %vm283_vm13 = vweird.f32 %v2137_v4 }
 0x477   :  { %vm284_vm15 = vmor %vm282_vm14, %vm283_vm13 }
 0x478   :  { %v279_v8 = vsub.f32 1.0, %v278_v6  ;;  %v2631_v6 = vpop.f32.mrf.mxu0 }
 0x47a   :  { %v280_v10 = vmul.f32 %v2137_v4, %v279_v8 }
 0x47c   :  { %v281_v12 = vadd.f32 %v2137_v4, %v280_v10 }
 0x47e   :  { %v285_v16 = vsel %vm284_vm15, %v2137_v4, %v281_v12 }
 0x47f   :  { %v290_v20 = vsel %vm287_vm1, %v289_v17, %v285_v16 }
 0x480   :  { %v296_v28 = vmul.f32 %v294_v27, %v290_v20 }
 0x4ae   :  { %v456_v62 = vpop.permute.xlu2 %455 }
 0x4af   :  { %2057 = vmatmul.msk.f32.vlgmr.msrb.gmra.mxu1 %vm69_vm0, %v456_v62 }
 0x4b0   :  { %1023 = vmatpush.msrb.mxu1 %v2423_v2 }
 0x4b2   :  { %1024 = vmatpush.msrb.mxu1 %v2429_v3 }
 0x4b4   :  { %1025 = vmatpush.msrb.mxu1 %v2437_v5 }
 0x4b6   :  { %1026 = vmatpush.msrb.mxu1 %v2446_v7 }
 0x4dd   :  { %v299_v19 = vpop.permute.xlu0 %298 }
 0x4de   :  { %v301_v21 = vmul.f32 %v299_v19, %v290_v20 }
 0x4e0   :  { %303 = vrot.lane.b32.xlu2 %v301_v21, %s2342_s4 }
 0x52c   :  { %v476_v23 = vpop.f32.mrf.mxu1 }
 0x52d   :  { %v480_v24 = vrot.slane %v476_v23, 6 }
 0x52f   :  { %v482_v25 = vadd.f32 %v480_v24, %v2489_v18 }
 0x531   :  { %2138 = vtanh.f32 %v482_v25  ;;  %v2058_v32 = vmul.f32 -1.442695, %v482_v25 }
 0x537   :  { %v2139_v26 = vpop.eup %2138 }
 0x538   :  { %508 = vrot.lane.b32.xlu1 %v2139_v26, %s2341_s26 }
 0x53a   :  { %v304_v29 = vpop.permute.xlu2 %303 }
 0x53b   :  { %v2608_v30 = vadd.f32 %v304_v29, %v296_v28 }
 0x53d   :  { %2140 = vtanh.f32 %v2608_v30 }
 0x53e   :  { %2142 = vpow2.f32 %v2058_v32 }
 0x543   :  { %v2141_v31 = vpop.eup %2140 }
 0x544   :  { %309 = vrot.lane.b32.xlu1 %v2141_v31, %s2341_s26  ;;  %v2143_v33 = vpop.eup %2142 }
 0x545   :  { %v486_v34 = vadd.f32 1.0, %v2143_v33 }
 0x547   :  { %2144 = vrcp.f32 %v486_v34  ;;  %v498_v43 = vand.u32 2147483648, %v486_v34  ;;  %vm492_vm3 = vweird.f32 %v486_v34  ;;  %v496_v44 = vand.u32 2147483647, %v486_v34 }
 0x549   :  { %v499_v47 = vor.u32 1.1754944e-38, %v498_v43  ;;  %vm497_vm5 = vcmp.eq.f32.partialorder %v496_v44, 8.507059e+37 }
 0x54d   :  { %v2145_v35 = vpop.eup %2144 }
 0x54e   :  { %v488_v38 = vmul.f32 %v2145_v35, %v486_v34  ;;  %vm493_vm2 = vweird.f32 %v2145_v35 }
 0x54f   :  { %vm494_vm4 = vmor %vm492_vm3, %vm493_vm2 }
 0x550   :  { %v489_v39 = vsub.f32 1.0, %v488_v38 }
 0x552   :  { %v490_v22 = vmul.f32 %v2145_v35, %v489_v39 }
 0x554   :  { %v491_v41 = vadd.f32 %v2145_v35, %v490_v22 }
 0x556   :  { %v495_v45 = vsel %vm494_vm4, %v2145_v35, %v491_v41 }
 0x557   :  { %v500_v51 = vsel %vm497_vm5, %v499_v47, %v495_v45 }
 0x558   :  { %v506_v60 = vmul.f32 %v504_v59, %v500_v51 }
 0x5aa   :  { %v509_v49 = vpop.permute.xlu1 %508 }
 0x5ab   :  { %v511_v55 = vmul.f32 %v509_v49, %v500_v51 }
 0x5ad   :  { %513 = vrot.lane.b32.xlu0 %v511_v55, %s2342_s4 }
 0x5b6   :  { %v310_v46 = vpop.permute.xlu1 %309 }
 0x5b7   :  { %v2613_v57 = vmul.f32 %v310_v46, %v290_v20 }
 0x5b9   :  { %v384_v58 = vrot.slane %v2613_v57, 2 }
 0x5bb   :  { %385 = vrot.lane.b32.xlu0 %v384_v58, %s2342_s4 }
 0x61f   :  { %v514_v61 = vpop.permute.xlu0 %513 }
 0x620   :  { %v2618_v62 = vadd.f32 %v514_v61, %v506_v60 }
 0x622   :  { %2146 = vtanh.f32 %v2618_v62 }
 0x628   :  { %v2147_v63 = vpop.eup %2146 }
 0x629   :  { %519 = vrot.lane.b32.xlu2 %v2147_v63, %s2341_s26 }
 0x62d   :  { %v386_v0 = vpop.permute.xlu0 %385 }
 0x62e   :  { %2055 = vmatmul.msk.f32.vlgmr.msrb.gmra.mxu0 %vm69_vm0, %v386_v0 }
 0x62f   :  { %953 = vmatpush.msrb.mxu0 %v2497_v36 }
 0x631   :  { %954 = vmatpush.msrb.mxu0 %v2502_v37 }
 0x633   :  { %955 = vmatpush.msrb.mxu0 %v2514_v40 }
 0x635   :  { %956 = vmatpush.msrb.mxu0 %v2523_v42 }
 0x683   :  { %v520_v52 = vpop.permute.xlu2 %519 }
 0x684   :  { %v2627_v1 = vmul.f32 %v520_v52, %v500_v51  ;;  %v641_v52 = vrot.slane %v2618_v62, 2 }
 0x686   :  { %v594_v4 = vrot.slane %v2627_v1, 2 }
 0x688   :  { %595 = vrot.lane.b32.xlu1 %v594_v4, %s2342_s4 }
 0x6ab   :  { %v406_v8 = vpop.f32.mrf.mxu0 }
 0x6ac   :  { %v410_v10 = vrot.slane %v406_v8, 4 }
 0x6ae   :  { %v412_v12 = vadd.f32 %v410_v10, %v2558_v50 }
 0x6b0   :  { %2148 = vtanh.f32 %v412_v12  ;;  %v2056_v15 = vmul.f32 -1.442695, %v412_v12 }
 0x6b2   :  { %2150 = vpow2.f32 %v2056_v15 }
 0x6b6   :  { %v2149_v13 = vpop.eup %2148 }
 0x6b7   :  { %438 = vrot.lane.b32.xlu2 %v2149_v13, %s2341_s26 }
 0x6b8   :  { %v2151_v16 = vpop.eup %2150 }
 0x6b9   :  { %v416_v17 = vadd.f32 1.0, %v2151_v16 }
 0x6bb   :  { %2152 = vrcp.f32 %v416_v17  ;;  %v428_v26 = vand.u32 2147483648, %v416_v17  ;;  %vm422_vm7 = vweird.f32 %v416_v17  ;;  %v426_v27 = vand.u32 2147483647, %v416_v17 }
 0x6bd   :  { %v429_v29 = vor.u32 1.1754944e-38, %v428_v26  ;;  %vm427_vm9 = vcmp.eq.f32.partialorder %v426_v27, 8.507059e+37 }
 0x6c1   :  { %v2153_v20 = vpop.eup %2152 }
 0x6c2   :  { %v418_v21 = vmul.f32 %v2153_v20, %v416_v17  ;;  %vm423_vm6 = vweird.f32 %v2153_v20 }
 0x6c3   :  { %vm424_vm8 = vmor %vm422_vm7, %vm423_vm6 }
 0x6c4   :  { %v419_v23 = vsub.f32 1.0, %v418_v21 }
 0x6c6   :  { %v420_v24 = vmul.f32 %v2153_v20, %v419_v23 }
 0x6c8   :  { %v421_v25 = vadd.f32 %v2153_v20, %v420_v24 }
 0x6ca   :  { %v425_v28 = vsel %vm424_vm8, %v2153_v20, %v421_v25 }
 0x6cb   :  { %v430_v31 = vsel %vm427_vm9, %v429_v29, %v425_v28 }
 0x6fa   :  { %v596_v19 = vpop.permute.xlu1 %595 }
 0x6fb   :  { %2061 = vmatmul.msk.f32.vlgmr.msra.gmra.mxu3 %vm69_vm0, %v596_v19 }
 0x6fc   :  { %1163 = vmatpush.msra.mxu3 %v2423_v2 }
 0x6fe   :  { %1164 = vmatpush.msra.mxu3 %v2429_v3 }
 0x700   :  { %1165 = vmatpush.msra.mxu3 %v2437_v5 }
 0x702   :  { %1166 = vmatpush.msra.mxu3 %v2446_v7  ;;  %v434_v7 = vrot.slane %v2608_v30, 6 }
 0x704   :  { %v436_v33 = vmul.f32 %v434_v7, %v430_v31 }
 0x711   :  { %v439_v2 = vpop.permute.xlu2 %438 }
 0x712   :  { %v441_v32 = vmul.f32 %v439_v2, %v430_v31 }
 0x714   :  { %443 = vrot.lane.b32.xlu1 %v441_v32, %s2342_s4 }
 0x77e   :  { %v616_v3 = vpop.f32.mrf.mxu3 }
 0x77f   :  { %v619_v5 = vadd.f32 %v616_v3, %v2489_v18 }
 0x781   :  { %2154 = vtanh.f32 %v619_v5  ;;  %v2062_v22 = vmul.f32 -1.442695, %v619_v5 }
 0x786   :  { %v444_v34 = vpop.permute.xlu1 %443 }
 0x787   :  { %v2155_v35 = vpop.eup %2154  ;;  %v2643_v38 = vadd.f32 %v444_v34, %v436_v33 }
 0x788   :  { %645 = vrot.lane.b32.xlu0 %v2155_v35, %s2341_s26 }
 0x789   :  { %2156 = vtanh.f32 %v2643_v38  ;;  %v574_v34 = vrot.slane %v2643_v38, 6 }
 0x78a   :  { %2158 = vpow2.f32 %v2062_v22 }
 0x78f   :  { %v2157_v39 = vpop.eup %2156 }
 0x790   :  { %449 = vrot.lane.b32.xlu0 %v2157_v39, %s2341_s26  ;;  %v2159_v41 = vpop.eup %2158 }
 0x791   :  { %v623_v43 = vadd.f32 1.0, %v2159_v41 }
 0x793   :  { %2160 = vrcp.f32 %v623_v43  ;;  %v635_v49 = vand.u32 2147483648, %v623_v43  ;;  %vm629_vm11 = vweird.f32 %v623_v43  ;;  %v633_v51 = vand.u32 2147483647, %v623_v43 }
 0x795   :  { %v636_v46 = vor.u32 1.1754944e-38, %v635_v49  ;;  %vm634_vm13 = vcmp.eq.f32.partialorder %v633_v51, 8.507059e+37 }
 0x799   :  { %v2161_v18 = vpop.eup %2160 }
 0x79a   :  { %v625_v44 = vmul.f32 %v2161_v18, %v623_v43  ;;  %vm630_vm10 = vweird.f32 %v2161_v18 }
 0x79b   :  { %vm631_vm12 = vmor %vm629_vm11, %vm630_vm10 }
 0x79c   :  { %v626_v30 = vsub.f32 1.0, %v625_v44 }
 0x79e   :  { %v627_v45 = vmul.f32 %v2161_v18, %v626_v30 }
 0x7a0   :  { %v628_v47 = vadd.f32 %v2161_v18, %v627_v45 }
 0x7a2   :  { %v632_v55 = vsel %vm631_vm12, %v2161_v18, %v628_v47 }
 0x7a3   :  { %v637_v59 = vsel %vm634_vm13, %v636_v46, %v632_v55 }
 0x7a4   :  { %v643_v4 = vmul.f32 %v641_v52, %v637_v59 }
 0x7fa   :  { %v646_v58 = vpop.permute.xlu0 %645 }
 0x7fb   :  { %v648_v60 = vmul.f32 %v646_v58, %v637_v59 }
 0x7fd   :  { %650 = vrot.lane.b32.xlu2 %v648_v60, %s2342_s4 }
 0x802   :  { %v450_v61 = vpop.permute.xlu0 %449 }
 0x803   :  { %v2649_v63 = vmul.f32 %v450_v61, %v430_v31 }
 0x805   :  { %v524_v0 = vrot.slane %v2649_v63, 4 }
 0x807   :  { %525 = vrot.lane.b32.xlu2 %v524_v0, %s2342_s4 }
 0x857   :  { %v651_v8 = vpop.permute.xlu2 %650 }
 0x858   :  { %v2654_v10 = vadd.f32 %v651_v8, %v643_v4 }
 0x85a   :  { %2162 = vtanh.f32 %v2654_v10  ;;  %v777_v8 = vrot.slane %v2654_v10, 2  ;;  %v2696_v10 = vadd.f32 %v2631_v6, %v65_v48 }
 0x860   :  { %v2163_v12 = vpop.eup %2162 }
 0x861   :  { %656 = vrot.lane.b32.xlu1 %v2163_v12, %s2341_s26  ;;  %v526_v13 = vpop.permute.xlu2 %525 }
 0x862   :  { %2059 = vmatmul.msk.f32.vlgmr.msra.gmra.mxu2 %vm69_vm0, %v526_v13 }
 0x863   :  { %1093 = vmatpush.msra.mxu2 %v2497_v36 }
 0x865   :  { %1094 = vmatpush.msra.mxu2 %v2502_v37 }
 0x867   :  { %1095 = vmatpush.msra.mxu2 %v2514_v40 }
 0x869   :  { %1096 = vmatpush.msra.mxu2 %v2523_v42 }
 0x8d3   :  { %v657_v62 = vpop.permute.xlu1 %656 }
 0x8d4   :  { %v2663_v15 = vmul.f32 %v657_v62, %v637_v59 }
 0x8d6   :  { %728 = vrot.lane.b32.xlu0 %v2663_v15, %s2342_s4 }
 0x8e5   :  { %v546_v16 = vpop.f32.mrf.mxu2 }
 0x8e6   :  { %v550_v17 = vrot.slane %v546_v16, 2 }
 0x8e8   :  { %v552_v19 = vadd.f32 %v550_v17, %v2558_v50 }
 0x8ea   :  { %2164 = vtanh.f32 %v552_v19  ;;  %v2060_v36 = vmul.f32 -1.442695, %v552_v19 }
 0x8ec   :  { %2166 = vpow2.f32 %v2060_v36 }
 0x8f0   :  { %v2165_v20 = vpop.eup %2164 }
 0x8f1   :  { %578 = vrot.lane.b32.xlu1 %v2165_v20, %s2341_s26 }
 0x8f2   :  { %v2167_v37 = vpop.eup %2166 }
 0x8f3   :  { %v556_v40 = vadd.f32 1.0, %v2167_v37 }
 0x8f5   :  { %2168 = vrcp.f32 %v556_v40  ;;  %v568_v27 = vand.u32 2147483648, %v556_v40  ;;  %vm562_vm15 = vweird.f32 %v556_v40  ;;  %v566_v50 = vand.u32 2147483647, %v556_v40 }
 0x8f7   :  { %v569_v29 = vor.u32 1.1754944e-38, %v568_v27  ;;  %vm567_vm2 = vcmp.eq.f32.partialorder %v566_v50, 8.507059e+37 }
 0x8fb   :  { %v2169_v21 = vpop.eup %2168 }
 0x8fc   :  { %v558_v23 = vmul.f32 %v2169_v21, %v556_v40  ;;  %vm563_vm14 = vweird.f32 %v2169_v21 }
 0x8fd   :  { %vm564_vm1 = vmor %vm562_vm15, %vm563_vm14 }
 0x8fe   :  { %v559_v24 = vsub.f32 1.0, %v558_v23 }
 0x900   :  { %v560_v25 = vmul.f32 %v2169_v21, %v559_v24 }
 0x902   :  { %v561_v26 = vadd.f32 %v2169_v21, %v560_v25 }
 0x904   :  { %v565_v28 = vsel %vm564_vm1, %v2169_v21, %v561_v26 }
 0x905   :  { %v570_v2 = vsel %vm567_vm2, %v569_v29, %v565_v28 }
 0x906   :  { %v576_v35 = vmul.f32 %v574_v34, %v570_v2 }
 0x948   :  { %v729_v42 = vpop.permute.xlu0 %728 }
 0x949   :  { %2065 = vmatmul.msk.f32.vlgmr.msra.gmra.mxu1 %vm69_vm0, %v729_v42 }
 0x963   :  { %v579_v31 = vpop.permute.xlu1 %578 }
 0x964   :  { %v581_v32 = vmul.f32 %v579_v31, %v570_v2 }
 0x966   :  { %583 = vrot.lane.b32.xlu0 %v581_v32, %s2342_s4 }
 0x9c6   :  { %v749_v3 = vpop.f32.mrf.mxu1 }
 0x9c7   :  { %v753_v5 = vrot.slane %v749_v3, 2 }
 0x9c9   :  { %v755_v7 = vadd.f32 %v753_v5, %v2487_v14 }
 0x9cb   :  { %2170 = vtanh.f32 %v755_v7  ;;  %v2066_v43 = vmul.f32 -1.442695, %v755_v7 }
 0x9d1   :  { %v2171_v33 = vpop.eup %2170 }
 0x9d2   :  { %781 = vrot.lane.b32.xlu2 %v2171_v33, %s2341_s26 }
 0x9d8   :  { %v584_v39 = vpop.permute.xlu0 %583 }
 0x9d9   :  { %v2674_v22 = vadd.f32 %v584_v39, %v576_v35 }
 0x9db   :  { %2172 = vtanh.f32 %v2674_v22  ;;  %v708_v34 = vrot.slane %v2674_v22, 6 }
 0x9dc   :  { %2174 = vpow2.f32 %v2066_v43 }
 0x9e1   :  { %v2173_v41 = vpop.eup %2172 }
 0x9e2   :  { %589 = vrot.lane.b32.xlu2 %v2173_v41, %s2341_s26  ;;  %v2175_v18 = vpop.eup %2174 }
 0x9e3   :  { %v759_v44 = vadd.f32 1.0, %v2175_v18 }
 0x9e5   :  { %2176 = vrcp.f32 %v759_v44  ;;  %v771_v38 = vand.u32 2147483648, %v759_v44  ;;  %vm765_vm4 = vweird.f32 %v759_v44  ;;  %v769_v55 = vand.u32 2147483647, %v759_v44 }
 0x9e7   :  { %v772_v58 = vor.u32 1.1754944e-38, %v771_v38  ;;  %vm770_vm6 = vcmp.eq.f32.partialorder %v769_v55, 8.507059e+37 }
 0x9eb   :  { %v2177_v30 = vpop.eup %2176 }
 0x9ec   :  { %v761_v45 = vmul.f32 %v2177_v30, %v759_v44  ;;  %vm766_vm3 = vweird.f32 %v2177_v30 }
 0x9ed   :  { %vm767_vm5 = vmor %vm765_vm4, %vm766_vm3 }
 0x9ee   :  { %v762_v47 = vsub.f32 1.0, %v761_v45 }
 0x9f0   :  { %v763_v49 = vmul.f32 %v2177_v30, %v762_v47 }
 0x9f2   :  { %v764_v51 = vadd.f32 %v2177_v30, %v763_v49 }
 0x9f4   :  { %v768_v46 = vsel %vm767_vm5, %v2177_v30, %v764_v51 }
 0x9f5   :  { %v773_v59 = vsel %vm770_vm6, %v772_v58, %v768_v46 }
 0x9f6   :  { %v779_v12 = vmul.f32 %v777_v8, %v773_v59 }
 0xa2c   :  { %v782_v60 = vpop.permute.xlu2 %781 }
 0xa2d   :  { %v784_v61 = vmul.f32 %v782_v60, %v773_v59 }
 0xa2f   :  { %786 = vrot.lane.b32.xlu1 %v784_v61, %s2342_s4 }
 0xa3c   :  { %v590_v0 = vpop.permute.xlu2 %589 }
 0xa3d   :  { %v2679_v52 = vmul.f32 %v590_v0, %v570_v2 }
 0xa3f   :  { %v661_v4 = vrot.slane %v2679_v52, 6 }
 0xa41   :  { %662 = vrot.lane.b32.xlu1 %v661_v4, %s2342_s4 }
 0xaa1   :  { %v787_v13 = vpop.permute.xlu1 %786 }
 0xaa2   :  { %v2684_v62 = vadd.f32 %v787_v13, %v779_v12 }
 0xaa4   :  { %2178 = vtanh.f32 %v2684_v62  ;;  %v916_v12 = vrot.slane %v2684_v62, 2 }
 0xaaa   :  { %v2179_v16 = vpop.eup %2178 }
 0xaab   :  { %792 = vrot.lane.b32.xlu0 %v2179_v16, %s2341_s26 }
 0xab3   :  { %v663_v17 = vpop.permute.xlu1 %662 }
 0xab4   :  { %2063 = vmatmul.msk.f32.vlgmr.msra.gmra.mxu0 %vm69_vm0, %v663_v17 }
 0xb1d   :  { %v793_v19 = vpop.permute.xlu0 %792 }
 0xb1e   :  { %v2689_v20 = vmul.f32 %v793_v19, %v773_v59 }
 0xb20   :  { %v866_v36 = vrot.slane %v2689_v20, 6 }
 0xb22   :  { %867 = vrot.lane.b32.xlu2 %v866_v36, %s2342_s4 }
 0xb31   :  { %v683_v37 = vpop.f32.mrf.mxu0 }
 0xb32   :  { %v686_v40 = vadd.f32 %v683_v37, %v2696_v10 }
 0xb34   :  { %2180 = vtanh.f32 %v686_v40  ;;  %v2064_v23 = vmul.f32 -1.442695, %v686_v40 }
 0xb36   :  { %2182 = vpow2.f32 %v2064_v23 }
 0xb3a   :  { %v2181_v42 = vpop.eup %2180 }
 0xb3b   :  { %712 = vrot.lane.b32.xlu0 %v2181_v42, %s2341_s26 }
 0xb3c   :  { %v2183_v24 = vpop.eup %2182 }
 0xb3d   :  { %v690_v25 = vadd.f32 1.0, %v2183_v24 }
 0xb3f   :  { %2184 = vrcp.f32 %v690_v25  ;;  %v702_v50 = vand.u32 2147483648, %v690_v25  ;;  %vm696_vm8 = vweird.f32 %v690_v25  ;;  %v700_v28 = vand.u32 2147483647, %v690_v25 }
 0xb41   :  { %v703_v31 = vor.u32 1.1754944e-38, %v702_v50  ;;  %vm701_vm10 = vcmp.eq.f32.partialorder %v700_v28, 8.507059e+37 }
 0xb45   :  { %v2185_v26 = vpop.eup %2184 }
 0xb46   :  { %v692_v11 = vmul.f32 %v2185_v26, %v690_v25  ;;  %vm697_vm7 = vweird.f32 %v2185_v26 }
 0xb47   :  { %vm698_vm9 = vmor %vm696_vm8, %vm697_vm7 }
 0xb48   :  { %v693_v27 = vsub.f32 1.0, %v692_v11 }
 0xb4a   :  { %v694_v48 = vmul.f32 %v2185_v26, %v693_v27 }
 0xb4c   :  { %v695_v6 = vadd.f32 %v2185_v26, %v694_v48 }
 0xb4e   :  { %v699_v29 = vsel %vm698_vm9, %v2185_v26, %v695_v6 }
 0xb4f   :  { %v704_v32 = vsel %vm701_vm10, %v703_v31, %v699_v29 }
 0xb50   :  { %v710_v35 = vmul.f32 %v708_v34, %v704_v32 }
 0xb7c   :  { %v868_v21 = vpop.permute.xlu2 %867 }
 0xb7d   :  { %2069 = vmatmul.msk.f32.vlgmr.msrb.gmra.mxu3 %vm69_vm0, %v868_v21 }
 0xbad   :  { %v713_v2 = vpop.permute.xlu0 %712 }
 0xbae   :  { %v715_v3 = vmul.f32 %v713_v2, %v704_v32 }
 0xbb0   :  { %717 = vrot.lane.b32.xlu2 %v715_v3, %s2342_s4 }
 0xc00   :  { %v888_v5 = vpop.f32.mrf.mxu3 }
 0xc01   :  { %v892_v7 = vrot.slane %v888_v5, 4 }
 0xc03   :  { %v894_v33 = vadd.f32 %v892_v7, %v2487_v14 }
 0xc05   :  { %2186 = vtanh.f32 %v894_v33  ;;  %v2070_v44 = vmul.f32 -1.442695, %v894_v33 }
 0xc0a   :  { %v718_v39 = vpop.permute.xlu2 %717 }
 0xc0b   :  { %v2187_v41 = vpop.eup %2186  ;;  %v2704_v43 = vadd.f32 %v718_v39, %v710_v35 }
 0xc0c   :  { %920 = vrot.lane.b32.xlu1 %v2187_v41, %s2341_s26 }
 0xc0d   :  { %2188 = vtanh.f32 %v2704_v43 }
 0xc0e   :  { %2190 = vpow2.f32 %v2070_v44 }
 0xc13   :  { %v2189_v18 = vpop.eup %2188 }
 0xc14   :  { %723 = vrot.lane.b32.xlu1 %v2189_v18, %s2341_s26  ;;  %v2191_v30 = vpop.eup %2190  ;;  %v846_v18 = vrot.slane %v2704_v43, 6 }
 0xc15   :  { %v898_v45 = vadd.f32 1.0, %v2191_v30 }
 0xc17   :  { %2192 = vrcp.f32 %v898_v45  ;;  %v910_v55 = vand.u32 2147483648, %v898_v45  ;;  %vm904_vm12 = vweird.f32 %v898_v45  ;;  %v908_v46 = vand.u32 2147483647, %v898_v45 }
 0xc19   :  { %v911_v59 = vor.u32 1.1754944e-38, %v910_v55  ;;  %vm909_vm14 = vcmp.eq.f32.partialorder %v908_v46, 8.507059e+37 }
 0xc1d   :  { %v2193_v47 = vpop.eup %2192 }
 0xc1e   :  { %v900_v49 = vmul.f32 %v2193_v47, %v898_v45  ;;  %vm905_vm11 = vweird.f32 %v2193_v47 }
 0xc1f   :  { %vm906_vm13 = vmor %vm904_vm12, %vm905_vm11 }
 0xc20   :  { %v901_v22 = vsub.f32 1.0, %v900_v49 }
 0xc22   :  { %v902_v51 = vmul.f32 %v2193_v47, %v901_v22 }
 0xc24   :  { %v903_v38 = vadd.f32 %v2193_v47, %v902_v51 }
 0xc26   :  { %v907_v58 = vsel %vm906_vm13, %v2193_v47, %v903_v38 }
 0xc27   :  { %v912_v61 = vsel %vm909_vm14, %v911_v59, %v907_v58 }
 0xc28   :  { %v918_v13 = vmul.f32 %v916_v12, %v912_v61 }
 0xc7e   :  { %v921_v60 = vpop.permute.xlu1 %920 }
 0xc7f   :  { %v923_v0 = vmul.f32 %v921_v60, %v912_v61 }
 0xc81   :  { %925 = vrot.lane.b32.xlu0 %v923_v0, %s2342_s4 }
 0xc86   :  { %v724_v4 = vpop.permute.xlu1 %723 }
 0xc87   :  { %v726_v8 = vmul.f32 %v724_v4, %v704_v32 }
 0xc89   :  { %797 = vrot.lane.b32.xlu0 %v726_v8, %s2342_s4 }
 0xcf3   :  { %v926_v16 = vpop.permute.xlu0 %925 }
 0xcf4   :  { %v2712_v17 = vadd.f32 %v926_v16, %v918_v13 }
 0xcf6   :  { %2194 = vtanh.f32 %v2712_v17 }
 0xcfb   :  { %v2715_v19 = vpop.permute.xlu0 %797 }
 0xcfc   :  { %v2195_v36 = vpop.eup %2194  ;;  %2067 = vmatmul.msk.f32.vlgmr.msrb.gmra.mxu2 %vm69_vm0, %v2715_v19 }
 0xcfd   :  { %931 = vrot.lane.b32.xlu2 %v2195_v36, %s2341_s26 }
 0xd57   :  { %v932_v37 = vpop.permute.xlu2 %931 }
 0xd58   :  { %v2720_v40 = vmul.f32 %v932_v37, %v912_v61  ;;  %v1056_v37 = vrot.slane %v2712_v17, 2 }
 0xd5a   :  { %v1006_v42 = vrot.slane %v2720_v40, 4 }
 0xd5c   :  { %1007 = vrot.lane.b32.xlu1 %v1006_v42, %s2342_s4 }
 0xd7f   :  { %v818_v62 = vpop.f32.mrf.mxu2 }
 0xd80   :  { %v822_v21 = vrot.slane %v818_v62, 6 }
 0xd82   :  { %v824_v23 = vadd.f32 %v822_v21, %v2696_v10 }
 0xd84   :  { %2196 = vtanh.f32 %v824_v23  ;;  %v2068_v25 = vmul.f32 -1.442695, %v824_v23 }
 0xd86   :  { %2198 = vpow2.f32 %v2068_v25 }
 0xd8a   :  { %v2197_v24 = vpop.eup %2196 }
 0xd8b   :  { %850 = vrot.lane.b32.xlu2 %v2197_v24, %s2341_s26 }
 0xd8c   :  { %v2199_v26 = vpop.eup %2198 }
 0xd8d   :  { %v828_v11 = vadd.f32 1.0, %v2199_v26 }
 0xd8f   :  { %2200 = vrcp.f32 %v828_v11  ;;  %v840_v31 = vand.u32 2147483648, %v828_v11  ;;  %vm834_vm1 = vweird.f32 %v828_v11  ;;  %v838_v2 = vand.u32 2147483647, %v828_v11 }
 0xd91   :  { %v841_v3 = vor.u32 1.1754944e-38, %v840_v31  ;;  %vm839_vm3 = vcmp.eq.f32.partialorder %v838_v2, 8.507059e+37 }
 0xd95   :  { %v2201_v48 = vpop.eup %2200 }
 0xd96   :  { %v830_v6 = vmul.f32 %v2201_v48, %v828_v11  ;;  %vm835_vm15 = vweird.f32 %v2201_v48 }
 0xd97   :  { %vm836_vm2 = vmor %vm834_vm1, %vm835_vm15  ;;  %vm1266_vm1 = vcmask 1041408  }
 0xd98   :  { %v831_v50 = vsub.f32 1.0, %v830_v6 }
 0xd9a   :  { %v832_v28 = vmul.f32 %v2201_v48, %v831_v50 }
 0xd9c   :  { %v833_v29 = vadd.f32 %v2201_v48, %v832_v28 }
 0xd9e   :  { %v837_v32 = vsel %vm836_vm2, %v2201_v48, %v833_v29  ;;  %vm1268_vm2 = vcmask 1043456  }
 0xd9f   :  { %v842_v5 = vsel %vm839_vm3, %v841_v3, %v837_v32  ;;  %vm1270_vm3 = vcmask 1045504  }
 0xda0   :  { %v848_v44 = vmul.f32 %v846_v18, %v842_v5 }
 0xdce   :  { %v1008_v27 = vpop.permute.xlu1 %1007 }
 0xdcf   :  { %2073 = vmatmul.msk.f32.vlgmr.msrb.gmra.mxu1 %vm69_vm0, %v1008_v27 }
 0xde5   :  { %v851_v7 = vpop.permute.xlu2 %850 }
 0xde6   :  { %v853_v33 = vmul.f32 %v851_v7, %v842_v5 }
 0xde8   :  { %855 = vrot.lane.b32.xlu1 %v853_v33, %s2342_s4 }
 0xe4c   :  { %v1028_v34 = vpop.f32.mrf.mxu1 }
 0xe4d   :  { %v1032_v35 = vrot.slane %v1028_v34, 6 }
 0xe4f   :  { %v1034_v39 = vadd.f32 %v1032_v35, %v2487_v14 }
 0xe51   :  { %2202 = vtanh.f32 %v1034_v39  ;;  %v2074_v49 = vmul.f32 -1.442695, %v1034_v39 }
 0xe57   :  { %v2203_v41 = vpop.eup %2202 }
 0xe58   :  { %1060 = vrot.lane.b32.xlu0 %v2203_v41, %s2341_s26 }
 0xe5a   :  { %v856_v30 = vpop.permute.xlu1 %855 }
 0xe5b   :  { %v2731_v45 = vadd.f32 %v856_v30, %v848_v44 }
 0xe5d   :  { %2204 = vtanh.f32 %v2731_v45 }
 0xe5e   :  { %2206 = vpow2.f32 %v2074_v49  ;;  %v986_v49 = vrot.slane %v2731_v45, 6 }
 0xe63   :  { %v2205_v47 = vpop.eup %2204 }
 0xe64   :  { %861 = vrot.lane.b32.xlu0 %v2205_v47, %s2341_s26  ;;  %v2207_v22 = vpop.eup %2206 }
 0xe65   :  { %v1038_v51 = vadd.f32 1.0, %v2207_v22 }
 0xe67   :  { %2208 = vrcp.f32 %v1038_v51  ;;  %v1050_v59 = vand.u32 2147483648, %v1038_v51  ;;  %vm1044_vm5 = vweird.f32 %v1038_v51  ;;  %v1048_v60 = vand.u32 2147483647, %v1038_v51 }
 0xe69   :  { %v1051_v0 = vor.u32 1.1754944e-38, %v1050_v59  ;;  %vm1049_vm7 = vcmp.eq.f32.partialorder %v1048_v60, 8.507059e+37 }
 0xe6d   :  { %v2209_v38 = vpop.eup %2208 }
 0xe6e   :  { %v1040_v55 = vmul.f32 %v2209_v38, %v1038_v51  ;;  %vm1045_vm4 = vweird.f32 %v2209_v38 }
 0xe6f   :  { %vm1046_vm6 = vmor %vm1044_vm5, %vm1045_vm4  ;;  %vm1301_vm4 = vcmask 523264  }
 0xe70   :  { %v1041_v46 = vsub.f32 1.0, %v1040_v55 }
 0xe72   :  { %v1042_v43 = vmul.f32 %v2209_v38, %v1041_v46 }
 0xe74   :  { %v1043_v58 = vadd.f32 %v2209_v38, %v1042_v43 }
 0xe76   :  { %v1047_v61 = vsel %vm1046_vm6, %v2209_v38, %v1043_v58 }
 0xe77   :  { %v1052_v8 = vsel %vm1049_vm7, %v1051_v0, %v1047_v61 }
 0xe78   :  { %v1058_v42 = vmul.f32 %v1056_v37, %v1052_v8 }
 0xeca   :  { %v1061_v4 = vpop.permute.xlu0 %1060 }
 0xecb   :  { %v1063_v12 = vmul.f32 %v1061_v4, %v1052_v8 }
 0xecd   :  { %1065 = vrot.lane.b32.xlu2 %v1063_v12, %s2342_s4 }
 0xed6   :  { %v862_v13 = vpop.permute.xlu0 %861 }
 0xed7   :  { %v2736_v16 = vmul.f32 %v862_v13, %v842_v5 }
 0xed9   :  { %v936_v36 = vrot.slane %v2736_v16, 2 }
 0xedb   :  { %937 = vrot.lane.b32.xlu2 %v936_v36, %s2342_s4 }
 0xf27   :  { %v1066_v62 = vpop.permute.xlu2 %1065 }
 0xf28   :  { %v2741_v21 = vadd.f32 %v1066_v62, %v1058_v42 }
 0xf2a   :  { %2210 = vtanh.f32 %v2741_v21 }
 0xf30   :  { %v2211_v23 = vpop.eup %2210 }
 0xf31   :  { %1071 = vrot.lane.b32.xlu1 %v2211_v23, %s2341_s26 }
 0xf35   :  { %v938_v24 = vpop.permute.xlu2 %937 }
 0xf36   :  { %2071 = vmatmul.msk.f32.vlgmr.msrb.gmra.mxu0 %vm69_vm0, %v938_v24  ;;  %v1193_v24 = vrot.slane %v2741_v21, 2  ;;  %v1289_v21 = vld [vmem:[%s3058_s5 + $0x70] sm:$0xff] }
 0xf37   :  { %1316 = vmatpush.msra.mxu0 %v1289_v21 }
 0xfa3   :  { %v1072_v25 = vpop.permute.xlu1 %1071 }
 0xfa4   :  { %v2746_v26 = vmul.f32 %v1072_v25, %v1052_v8 }
 0xfa6   :  { %v1146_v11 = vrot.slane %v2746_v26, 2 }
 0xfa8   :  { %1147 = vrot.lane.b32.xlu0 %v1146_v11, %s2342_s4 }
 0xfb3   :  { %v958_v17 = vpop.f32.mrf.mxu0 }
 0xfb4   :  { %v962_v27 = vrot.slane %v958_v17, 4 }
 0xfb6   :  { %v964_v48 = vadd.f32 %v962_v27, %v2696_v10 }
 0xfb8   :  { %2212 = vtanh.f32 %v964_v48  ;;  %v2072_v50 = vmul.f32 -1.442695, %v964_v48 }
 0xfba   :  { %2214 = vpow2.f32 %v2072_v50  ;;  %v1287_v50 = vld [vmem:[%s3058_s5 + $0x60] sm:$0xff] }
 0xfbb   :  { %1317 = vmatpush.msra.mxu0 %v1287_v50 }
 0xfbe   :  { %v2213_v6 = vpop.eup %2212 }
 0xfbf   :  { %990 = vrot.lane.b32.xlu1 %v2213_v6, %s2341_s26  ;;  %v1290_v6 = vld [vmem:[%s3058_s5 + $0x78] sm:$0xff] }
 0xfc0   :  { %v2215_v28 = vpop.eup %2214  ;;  %1339 = vmatpush.msra.mxu1 %v1290_v6 }
 0xfc1   :  { %v968_v29 = vadd.f32 1.0, %v2215_v28  ;;  %v1285_v28 = vld [vmem:[%s3058_s5 + $0x50] sm:$0xff] }
 0xfc2   :  { %1318 = vmatpush.msra.mxu0 %v1285_v28 }
 0xfc3   :  { %2216 = vrcp.f32 %v968_v29  ;;  %v980_v33 = vand.u32 2147483648, %v968_v29  ;;  %vm974_vm9 = vweird.f32 %v968_v29  ;;  %v978_v34 = vand.u32 2147483647, %v968_v29 }
 0xfc5   :  { %v981_v39 = vor.u32 1.1754944e-38, %v980_v33  ;;  %vm979_vm11 = vcmp.eq.f32.partialorder %v978_v34, 8.507059e+37  ;;  %v1279_v33 = vld [vmem:[%s3058_s5 + $0x20] sm:$0xff]  ;;  %v1280_v34 = vld [vmem:[%s3058_s5 + $0x28] sm:$0xff] }
 0xfc9   :  { %v2217_v2 = vpop.eup %2216 }
 0xfca   :  { %v970_v32 = vmul.f32 %v2217_v2, %v968_v29  ;;  %vm975_vm8 = vweird.f32 %v2217_v2  ;;  %v1286_v29 = vld [vmem:[%s3058_s5 + $0x58] sm:$0xff] }
 0xfcb   :  { %vm976_vm10 = vmor %vm974_vm9, %vm975_vm8 }
 0xfcc   :  { %v971_v3 = vsub.f32 1.0, %v970_v32  ;;  %v1284_v32 = vld [vmem:[%s3058_s5 + $0x48] sm:$0xff] }
 0xfce   :  { %v972_v5 = vmul.f32 %v2217_v2, %v971_v3  ;;  %v1281_v3 = vld [vmem:[%s3058_s5 + $0x30] sm:$0xff] }
 0xfd0   :  { %v973_v7 = vadd.f32 %v2217_v2, %v972_v5  ;;  %v1282_v5 = vld [vmem:[%s3058_s5 + $0x38] sm:$0xff] }
 0xfd2   :  { %v977_v35 = vsel %vm976_vm10, %v2217_v2, %v973_v7  ;;  %v1283_v2 = vld [vmem:[%s3058_s5 + $0x40] sm:$0xff] }
 0xfd3   :  { %v982_v18 = vsel %vm979_vm11, %v981_v39, %v977_v35  ;;  %1319 = vmatpush.msra.mxu0 %v1283_v2  ;;  %v2833_v7 = vld [vmem:[%s3059_s6] sm:$0xff]  ;;  %v1277_v35 = vld [vmem:[%s3058_s5 + $0x10] sm:$0xff]  ;;  %v1278_v39 = vld [vmem:[%s3058_s5 + $0x18] sm:$0xff] }
 0xfd4   :  { %v988_v22 = vmul.f32 %v986_v49, %v982_v18 }
 0xfd5   :  { %1320 = vmatpush.msra.mxu0 %v1281_v3 }
 0xfd7   :  { %1321 = vmatpush.msra.mxu0 %v1279_v33 }
 0xfd9   :  { %1322 = vmatpush.msra.mxu0 %v1277_v35 }
0x101a   :  { %v1148_v31 = vpop.permute.xlu0 %1147 }
0x101b   :  { %2077 = vmatmul.msk.f32.vlgmr.msra.gmra.mxu3 %vm69_vm0, %v1148_v31  ;;  %v2810_v31 = vld [vmem:[%s3059_s6 + $0x10] sm:$0xff] }
0x1031   :  { %v991_v41 = vpop.permute.xlu1 %990 }
0x1032   :  { %v993_v44 = vmul.f32 %v991_v41, %v982_v18  ;;  %v1275_v41 = vld [vmem:[%s3058_s5] sm:$0xff] }
0x1033   :  { %1323 = vmatpush.msra.mxu0 %v1275_v41 }
0x1034   :  { %995 = vrot.lane.b32.xlu0 %v993_v44, %s2342_s4 }
0x109e   :  { %v1168_v30 = vpop.f32.mrf.mxu3 }
0x109f   :  { %v1171_v47 = vadd.f32 %v1168_v30, %v2487_v14 }
0x10a1   :  { %2218 = vtanh.f32 %v1171_v47  ;;  %v2078_v43 = vmul.f32 -1.442695, %v1171_v47 }
0x10a6   :  { %v996_v51 = vpop.permute.xlu0 %995 }
0x10a7   :  { %v2219_v38 = vpop.eup %2218  ;;  %v2756_v55 = vadd.f32 %v996_v51, %v988_v22 }
0x10a8   :  { %1197 = vrot.lane.b32.xlu2 %v2219_v38, %s2341_s26 }
0x10a9   :  { %2220 = vtanh.f32 %v2756_v55 }
0x10aa   :  { %2222 = vpow2.f32 %v2078_v43 }
0x10af   :  { %v2221_v46 = vpop.eup %2220 }
0x10b0   :  { %1001 = vrot.lane.b32.xlu2 %v2221_v46, %s2341_s26  ;;  %v2223_v14 = vpop.eup %2222 }
0x10b1   :  { %v1175_v58 = vadd.f32 1.0, %v2223_v14 }
0x10b3   :  { %2224 = vrcp.f32 %v1175_v58  ;;  %v1187_v4 = vand.u32 2147483648, %v1175_v58  ;;  %vm1181_vm13 = vweird.f32 %v1175_v58  ;;  %v1185_v8 = vand.u32 2147483647, %v1175_v58 }
0x10b5   :  { %v1188_v13 = vor.u32 1.1754944e-38, %v1187_v4  ;;  %vm1186_vm15 = vcmp.eq.f32.partialorder %v1185_v8, 8.507059e+37 }
0x10b8   :  { %1225 = vrot.lane.b32.xlu2 %v2649_v63, %s2342_s4 }
0x10b9   :  { %v2225_v45 = vpop.eup %2224 }
0x10ba   :  { %v1177_v59 = vmul.f32 %v2225_v45, %v1175_v58  ;;  %vm1182_vm12 = vweird.f32 %v2225_v45 }
0x10bb   :  { %vm1183_vm14 = vmor %vm1181_vm13, %vm1182_vm12 }
0x10bc   :  { %v1178_v60 = vsub.f32 1.0, %v1177_v59 }
0x10be   :  { %v1179_v61 = vmul.f32 %v2225_v45, %v1178_v60  ;;  %v2894_v60 = vld [vmem:[%s3061_s8] sm:$0x3] }
0x10c0   :  { %v1180_v0 = vadd.f32 %v2225_v45, %v1179_v61  ;;  %v1297_v61 = vperm.slane %v2894_v60, 0 }
0x10c2   :  { %v1184_v12 = vsel %vm1183_vm14, %v2225_v45, %v1180_v0 }
0x10c3   :  { %v1189_v36 = vsel %vm1186_vm15, %v1188_v13, %v1184_v12 }
0x10c4   :  { %v1195_v25 = vmul.f32 %v1193_v24, %v1189_v36 }
0x1102   :  { %v1198_v63 = vpop.permute.xlu2 %1197 }
0x1103   :  { %v1200_v37 = vmul.f32 %v1198_v63, %v1189_v36 }
0x1105   :  { %1202 = vrot.lane.b32.xlu1 %v1200_v37, %s2342_s4 }
0x110a   :  { %v1002_v42 = vpop.permute.xlu2 %1001 }
0x110b   :  { %v2764_v62 = vmul.f32 %v1002_v42, %v982_v18  ;;  %v1276_v18 = vld [vmem:[%s3058_s5 + $0x8] sm:$0xff] }
0x110d   :  { %v1076_v23 = vrot.slane %v2764_v62, 4 }
0x110f   :  { %1077 = vrot.lane.b32.xlu1 %v1076_v23, %s2342_s4 }
0x1117   :  { %1221 = vrot.lane.b32.xlu1 %v2746_v26, %s2341_s26 }
0x111f   :  { %1232 = vrot.lane.b32.xlu1 %v2679_v52, %s2342_s4 }
0x1177   :  { %v1203_v11 = vpop.permute.xlu1 %1202 }
0x1178   :  { %v1205_v17 = vadd.f32 %v1203_v11, %v1195_v25 }
0x117a   :  { %2226 = vtanh.f32 %v1205_v17 }
0x1180   :  { %v2227_v27 = vpop.eup %2226 }
0x1181   :  { %1208 = vrot.lane.b32.xlu0 %v2227_v27, %s2341_s26  ;;  %v1078_v48 = vpop.permute.xlu1 %1077 }
0x1182   :  { %2075 = vmatmul.msk.f32.vlgmr.msra.gmra.mxu2 %vm69_vm0, %v1078_v48 }
0x1189   :  { %1218 = vrot.lane.b32.xlu0 %v2613_v57, %s2342_s4  ;;  %v1288_v57 = vld [vmem:[%s3058_s5 + $0x68] sm:$0xff]  ;;  %v1222_v30 = vpop.permute.xlu1 %1221 }
0x118a   :  { %1340 = vmatpush.msra.mxu1 %v1288_v57 }
0x118c   :  { %1341 = vmatpush.msra.mxu1 %v1286_v29 }
0x118e   :  { %1342 = vmatpush.msra.mxu1 %v1284_v32 }
0x1190   :  { %1343 = vmatpush.msra.mxu1 %v1282_v5 }
0x1191   :  { %1228 = vrot.lane.b32.xlu0 %v2720_v40, %s2341_s26  ;;  %v2795_v40 = vld [vmem:[%s3059_s6 + $0x18] sm:$0xff]  ;;  %v1233_v46 = vpop.permute.xlu1 %1232 }
0x1192   :  { %1365 = vmatpush.msrb.mxu2 %v2795_v40  ;;  %1428 = vmatpush.msrb.mxu3 %v2795_v40 }
0x1193   :  { %1344 = vmatpush.msra.mxu1 %v1280_v34  ;;  %1774 = vmatpush.msrb.mxu0 %v2795_v40 }
0x1194   :  { %1366 = vmatpush.msrb.mxu2 %v2810_v31  ;;  %1429 = vmatpush.msrb.mxu3 %v2810_v31 }
0x1195   :  { %1345 = vmatpush.msra.mxu1 %v1278_v39  ;;  %1775 = vmatpush.msrb.mxu0 %v2810_v31 }
0x1197   :  { %1346 = vmatpush.msra.mxu1 %v1276_v18 }
0x1199   :  { %1844 = vmatpush.msrb.mxu1 %v2795_v40 }
0x119b   :  { %1845 = vmatpush.msrb.mxu1 %v2810_v31 }
0x11f3   :  { %v1209_v26 = vpop.permute.xlu0 %1208 }
0x11f4   :  { %v1211_v52 = vmul.f32 %v1209_v26, %v1189_v36 }
0x11f6   :  { %1214 = vrot.lane.b32.xlu2 %v1211_v52, %s2341_s26 }
0x11fb   :  { %v1219_v44 = vpop.permute.xlu0 %1218 }
0x11fc   :  { %v1224_v22 = vsel %vm69_vm0, %v1219_v44, %v1222_v30 }
0x11fe   :  { %1235 = vrot.lane.b32.xlu2 %v2689_v20, %s2341_s26  ;;  %v2822_v20 = vld [vmem:[%s3059_s6 + $0x8] sm:$0xff] }
0x11ff   :  { %1367 = vmatpush.msrb.mxu2 %v2822_v20  ;;  %1430 = vmatpush.msrb.mxu3 %v2822_v20 }
0x1200   :  { %1776 = vmatpush.msrb.mxu0 %v2822_v20  ;;  %1846 = vmatpush.msrb.mxu1 %v2822_v20 }
0x1201   :  { %1368 = vmatpush.msrb.mxu2 %v2833_v7  ;;  %1431 = vmatpush.msrb.mxu3 %v2833_v7 }
0x1202   :  { %1369 = vmatmul.f32.vlgmr.msrb.gmra.mxu2 %v2340_v9  ;;  %1777 = vmatpush.msrb.mxu0 %v2833_v7  ;;  %v1226_v9 = vpop.permute.xlu2 %1225 }
0x1203   :  { %1498 = vmatpush.msra.mxu2 %v2795_v40  ;;  %1568 = vmatpush.msra.mxu3 %v2795_v40  ;;  %v1229_v51 = vpop.permute.xlu0 %1228 }
0x1204   :  { %1847 = vmatpush.msrb.mxu1 %v2833_v7  ;;  %v1231_v43 = vsel %vm69_vm0, %v1226_v9, %v1229_v51 }
0x1205   :  { %1499 = vmatpush.msra.mxu2 %v2810_v31  ;;  %1569 = vmatpush.msra.mxu3 %v2810_v31 }
0x1207   :  { %1500 = vmatpush.msra.mxu2 %v2822_v20  ;;  %1570 = vmatpush.msra.mxu3 %v2822_v20 }
0x1209   :  { %1501 = vmatpush.msra.mxu2 %v2833_v7  ;;  %1571 = vmatpush.msra.mxu3 %v2833_v7 }
0x120b   :  { %1638 = vmatpush.msrb.mxu2 %v2795_v40 }
0x120d   :  { %1639 = vmatpush.msrb.mxu2 %v2810_v31 }
0x120f   :  { %1640 = vmatpush.msrb.mxu2 %v2822_v20 }
0x1211   :  { %1641 = vmatpush.msrb.mxu2 %v2833_v7 }
0x1250   :  { %v1215_v47 = vpop.permute.xlu2 %1214 }
0x1251   :  { %v1217_v49 = vsel %vm69_vm0, %v2584_v53, %v1215_v47  ;;  %v2889_v53 = vpop.f32.mrf.mxu2 }
0x1252   :  { %v1267_v38 = vsel %vm1266_vm1, %v1217_v49, %v1224_v22 }
0x1253   :  { %v1269_v58 = vsel %vm1268_vm2, %v1267_v38, %v1231_v43 }
0x1258   :  { %v1236_v14 = vpop.permute.xlu2 %1235 }
0x1259   :  { %v1238_v45 = vsel %vm69_vm0, %v1233_v46, %v1236_v14 }
0x125a   :  { %v1271_v59 = vsel %vm1270_vm3, %v1269_v58, %v1238_v45 }
0x125b   :  { %2079 = vmatmul.msk.f32.vlgmr.msra.gmra.mxu0 %vm1301_vm4, %v1271_v59  ;;  %2081 = vmatmul.msk.f32.vlgmr.msra.gmra.mxu1 %vm1301_vm4, %v1271_v59 }
0x1285   :  { %v1370_v0 = vpop.f32.mrf.mxu2 }
0x12d8   :  { %v1325_v4 = vpop.f32.mrf.mxu0  ;;  %v1348_v8 = vpop.f32.mrf.mxu1 }
0x12d9   :  { %v2899_v12 = vadd.f32 %v1325_v4, %v1297_v61 }
0x12db   :  { %v1373_v13 = vadd.f32 %v1370_v0, %v2899_v12 }
0x12dd   :  { %2228 = vtanh.f32 %v1373_v13  ;;  %v2083_v63 = vmul.f32 -1.442695, %v1373_v13 }
0x12df   :  { %2230 = vpow2.f32 %v2083_v63 }
0x12e3   :  { %v2229_v36 = vpop.eup %2228 }
0x12e4   :  { %1396 = vrot.lane.b32.xlu0 %v2229_v36, %s2341_s26 }
0x12e5   :  { %v2231_v37 = vpop.eup %2230 }
0x12e6   :  { %v1377_v42 = vadd.f32 1.0, %v2231_v37 }
0x12e8   :  { %2232 = vrcp.f32 %v1377_v42  ;;  %v1389_v27 = vand.u32 2147483648, %v1377_v42  ;;  %vm1383_vm6 = vweird.f32 %v1377_v42  ;;  %v1387_v48 = vand.u32 2147483647, %v1377_v42 }
0x12ea   :  { %v1390_v52 = vor.u32 1.1754944e-38, %v1389_v27  ;;  %vm1388_vm8 = vcmp.eq.f32.partialorder %v1387_v48, 8.507059e+37 }
0x12ee   :  { %v2233_v23 = vpop.eup %2232 }
0x12ef   :  { %v1379_v24 = vmul.f32 %v2233_v23, %v1377_v42  ;;  %vm1384_vm5 = vweird.f32 %v2233_v23 }
0x12f0   :  { %vm1385_vm7 = vmor %vm1383_vm6, %vm1384_vm5 }
0x12f1   :  { %v1380_v25 = vsub.f32 1.0, %v1379_v24 }
0x12f3   :  { %v1381_v11 = vmul.f32 %v2233_v23, %v1380_v25 }
0x12f5   :  { %v1382_v17 = vadd.f32 %v2233_v23, %v1381_v11 }
0x12f7   :  { %v1386_v26 = vsel %vm1385_vm7, %v2233_v23, %v1382_v17 }
0x12f8   :  { %v1391_v6 = vsel %vm1388_vm8, %v1390_v52, %v1386_v26 }
0x12f9   :  { %v1394_v57 = vmul.f32 0.0, %v1391_v6 }
0x1356   :  { %v1397_v21 = vpop.permute.xlu0 %1396 }
0x1357   :  { %v1399_v50 = vmul.f32 %v1397_v21, %v1391_v6 }
0x1359   :  { %1401 = vrot.lane.b32.xlu1 %v1399_v50, %s2342_s4 }
0x13cb   :  { %v1402_v28 = vpop.permute.xlu1 %1401 }
0x13cc   :  { %v1404_v29 = vadd.f32 %v1402_v28, %v1394_v57 }
0x13ce   :  { %2234 = vtanh.f32 %v1404_v29  ;;  %v1461_v43 = vrot.slane %v1404_v29, 6 }
0x13d4   :  { %v2235_v2 = vpop.eup %2234 }
0x13d5   :  { %1407 = vrot.lane.b32.xlu2 %v2235_v2, %s2341_s26 }
0x142f   :  { %v1408_v32 = vpop.permute.xlu2 %1407 }
0x1430   :  { %v1410_v3 = vmul.f32 %v1408_v32, %v1391_v6 }
0x1432   :  { %1412 = vrot.lane.b32.xlu0 %v1410_v3, %s2342_s4 }
0x14a4   :  { %v1413_v5 = vpop.permute.xlu0 %1412 }
0x14a5   :  { %2084 = vmatmul.msk.f32.vlgmr.msrb.gmra.mxu3 %vm69_vm0, %v1413_v5 }
0x14a6   :  { %1704 = vmatpush.msrb.mxu3 %v2795_v40 }
0x14a8   :  { %1705 = vmatpush.msrb.mxu3 %v2810_v31 }
0x14aa   :  { %1706 = vmatpush.msrb.mxu3 %v2822_v20 }
0x14ac   :  { %1707 = vmatpush.msrb.mxu3 %v2833_v7 }
0x1528   :  { %v1433_v33 = vpop.f32.mrf.mxu3 }
0x1529   :  { %v1437_v34 = vrot.slane %v1433_v33, 6  ;;  %v1102_v33 = vrot.slane %v2889_v53, 2 }
0x152b   :  { %v1439_v35 = vadd.f32 %v1437_v34, %v2899_v12  ;;  %v1104_v34 = vadd.f32 %v1102_v33, %v2696_v10 }
0x152d   :  { %2236 = vtanh.f32 %v1439_v35  ;;  %v2085_v41 = vmul.f32 -1.442695, %v1439_v35  ;;  %v2076_v53 = vmul.f32 -1.442695, %v1104_v34 }
0x152f   :  { %2238 = vpow2.f32 %v2085_v41 }
0x1533   :  { %v2237_v39 = vpop.eup %2236 }
0x1534   :  { %1465 = vrot.lane.b32.xlu1 %v2237_v39, %s2341_s26 }
0x1535   :  { %v2239_v18 = vpop.eup %2238 }
0x1536   :  { %v1443_v9 = vadd.f32 1.0, %v2239_v18 }
0x1538   :  { %2240 = vrcp.f32 %v1443_v9  ;;  %v1455_v7 = vand.u32 2147483648, %v1443_v9  ;;  %vm1449_vm10 = vweird.f32 %v1443_v9  ;;  %v1453_v47 = vand.u32 2147483647, %v1443_v9 }
0x153a   :  { %v1456_v22 = vor.u32 1.1754944e-38, %v1455_v7  ;;  %vm1454_vm12 = vcmp.eq.f32.partialorder %v1453_v47, 8.507059e+37 }
0x153e   :  { %v2241_v40 = vpop.eup %2240 }
0x153f   :  { %v1445_v44 = vmul.f32 %v2241_v40, %v1443_v9  ;;  %vm1450_vm9 = vweird.f32 %v2241_v40 }
0x1540   :  { %vm1451_vm11 = vmor %vm1449_vm10, %vm1450_vm9 }
0x1541   :  { %v1446_v31 = vsub.f32 1.0, %v1445_v44 }
0x1543   :  { %v1447_v30 = vmul.f32 %v2241_v40, %v1446_v31 }
0x1545   :  { %v1448_v20 = vadd.f32 %v2241_v40, %v1447_v30 }
0x1547   :  { %v1452_v49 = vsel %vm1451_vm11, %v2241_v40, %v1448_v20 }
0x1548   :  { %v1457_v38 = vsel %vm1454_vm12, %v1456_v22, %v1452_v49 }
0x1549   :  { %v1463_v14 = vmul.f32 %v1461_v43, %v1457_v38 }
0x15a6   :  { %v1466_v51 = vpop.permute.xlu1 %1465 }
0x15a7   :  { %v1468_v46 = vmul.f32 %v1466_v51, %v1457_v38 }
0x15a9   :  { %1470 = vrot.lane.b32.xlu2 %v1468_v46, %s2342_s4 }
0x1603   :  { %v1471_v58 = vpop.permute.xlu2 %1470 }
0x1604   :  { %v1473_v45 = vadd.f32 %v1471_v58, %v1463_v14 }
0x1606   :  { %2242 = vtanh.f32 %v1473_v45  ;;  %v1531_v2 = vrot.slane %v1473_v45, 6 }
0x160c   :  { %v2243_v59 = vpop.eup %2242 }
0x160d   :  { %1476 = vrot.lane.b32.xlu0 %v2243_v59, %s2341_s26 }
0x167f   :  { %v1477_v0 = vpop.permute.xlu0 %1476 }
0x1680   :  { %v1479_v4 = vmul.f32 %v1477_v0, %v1457_v38 }
0x1682   :  { %v1481_v8 = vrot.slane %v1479_v4, 2 }
0x1684   :  { %1482 = vrot.lane.b32.xlu1 %v1481_v8, %s2342_s4 }
0x16f6   :  { %v1483_v13 = vpop.permute.xlu1 %1482 }
0x16f7   :  { %2086 = vmatmul.msk.f32.vlgmr.msra.gmra.mxu2 %vm69_vm0, %v1483_v13 }
0x177a   :  { %v1503_v36 = vpop.f32.mrf.mxu2 }
0x177b   :  { %v1507_v63 = vrot.slane %v1503_v36, 4 }
0x177d   :  { %v1509_v37 = vadd.f32 %v1507_v63, %v2899_v12 }
0x177f   :  { %2244 = vtanh.f32 %v1509_v37  ;;  %v2087_v23 = vmul.f32 -1.442695, %v1509_v37 }
0x1781   :  { %2246 = vpow2.f32 %v2087_v23 }
0x1785   :  { %v2245_v42 = vpop.eup %2244 }
0x1786   :  { %1535 = vrot.lane.b32.xlu2 %v2245_v42, %s2341_s26 }
0x1787   :  { %v2247_v24 = vpop.eup %2246 }
0x1788   :  { %v1513_v25 = vadd.f32 1.0, %v2247_v24 }
0x178a   :  { %2248 = vrcp.f32 %v1513_v25  ;;  %v1525_v52 = vand.u32 2147483648, %v1513_v25  ;;  %vm1519_vm14 = vweird.f32 %v1513_v25  ;;  %v1523_v21 = vand.u32 2147483647, %v1513_v25 }
0x178c   :  { %v1526_v50 = vor.u32 1.1754944e-38, %v1525_v52  ;;  %vm1524_vm5 = vcmp.eq.f32.partialorder %v1523_v21, 8.507059e+37 }
0x1790   :  { %v2249_v11 = vpop.eup %2248 }
0x1791   :  { %v1515_v17 = vmul.f32 %v2249_v11, %v1513_v25  ;;  %vm1520_vm13 = vweird.f32 %v2249_v11 }
0x1792   :  { %vm1521_vm15 = vmor %vm1519_vm14, %vm1520_vm13 }
0x1793   :  { %v1516_v27 = vsub.f32 1.0, %v1515_v17 }
0x1795   :  { %v1517_v48 = vmul.f32 %v2249_v11, %v1516_v27 }
0x1797   :  { %v1518_v26 = vadd.f32 %v2249_v11, %v1517_v48  ;;  %v1126_v48 = vrot.slane %v2756_v55, 6 }
0x1799   :  { %v1522_v6 = vsel %vm1521_vm15, %v2249_v11, %v1518_v26 }
0x179a   :  { %v1527_v28 = vsel %vm1524_vm5, %v1526_v50, %v1522_v6 }
0x179b   :  { %v1533_v32 = vmul.f32 %v1531_v2, %v1527_v28 }
0x17e0   :  { %v1536_v57 = vpop.permute.xlu2 %1535 }
0x17e1   :  { %v1538_v29 = vmul.f32 %v1536_v57, %v1527_v28 }
0x17e3   :  { %1540 = vrot.lane.b32.xlu0 %v1538_v29, %s2342_s4 }
0x1855   :  { %v1541_v3 = vpop.permute.xlu0 %1540 }
0x1856   :  { %v2920_v5 = vadd.f32 %v1541_v3, %v1533_v32 }
0x1858   :  { %2250 = vtanh.f32 %v2920_v5  ;;  %v1601_v50 = vrot.slane %v2920_v5, 6 }
0x1859   :  { %2252 = vtanh.f32 %v1104_v34 }
0x185a   :  { %2254 = vpow2.f32 %v2076_v53 }
0x185e   :  { %v2251_v35 = vpop.eup %2250 }
0x185f   :  { %1546 = vrot.lane.b32.xlu1 %v2251_v35, %s2341_s26  ;;  %v2253_v39 = vpop.eup %2252 }
0x1860   :  { %v2255_v44 = vpop.eup %2254 }
0x1861   :  { %v1108_v31 = vadd.f32 1.0, %v2255_v44 }
0x1863   :  { %2256 = vrcp.f32 %v1108_v31  ;;  %v1120_v46 = vand.u32 2147483648, %v1108_v31  ;;  %vm1114_vm7 = vweird.f32 %v1108_v31  ;;  %v1118_v43 = vand.u32 2147483647, %v1108_v31 }
0x1865   :  { %v1121_v58 = vor.u32 1.1754944e-38, %v1120_v46  ;;  %vm1119_vm9 = vcmp.eq.f32.partialorder %v1118_v43, 8.507059e+37 }
0x1867   :  { %1130 = vrot.lane.b32.xlu1 %v2253_v39, %s2341_s26 }
0x1869   :  { %v2257_v10 = vpop.eup %2256 }
0x186a   :  { %v1110_v30 = vmul.f32 %v2257_v10, %v1108_v31  ;;  %vm1115_vm6 = vweird.f32 %v2257_v10 }
0x186b   :  { %vm1116_vm8 = vmor %vm1114_vm7, %vm1115_vm6 }
0x186c   :  { %v1111_v47 = vsub.f32 1.0, %v1110_v30 }
0x186e   :  { %v1112_v22 = vmul.f32 %v2257_v10, %v1111_v47 }
0x1870   :  { %v1113_v51 = vadd.f32 %v2257_v10, %v1112_v22 }
0x1872   :  { %v1117_v14 = vsel %vm1116_vm8, %v2257_v10, %v1113_v51 }
0x1873   :  { %v1122_v59 = vsel %vm1119_vm9, %v1121_v58, %v1117_v14 }
0x1874   :  { %v1128_v26 = vmul.f32 %v1126_v48, %v1122_v59 }
0x18d1   :  { %v1547_v41 = vpop.permute.xlu1 %1546 }
0x18d2   :  { %v1549_v18 = vmul.f32 %v1547_v41, %v1527_v28 }
0x18d4   :  { %v1551_v9 = vrot.slane %v1549_v18, 4 }
0x18d6   :  { %1552 = vrot.lane.b32.xlu2 %v1551_v9, %s2342_s4 }
0x18d9   :  { %v1131_v45 = vpop.permute.xlu1 %1130 }
0x18da   :  { %v1133_v0 = vmul.f32 %v1131_v45, %v1122_v59 }
0x1930   :  { %v1553_v40 = vpop.permute.xlu2 %1552 }
0x1931   :  { %2088 = vmatmul.msk.f32.vlgmr.msra.gmra.mxu3 %vm69_vm0, %v1553_v40 }
0x19b4   :  { %v1573_v20 = vpop.f32.mrf.mxu3 }
0x19b5   :  { %v1577_v7 = vrot.slane %v1573_v20, 2 }
0x19b7   :  { %v1579_v49 = vadd.f32 %v1577_v7, %v2899_v12 }
0x19b9   :  { %2258 = vtanh.f32 %v1579_v49  ;;  %v2089_v12 = vmul.f32 -1.442695, %v1579_v49 }
0x19bb   :  { %2260 = vpow2.f32 %v2089_v12 }
0x19bf   :  { %v2259_v38 = vpop.eup %2258 }
0x19c0   :  { %1605 = vrot.lane.b32.xlu0 %v2259_v38, %s2341_s26 }
0x19c1   :  { %v2261_v4 = vpop.eup %2260 }
0x19c2   :  { %v1583_v8 = vadd.f32 1.0, %v2261_v4 }
0x19c4   :  { %2262 = vrcp.f32 %v1583_v8  ;;  %v1595_v23 = vand.u32 2147483648, %v1583_v8  ;;  %vm1589_vm11 = vweird.f32 %v1583_v8  ;;  %v1593_v24 = vand.u32 2147483647, %v1583_v8 }
0x19c6   :  { %v1596_v11 = vor.u32 1.1754944e-38, %v1595_v23  ;;  %vm1594_vm13 = vcmp.eq.f32.partialorder %v1593_v24, 8.507059e+37 }
0x19c8   :  { %1135 = vrot.lane.b32.xlu0 %v1133_v0, %s2342_s4 }
0x19ca   :  { %v2263_v13 = vpop.eup %2262 }
0x19cb   :  { %v1585_v36 = vmul.f32 %v2263_v13, %v1583_v8  ;;  %vm1590_vm10 = vweird.f32 %v2263_v13 }
0x19cc   :  { %vm1591_vm12 = vmor %vm1589_vm11, %vm1590_vm10 }
0x19cd   :  { %v1586_v63 = vsub.f32 1.0, %v1585_v36 }
0x19cf   :  { %v1587_v37 = vmul.f32 %v2263_v13, %v1586_v63 }
0x19d0   :  { %1240 = vrot.lane.b32.xlu0 %v2663_v15, %s2341_s26 }
0x19d1   :  { %v1588_v42 = vadd.f32 %v2263_v13, %v1587_v37 }
0x19d3   :  { %v1592_v25 = vsel %vm1591_vm12, %v2263_v13, %v1588_v42 }
0x19d4   :  { %v1597_v15 = vsel %vm1594_vm13, %v1596_v11, %v1592_v25 }
0x19d5   :  { %v1603_v57 = vmul.f32 %v1601_v50, %v1597_v15 }
0x1a32   :  { %v1606_v17 = vpop.permute.xlu0 %1605 }
0x1a33   :  { %v1608_v27 = vmul.f32 %v1606_v17, %v1597_v15 }
0x1a35   :  { %1610 = vrot.lane.b32.xlu2 %v1608_v27, %s2342_s4 }
0x1a3a   :  { %v1136_v52 = vpop.permute.xlu0 %1135 }
0x1a3b   :  { %v1138_v21 = vadd.f32 %v1136_v52, %v1128_v26 }
0x1a3d   :  { %2264 = vtanh.f32 %v1138_v21 }
0x1a42   :  { %v1241_v33 = vpop.permute.xlu0 %1240 }
0x1a43   :  { %v2265_v6 = vpop.eup %2264  ;;  %v1243_v41 = vsel %vm69_vm0, %v2715_v19, %v1241_v33 }
0x1a44   :  { %1141 = vrot.lane.b32.xlu2 %v2265_v6, %s2341_s26 }
0x1a4c   :  { %1247 = vrot.lane.b32.xlu2 %v2627_v1, %s2341_s26 }
0x1a54   :  { %1254 = vrot.lane.b32.xlu2 %v2593_v56, %s2341_s26 }
0x1a8f   :  { %v1611_v28 = vpop.permute.xlu2 %1610 }
0x1a90   :  { %v2942_v29 = vadd.f32 %v1611_v28, %v1603_v57 }
0x1a92   :  { %2266 = vtanh.f32 %v2942_v29  ;;  %v1668_v8 = vrot.slane %v2942_v29, 6 }
0x1a98   :  { %v2267_v55 = vpop.eup %2266 }
0x1a99   :  { %1616 = vrot.lane.b32.xlu1 %v2267_v55, %s2341_s26 }
0x1a9e   :  { %v1142_v32 = vpop.permute.xlu2 %1141 }
0x1a9f   :  { %v1144_v3 = vmul.f32 %v1142_v32, %v1122_v59 }
0x1aa1   :  { %1244 = vrot.lane.b32.xlu1 %v2736_v16, %s2342_s4 }
0x1aa6   :  { %v1248_v34 = vpop.permute.xlu2 %1247 }
0x1aa9   :  { %1251 = vrot.lane.b32.xlu1 %v2764_v62, %s2342_s4 }
0x1aae   :  { %v1255_v62 = vpop.permute.xlu2 %1254 }
0x1ab1   :  { %1262 = vrot.lane.b32.xlu1 %v2561_v54, %s2341_s26 }
0x1b0b   :  { %v1617_v56 = vpop.permute.xlu1 %1616 }
0x1b0c   :  { %v1619_v1 = vmul.f32 %v1617_v56, %v1597_v15 }
0x1b0e   :  { %v1621_v2 = vrot.slane %v1619_v1, 6 }
0x1b10   :  { %1622 = vrot.lane.b32.xlu0 %v1621_v2, %s2342_s4 }
0x1b13   :  { %v1245_v5 = vpop.permute.xlu1 %1244 }
0x1b14   :  { %v1250_v39 = vsel %vm69_vm0, %v1245_v5, %v1248_v34 }
0x1b15   :  { %v1272_v18 = vsel %vm1266_vm1, %v1243_v41, %v1250_v39 }
0x1b18   :  { %1259 = vrot.lane.b32.xlu0 %v1144_v3, %s2342_s4 }
0x1b1b   :  { %v1252_v35 = vpop.permute.xlu1 %1251 }
0x1b1c   :  { %v1257_v54 = vsel %vm69_vm0, %v1252_v35, %v1255_v62 }
0x1b1d   :  { %v1273_v44 = vsel %vm1268_vm2, %v1272_v18, %v1257_v54 }
0x1b23   :  { %v1263_v9 = vpop.permute.xlu1 %1262 }
0x1b82   :  { %v1623_v16 = vpop.permute.xlu0 %1622 }
0x1b83   :  { %2090 = vmatmul.msk.f32.vlgmr.msrb.gmra.mxu2 %vm69_vm0, %v1623_v16 }
0x1b8a   :  { %v1260_v40 = vpop.permute.xlu0 %1259 }
0x1b8b   :  { %v1265_v53 = vsel %vm69_vm0, %v1260_v40, %v1263_v9 }
0x1b8c   :  { %v1274_v31 = vsel %vm1270_vm3, %v1273_v44, %v1265_v53 }
0x1b8d   :  { %2080 = vmatmul.msk.f32.gmra.mxu0 %vm1301_vm4, %v1274_v31  ;;  %2082 = vmatmul.msk.f32.gmra.mxu1 %vm1301_vm4, %v1274_v31 }
0x1c06   :  { %v1643_v19 = vpop.f32.mrf.mxu2 }
0x1c0a   :  { %v1328_v10 = vpop.f32.mrf.mxu0 }
0x1c0b   :  { %v2967_v30 = vadd.f32 %v1328_v10, %v1297_v61 }
0x1c0d   :  { %v1646_v20 = vadd.f32 %v1643_v19, %v2967_v30 }
0x1c0f   :  { %2268 = vtanh.f32 %v1646_v20  ;;  %v2091_v47 = vmul.f32 -1.442695, %v1646_v20 }
0x1c11   :  { %2270 = vpow2.f32 %v2091_v47 }
0x1c15   :  { %v2269_v7 = vpop.eup %2268 }
0x1c16   :  { %1672 = vrot.lane.b32.xlu2 %v2269_v7, %s2341_s26 }
0x1c17   :  { %v2271_v49 = vpop.eup %2270 }
0x1c18   :  { %v1650_v22 = vadd.f32 1.0, %v2271_v49 }
0x1c1a   :  { %2272 = vrcp.f32 %v1650_v22  ;;  %v1662_v61 = vand.u32 2147483648, %v1650_v22  ;;  %vm1656_vm2 = vweird.f32 %v1650_v22  ;;  %v1660_v58 = vand.u32 2147483647, %v1650_v22 }
0x1c1c   :  { %v1663_v59 = vor.u32 1.1754944e-38, %v1662_v61  ;;  %vm1661_vm14 = vcmp.eq.f32.partialorder %v1660_v58, 8.507059e+37 }
0x1c20   :  { %v2273_v51 = vpop.eup %2272 }
0x1c21   :  { %v1652_v38 = vmul.f32 %v2273_v51, %v1650_v22  ;;  %vm1657_vm1 = vweird.f32 %v2273_v51 }
0x1c22   :  { %vm1658_vm3 = vmor %vm1656_vm2, %vm1657_vm1 }
0x1c23   :  { %v1653_v46 = vsub.f32 1.0, %v1652_v38 }
0x1c25   :  { %v1654_v43 = vmul.f32 %v2273_v51, %v1653_v46 }
0x1c27   :  { %v1655_v14 = vadd.f32 %v2273_v51, %v1654_v43 }
0x1c29   :  { %v1659_v45 = vsel %vm1658_vm3, %v2273_v51, %v1655_v14 }
0x1c2a   :  { %v1664_v12 = vsel %vm1661_vm14, %v1663_v59, %v1659_v45 }
0x1c2b   :  { %v1670_v13 = vmul.f32 %v1668_v8, %v1664_v12 }
0x1c70   :  { %v1673_v0 = vpop.permute.xlu2 %1672 }
0x1c71   :  { %v1675_v4 = vmul.f32 %v1673_v0, %v1664_v12  ;;  %v1298_v0 = vperm.slane %v2894_v60, 1 }
0x1c73   :  { %1677 = vrot.lane.b32.xlu0 %v1675_v4, %s2342_s4 }
0x1ce5   :  { %v1678_v36 = vpop.permute.xlu0 %1677 }
0x1ce6   :  { %v1680_v63 = vadd.f32 %v1678_v36, %v1670_v13 }
0x1ce8   :  { %2274 = vtanh.f32 %v1680_v63  ;;  %v1737_v3 = vrot.slane %v1680_v63, 6 }
0x1cee   :  { %v2275_v37 = vpop.eup %2274 }
0x1cef   :  { %1683 = vrot.lane.b32.xlu1 %v2275_v37, %s2341_s26 }
0x1d61   :  { %v1684_v42 = vpop.permute.xlu1 %1683 }
0x1d62   :  { %v1686_v23 = vmul.f32 %v1684_v42, %v1664_v12  ;;  %v1350_v12 = vpop.f32.mrf.mxu1 }
0x1d63   :  { %v1351_v4 = vadd.f32 %v1350_v12, %v1298_v0 }
0x1d64   :  { %1688 = vrot.lane.b32.xlu2 %v1686_v23, %s2342_s4 }
0x1d65   :  { %v2098_v60 = vmul.f32 -1.442695, %v1351_v4 }
0x1dbe   :  { %v1689_v24 = vpop.permute.xlu2 %1688 }
0x1dbf   :  { %2092 = vmatmul.msk.f32.vlgmr.msrb.gmra.mxu3 %vm69_vm0, %v1689_v24 }
0x1e42   :  { %v1709_v25 = vpop.f32.mrf.mxu3 }
0x1e43   :  { %v1713_v11 = vrot.slane %v1709_v25, 6 }
0x1e45   :  { %v1715_v17 = vadd.f32 %v1713_v11, %v2967_v30 }
0x1e47   :  { %2276 = vtanh.f32 %v1715_v17  ;;  %v2093_v27 = vmul.f32 -1.442695, %v1715_v17 }
0x1e49   :  { %2278 = vpow2.f32 %v2093_v27 }
0x1e4d   :  { %v2277_v15 = vpop.eup %2276 }
0x1e4e   :  { %1741 = vrot.lane.b32.xlu0 %v2277_v15, %s2341_s26 }
0x1e4f   :  { %v2279_v48 = vpop.eup %2278 }
0x1e50   :  { %v1719_v26 = vadd.f32 1.0, %v2279_v48 }
0x1e52   :  { %2280 = vrcp.f32 %v1719_v26  ;;  %v1731_v28 = vand.u32 2147483648, %v1719_v26  ;;  %vm1725_vm5 = vweird.f32 %v1719_v26  ;;  %v1729_v29 = vand.u32 2147483647, %v1719_v26 }
0x1e54   :  { %v1732_v56 = vor.u32 1.1754944e-38, %v1731_v28  ;;  %vm1730_vm7 = vcmp.eq.f32.partialorder %v1729_v29, 8.507059e+37 }
0x1e58   :  { %v2281_v52 = vpop.eup %2280 }
0x1e59   :  { %v1721_v21 = vmul.f32 %v2281_v52, %v1719_v26  ;;  %vm1726_vm15 = vweird.f32 %v2281_v52 }
0x1e5a   :  { %vm1727_vm6 = vmor %vm1725_vm5, %vm1726_vm15 }
0x1e5b   :  { %v1722_v6 = vsub.f32 1.0, %v1721_v21 }
0x1e5d   :  { %v1723_v50 = vmul.f32 %v2281_v52, %v1722_v6 }
0x1e5f   :  { %v1724_v57 = vadd.f32 %v2281_v52, %v1723_v50 }
0x1e61   :  { %v1728_v55 = vsel %vm1727_vm6, %v2281_v52, %v1724_v57  ;;  %vm2016_vm6 = vcmask 25600  }
0x1e62   :  { %v1733_v2 = vsel %vm1730_vm7, %v1732_v56, %v1728_v55 }
0x1e63   :  { %v1739_v5 = vmul.f32 %v1737_v3, %v1733_v2 }
0x1ec0   :  { %v1742_v1 = vpop.permute.xlu0 %1741 }
0x1ec1   :  { %v1744_v32 = vmul.f32 %v1742_v1, %v1733_v2 }
0x1ec3   :  { %1746 = vrot.lane.b32.xlu1 %v1744_v32, %s2342_s4 }
0x1f35   :  { %v1747_v33 = vpop.permute.xlu1 %1746 }
0x1f36   :  { %v1749_v34 = vadd.f32 %v1747_v33, %v1739_v5 }
0x1f38   :  { %2282 = vtanh.f32 %v1749_v34  ;;  %v1807_v61 = vrot.slane %v1749_v34, 6 }
0x1f3e   :  { %v2283_v35 = vpop.eup %2282 }
0x1f3f   :  { %1752 = vrot.lane.b32.xlu2 %v2283_v35, %s2341_s26 }
0x1f99   :  { %v1753_v16 = vpop.permute.xlu2 %1752 }
0x1f9a   :  { %v1755_v62 = vmul.f32 %v1753_v16, %v1733_v2 }
0x1f9c   :  { %v1757_v39 = vrot.slane %v1755_v62, 2 }
0x1f9e   :  { %1758 = vrot.lane.b32.xlu0 %v1757_v39, %s2342_s4 }
0x2010   :  { %v1759_v54 = vpop.permute.xlu0 %1758 }
0x2011   :  { %2094 = vmatmul.msk.f32.vlgmr.msrb.gmra.mxu0 %vm69_vm0, %v1759_v54 }
0x208e   :  { %v1779_v41 = vpop.f32.mrf.mxu0 }
0x208f   :  { %v1783_v18 = vrot.slane %v1779_v41, 4 }
0x2091   :  { %v1785_v9 = vadd.f32 %v1783_v18, %v2967_v30 }
0x2093   :  { %2284 = vtanh.f32 %v1785_v9  ;;  %v2095_v53 = vmul.f32 -1.442695, %v1785_v9 }
0x2095   :  { %2286 = vpow2.f32 %v2095_v53 }
0x2099   :  { %v2285_v40 = vpop.eup %2284 }
0x209a   :  { %1811 = vrot.lane.b32.xlu1 %v2285_v40, %s2341_s26 }
0x209b   :  { %v2287_v44 = vpop.eup %2286 }
0x209c   :  { %v1789_v31 = vadd.f32 1.0, %v2287_v44 }
0x209e   :  { %2288 = vrcp.f32 %v1789_v31  ;;  %v1801_v49 = vand.u32 2147483648, %v1789_v31  ;;  %vm1795_vm9 = vweird.f32 %v1789_v31  ;;  %v1799_v22 = vand.u32 2147483647, %v1789_v31 }
0x20a0   :  { %v1802_v38 = vor.u32 1.1754944e-38, %v1801_v49  ;;  %vm1800_vm11 = vcmp.eq.f32.partialorder %v1799_v22, 8.507059e+37  ;;  %v1949_v22 = vld [vmem:[%s3062_s9 + $0x38] sm:$0xff] }
0x20a1   :  { %1966 = vmatpush.msra.mxu2 %v1949_v22 }
0x20a4   :  { %v2289_v10 = vpop.eup %2288 }
0x20a5   :  { %v1791_v19 = vmul.f32 %v2289_v10, %v1789_v31  ;;  %vm1796_vm8 = vweird.f32 %v2289_v10 }
0x20a6   :  { %vm1797_vm10 = vmor %vm1795_vm9, %vm1796_vm8 }
0x20a7   :  { %v1792_v20 = vsub.f32 1.0, %v1791_v19 }
0x20a9   :  { %v1793_v7 = vmul.f32 %v2289_v10, %v1792_v20 }
0x20ab   :  { %v1794_v47 = vadd.f32 %v2289_v10, %v1793_v7 }
0x20ad   :  { %v1798_v51 = vsel %vm1797_vm10, %v2289_v10, %v1794_v47 }
0x20ae   :  { %v1803_v43 = vsel %vm1800_vm11, %v1802_v38, %v1798_v51  ;;  %v1948_v51 = vld [vmem:[%s3062_s9 + $0x30] sm:$0xff]  ;;  %v1947_v38 = vld [vmem:[%s3062_s9 + $0x28] sm:$0xff] }
0x20af   :  { %v1809_v58 = vmul.f32 %v1807_v61, %v1803_v43  ;;  %1967 = vmatpush.msra.mxu2 %v1948_v51 }
0x20b1   :  { %1968 = vmatpush.msra.mxu2 %v1947_v38 }
0x210c   :  { %v1812_v46 = vpop.permute.xlu1 %1811 }
0x210d   :  { %v1814_v14 = vmul.f32 %v1812_v46, %v1803_v43  ;;  %v1946_v46 = vld [vmem:[%s3062_s9 + $0x20] sm:$0xff] }
0x210e   :  { %1969 = vmatpush.msra.mxu2 %v1946_v46 }
0x210f   :  { %1816 = vrot.lane.b32.xlu2 %v1814_v14, %s2342_s4  ;;  %v1944_v14 = vld [vmem:[%s3062_s9 + $0x10] sm:$0xff] }
0x2169   :  { %v1817_v45 = vpop.permute.xlu2 %1816 }
0x216a   :  { %v2985_v59 = vadd.f32 %v1817_v45, %v1809_v58  ;;  %v1943_v45 = vld [vmem:[%s3062_s9 + $0x8] sm:$0xff] }
0x216c   :  { %2290 = vtanh.f32 %v2985_v59  ;;  %v1877_v31 = vrot.slane %v2985_v59, 6  ;;  %v1942_v59 = vld [vmem:[%s3062_s9] sm:$0xff] }
0x216d   :  { %2292 = vtanh.f32 %v1351_v4 }
0x216e   :  { %2294 = vpow2.f32 %v2098_v60 }
0x2172   :  { %v2291_v8 = vpop.eup %2290 }
0x2173   :  { %1822 = vrot.lane.b32.xlu0 %v2291_v8, %s2341_s26  ;;  %v2293_v13 = vpop.eup %2292 }
0x2174   :  { %v2295_v23 = vpop.eup %2294 }
0x2175   :  { %v1899_v24 = vadd.f32 1.0, %v2295_v23 }
0x2177   :  { %2296 = vrcp.f32 %v1899_v24  ;;  %v1911_v6 = vand.u32 2147483648, %v1899_v24  ;;  %vm1905_vm13 = vweird.f32 %v1899_v24  ;;  %v1909_v50 = vand.u32 2147483647, %v1899_v24 }
0x2179   :  { %v1912_v28 = vor.u32 1.1754944e-38, %v1911_v6  ;;  %vm1910_vm2 = vcmp.eq.f32.partialorder %v1909_v50, 8.507059e+37 }
0x217b   :  { %1918 = vrot.lane.b32.xlu0 %v2293_v13, %s2341_s26  ;;  %v1988_v13 = vld [vmem:[%s3064_s11 + $0x18] sm:$0xff] }
0x217c   :  { %2008 = vmatpush.msra.mxu3 %v1988_v13 }
0x217d   :  { %v2297_v25 = vpop.eup %2296 }
0x217e   :  { %v1901_v11 = vmul.f32 %v2297_v25, %v1899_v24  ;;  %vm1906_vm12 = vweird.f32 %v2297_v25 }
0x217f   :  { %vm1907_vm1 = vmor %vm1905_vm13, %vm1906_vm12 }
0x2180   :  { %v1902_v27 = vsub.f32 1.0, %v1901_v11 }
0x2182   :  { %v1903_v26 = vmul.f32 %v2297_v25, %v1902_v27 }
0x2184   :  { %v1904_v52 = vadd.f32 %v2297_v25, %v1903_v26 }
0x2186   :  { %v1908_v57 = vsel %vm1907_vm1, %v2297_v25, %v1904_v52 }
0x2187   :  { %v1913_v55 = vsel %vm1910_vm2, %v1912_v28, %v1908_v57 }
0x2188   :  { %v1916_v9 = vmul.f32 0.0, %v1913_v55 }
0x21e5   :  { %v1823_v36 = vpop.permute.xlu0 %1822 }
0x21e6   :  { %v1825_v63 = vmul.f32 %v1823_v36, %v1803_v43  ;;  %v1945_v43 = vld [vmem:[%s3062_s9 + $0x18] sm:$0xff]  ;;  %v1987_v36 = vld [vmem:[%s3064_s11 + $0x10] sm:$0xff] }
0x21e7   :  { %1970 = vmatpush.msra.mxu2 %v1945_v43  ;;  %2009 = vmatpush.msra.mxu3 %v1987_v36 }
0x21e8   :  { %v1827_v37 = vrot.slane %v1825_v63, 4  ;;  %v1986_v63 = vld [vmem:[%s3064_s11 + $0x8] sm:$0xff] }
0x21e9   :  { %1971 = vmatpush.msra.mxu2 %v1944_v14  ;;  %2010 = vmatpush.msra.mxu3 %v1986_v63 }
0x21ea   :  { %1828 = vrot.lane.b32.xlu1 %v1827_v37, %s2342_s4  ;;  %v1985_v37 = vld [vmem:[%s3064_s11] sm:$0xff] }
0x21eb   :  { %1972 = vmatpush.msra.mxu2 %v1943_v45  ;;  %2011 = vmatpush.msra.mxu3 %v1985_v37 }
0x21ed   :  { %v1919_v29 = vpop.permute.xlu0 %1918  ;;  %1973 = vmatpush.msra.mxu2 %v1942_v59 }
0x21ee   :  { %v1921_v56 = vmul.f32 %v1919_v29, %v1913_v55 }
0x225c   :  { %v1829_v42 = vpop.permute.xlu1 %1828 }
0x225d   :  { %2096 = vmatmul.msk.f32.vlgmr.msrb.gmra.mxu1 %vm69_vm0, %v1829_v42  ;;  %v2106_v42 = vld [vmem:[%s3063_s10] ss:$0 sm:$0xff]  ;;  %s2343_s10 = smov [#allocation2]  }
0x225e   :  { %s2034_s11 = sshll.u32 %s2343_s10, 4  ;;  %s2035_s11 = int_to_ptr.vmem [resolvable:$true] %s2034_s11 }
0x22da   :  { %v1849_v17 = vpop.f32.mrf.mxu1 }
0x22db   :  { %v1853_v15 = vrot.slane %v1849_v17, 2 }
0x22dd   :  { %v1855_v48 = vadd.f32 %v1853_v15, %v2967_v30 }
0x22df   :  { %2298 = vtanh.f32 %v1855_v48  ;;  %v2097_v30 = vmul.f32 -1.442695, %v1855_v48  ;;  %v2107_v48 = vld [vmem:[%s3065_s12] ss:$0 sm:$0xff] }
0x22e1   :  { %2300 = vpow2.f32 %v2097_v30 }
0x22e5   :  { %v2299_v21 = vpop.eup %2298 }
0x22e6   :  { %1881 = vrot.lane.b32.xlu2 %v2299_v21, %s2341_s26 }
0x22e7   :  { %v2301_v1 = vpop.eup %2300 }
0x22e8   :  { %v1859_v2 = vadd.f32 1.0, %v2301_v1 }
0x22ea   :  { %2302 = vrcp.f32 %v1859_v2  ;;  %v1871_v35 = vand.u32 2147483648, %v1859_v2  ;;  %vm1865_vm14 = vweird.f32 %v1859_v2  ;;  %v1869_v16 = vand.u32 2147483647, %v1859_v2 }
0x22ec   :  { %v1872_v39 = vor.u32 1.1754944e-38, %v1871_v35  ;;  %vm1870_vm5 = vcmp.eq.f32.partialorder %v1869_v16, 8.507059e+37 }
0x22ee   :  { %1923 = vrot.lane.b32.xlu2 %v1921_v56, %s2342_s4 }
0x22f0   :  { %v2303_v32 = vpop.eup %2302 }
0x22f1   :  { %v1861_v3 = vmul.f32 %v2303_v32, %v1859_v2  ;;  %vm1866_vm3 = vweird.f32 %v2303_v32 }
0x22f2   :  { %vm1867_vm15 = vmor %vm1865_vm14, %vm1866_vm3 }
0x22f3   :  { %v1862_v5 = vsub.f32 1.0, %v1861_v3 }
0x22f5   :  { %v1863_v33 = vmul.f32 %v2303_v32, %v1862_v5 }
0x22f7   :  { %v1864_v34 = vadd.f32 %v2303_v32, %v1863_v33 }
0x22f9   :  { %v1868_v62 = vsel %vm1867_vm15, %v2303_v32, %v1864_v34 }
0x22fa   :  { %v1873_v41 = vsel %vm1870_vm5, %v1872_v39, %v1868_v62 }
0x22fb   :  { %v1879_v10 = vmul.f32 %v1877_v31, %v1873_v41 }
0x2340   :  { %v1882_v54 = vpop.permute.xlu2 %1881 }
0x2341   :  { %v1884_v18 = vmul.f32 %v1882_v54, %v1873_v41 }
0x2343   :  { %1886 = vrot.lane.b32.xlu1 %v1884_v18, %s2342_s4 }
0x2348   :  { %v1924_v40 = vpop.permute.xlu2 %1923 }
0x2349   :  { %v1926_v53 = vadd.f32 %v1924_v40, %v1916_v9 }
0x234b   :  { %2304 = vtanh.f32 %v1926_v53 }
0x2351   :  { %v2305_v44 = vpop.eup %2304 }
0x2352   :  { %1929 = vrot.lane.b32.xlu1 %v2305_v44, %s2341_s26 }
0x23b5   :  { %v1887_v19 = vpop.permute.xlu1 %1886 }
0x23b6   :  { %v1889_v20 = vadd.f32 %v1887_v19, %v1879_v10 }
0x23b8   :  { %2306 = vtanh.f32 %v1889_v20 }
0x23be   :  { %v2307_v7 = vpop.eup %2306 }
0x23bf   :  { %1892 = vrot.lane.b32.xlu0 %v2307_v7, %s2341_s26 }
0x23c4   :  { %v1930_v47 = vpop.permute.xlu1 %1929 }
0x23c5   :  { %v1932_v49 = vmul.f32 %v1930_v47, %v1913_v55 }
0x23c7   :  { %1938 = vrot.lane.b32.xlu0 %v1932_v49, %s2341_s26 }
0x2431   :  { %v1893_v61 = vpop.permute.xlu0 %1892 }
0x2432   :  { %v1895_v58 = vmul.f32 %v1893_v61, %v1873_v41 }
0x2434   :  { %1934 = vrot.lane.b32.xlu2 %v1895_v58, %s2342_s4 }
0x2439   :  { %v1939_v0 = vpop.permute.xlu0 %1938 }
0x248e   :  { %v1935_v12 = vpop.permute.xlu2 %1934 }
0x248f   :  { %v1941_v4 = vsel %vm69_vm0, %v1935_v12, %v1939_v0 }
0x2490   :  { %v1955_v8 = vrot.slane %v1941_v4, 6 }
0x2492   :  { %2099 = vmatmul.msk.f32.vlgmr.msra.gmra.mxu2 %vm1301_vm4, %v1955_v8 }
0x2515   :  { %v1975_v60 = vpop.f32.mrf.mxu2 }
0x2516   :  { %v1976_v23 = vadd.f32 %v2106_v42, %v1975_v60 }
0x2518   :  { %v1979_v24 = vmul.f32 1.442695, %v1976_v23  ;;  %vm1978_vm4 = vcmp.gt.f32.partialorder %v1976_v23, 0.0 }
0x251a   :  { %2308 = vpow2.f32 %v1979_v24 }
0x2520   :  { %v2309_v25 = vpop.eup %2308 }
0x2521   :  { %v2100_v11 = vadd.f32 -1.0, %v2309_v25 }
0x2523   :  { %v1982_v17 = vmul.f32 1.6732632, %v2100_v11 }
0x2525   :  { %v1983_v15 = vsel %vm1978_vm4, %v1976_v23, %v1982_v17 }
0x2526   :  { %v1984_v27 = vmul.f32 1.050701, %v1983_v15 }
0x2528   :  { %2101 = vmatmul.msk.f32.vlgmr.msra.gmra.mxu3 %vm69_vm0, %v1984_v27 }
0x25ab   :  { %v2013_v26 = vpop.f32.mrf.mxu3 }
0x25ac   :  { %v2014_v52 = vadd.f32 %v2107_v48, %v2013_v26 }
0x25ae   :  { %v2017_v21 = vsel %vm2016_vm6, %v2014_v52, -inf }
0x25af   :  { %2018 = vmax.xlane.f32.xlu1 %v2017_v21 }
0x2622   :  { %v2019_v6 = vpop.xlane.xlu1 %2018 }
0x2623   :  { %v2020_v50 = vsub.f32 %v2014_v52, %v2019_v6 }
0x2625   :  { %v2021_v57 = vmul.f32 1.442695, %v2020_v50 }
0x2627   :  { %2310 = vpow2.f32 %v2021_v57 }
0x262d   :  { %v2311_v28 = vpop.eup %2310 }
0x262e   :  { %v2023_v29 = vsel %vm2016_vm6, %v2311_v28, 0.0 }
0x262f   :  { %2024 = vadd.xlane.f32.xlu2 %v2023_v29 }
0x26a2   :  { %v2025_v55 = vpop.xlane.xlu2 %2024 }
0x26a3   :  { %2312 = vrcp.f32 %v2025_v55 }
0x26a9   :  { %v2313_v56 = vpop.eup %2312 }
0x26aa   :  { %v2027_v30 = vmul.f32 %v2313_v56, %v2311_v28 }
0x26ac   :  { %2028 = vst.msk [vmem:[#allocation2] sm:$0x3] %vm2016_vm6, %v2027_v30 }
0x26ad   :  { %2039 = dma.vmem_to_hbm [thread:$0]  %s2035_s11, 32, %s2037_s3, [#allocation3]  }
0x26ae   :  { %2338 = dma.done.wait [#allocation3], 32  }
0x26af   :  { %2339 = vsyncadd [#allocation3], 4294967264 }
0x26b0   :  { %2044 = vsyncpa [#allocation3], 1 }

</bundles_post_ra>
